<compile_context>
chip_gen: v7x
topology: tpu7x:2x2x1
jax: 0.10.0
libtpu: 0.0.40
codegen_flags: <defaults>
</compile_context>

<pallas_src>
import functools

import numpy as np

import jax
import jax.numpy as jnp
from jax.experimental import pallas as pl
from jax.experimental.pallas import tpu as pltpu


# ------------------------------ Pallas kernel -------------------------------

def _fused_cnn_kernel(x27_ref, mask2_ref, w1_ref, b1_ref, w2_ref, b2_ref,
                      wfc_ref, bfc_ref, o_ref, y1pad_ref,
                      *, n, height, width, c1, c2, pad):
    m = x27_ref.shape[0]          # N*H*W (static), rows in (n, h, w) order
    hw = height * width

    # ---- conv1 + ReLU: a single K=27 MXU matmul over the wrapper-built
    # ---- im2col (zero padding already baked into x27).
    y1 = jnp.dot(x27_ref[...], w1_ref[...],
                 preferred_element_type=jnp.float32) + b1_ref[...]
    y1 = jnp.maximum(y1, 0.0)                                   # (M, C1)

    # ---- stage y1 into a zero-padded scratch so every conv2 tap is a plain
    # ---- static-offset row slice (vector loads, no XLU rolls).
    y1pad_ref[0:pad, :] = jnp.zeros((pad, c1), jnp.float32)
    y1pad_ref[pad + m:, :] = jnp.zeros((pad, c1), jnp.float32)
    y1pad_ref[pad:pad + m, :] = y1

    # ---- conv2 + ReLU as ONE K=9*C1 matmul.  Row r of tap k holds
    # ---- y1[r + oy*W + ox]; rows whose source pixel falls outside the image
    # ---- (zero padding / cross-image bleed) are zeroed by the precomputed
    # ---- 0/1 mask (single fused multiply).
    taps = []
    for k in range(9):
        oy, ox = k // 3 - 1, k % 3 - 1
        off = oy * width + ox
        taps.append(y1pad_ref[pad + off:pad + off + m, :])
    tapcat = jnp.concatenate(taps, axis=1) * mask2_ref[...]      # (M, 9*C1)
    y2 = jnp.dot(tapcat, w2_ref[...],
                 preferred_element_type=jnp.float32) + b2_ref[...]
    y2 = jnp.maximum(y2, 0.0)                                    # (M, C2)

    # ---- AdaptiveAvgPool2d(1): per-image mean over H*W rows (no dense
    # ---- pooling matrix), then fc + sigmoid.
    pooled = jnp.sum(y2.reshape(n, hw, c2), axis=1) * (1.0 / hw)  # (N, C2)
    logits = jnp.dot(pooled, wfc_ref[...],
                     preferred_element_type=jnp.float32) + bfc_ref[...]
    o_ref[...] = 1.0 / (1.0 + jnp.exp(-logits))                   # sigmoid


# -------------------------------- wrapper ------------------------------------

def cnn_forward(x_nchw, w1, b1, w2, b2, wfc, bfc):
    n, cin, h, w = x_nchw.shape
    c1, c2 = w1.shape[0], w2.shape[0]
    m = n * h * w
    pad = ((w + 1 + 7) // 8) * 8          # >= W+1 (max |tap offset|), 8-aligned

    # --- conv1 im2col in XLA: (N, C, H, W) -> (N*H*W, 9*Cin), rows in
    # --- (n, h, w) order, column block k = (dy, dx) holds input(h+dy-1, w+dx-1)
    # --- with zero padding.
    x_nhwc = jnp.transpose(x_nchw, (0, 2, 3, 1))
    xp = jnp.pad(x_nhwc, ((0, 0), (1, 1), (1, 1), (0, 0)))
    cols = [xp[:, dy:dy + h, dx:dx + w, :] for dy in range(3) for dx in range(3)]
    x27 = jnp.concatenate(cols, axis=-1).reshape(m, 9 * cin)

    # --- trace-time conv2 tap-validity mask, pre-broadcast over each tap's C1
    # --- lanes so the kernel applies it with one multiply.
    r = np.arange(m)
    hh = (r // w) % h
    ww = r % w
    mask2 = np.zeros((m, 9, c1), np.float32)
    for k in range(9):
        oy, ox = k // 3 - 1, k % 3 - 1
        valid = ((hh + oy >= 0) & (hh + oy < h) &
                 (ww + ox >= 0) & (ww + ox < w))
        mask2[:, k, :] = valid.astype(np.float32)[:, None]
    mask2 = mask2.reshape(m, 9 * c1)

    # --- PyTorch (Cout, Cin, kh, kw) -> (kh*kw*Cin, Cout): row k*Cin+i of the
    # --- flat weight multiplies column k*Cin+i of the im2col / tap matrix.
    w1f = jnp.transpose(w1, (2, 3, 1, 0)).reshape(9 * cin, c1)
    w2f = jnp.transpose(w2, (2, 3, 1, 0)).reshape(9 * c1, c2)

    kern = functools.partial(_fused_cnn_kernel, n=n, height=h, width=w,
                             c1=c1, c2=c2, pad=pad)

    # Single fused call, no grid: the full working set (< 2 MiB incl. lane
    # padding) fits VMEM with huge headroom on v5e/v6e/v7x, intermediates
    # never touch HBM, and per-grid-step overhead is avoided (v5e/v6e have a
    # single TensorCore anyway).  TODO(synk): grid over batch for v7x dual-TC.
    return pl.pallas_call(
        kern,
        out_shape=jax.ShapeDtypeStruct((n, 1), jnp.float32),
        in_specs=[pl.BlockSpec(memory_space=pltpu.MemorySpace.VMEM)] * 8,
        out_specs=pl.BlockSpec(memory_space=pltpu.MemorySpace.VMEM),
        scratch_shapes=[pltpu.VMEM((m + 2 * pad, c1), jnp.float32)],
    )(x27, jnp.asarray(mask2), w1f, b1.reshape(1, c1),
      w2f, b2.reshape(1, c2), jnp.transpose(wfc), bfc.reshape(1, 1))


# ------------------------------ pure-JAX ref ---------------------------------

def ref_forward(x, w1, b1, w2, b2, wfc, bfc):
    # Mirrors the PyTorch module exactly (NCHW).
    dn = ("NCHW", "OIHW", "NCHW")
    y = jax.lax.conv_general_dilated(x, w1, (1, 1), ((1, 1), (1, 1)),
                                     dimension_numbers=dn)
    y = jnp.maximum(y + b1[None, :, None, None], 0.0)
    y = jax.lax.conv_general_dilated(y, w2, (1, 1), ((1, 1), (1, 1)),
                                     dimension_numbers=dn)
    y = jnp.maximum(y + b2[None, :, None, None], 0.0)
    pooled = jnp.mean(y, axis=(2, 3))                               # (N, 32)
    logits = pooled @ wfc.T + bfc[None, :]
    return jax.nn.sigmoid(logits)                                   # (N, 1)


# --------------------------------- main ---------------------------------------

if __name__ == "__main__":
    key = jax.random.PRNGKey(0)
    kx, k1, k2, k3, k4, k5, k6 = jax.random.split(key, 7)

    # Input: NCHW, 3 channels as required by conv1.
    x = jax.random.normal(kx, (2, 3, 16, 16), jnp.float32)

    # Deterministic synthetic parameters (PyTorch shapes).
    w1 = jax.random.normal(k1, (16, 3, 3, 3), jnp.float32) / jnp.sqrt(27.0)
    b1 = jax.random.normal(k2, (16,), jnp.float32) * 0.05
    w2 = jax.random.normal(k3, (32, 16, 3, 3), jnp.float32) / jnp.sqrt(144.0)
    b2 = jax.random.normal(k4, (32,), jnp.float32) * 0.05
    wfc = jax.random.normal(k5, (1, 32), jnp.float32) / jnp.sqrt(32.0)
    bfc = jax.random.normal(k6, (1,), jnp.float32) * 0.05

    out = jax.jit(cnn_forward)(x, w1, b1, w2, b2, wfc, bfc)
    out = jax.block_until_ready(out)

    ref = ref_forward(x, w1, b1, w2, b2, wfc, bfc)
    assert out.shape == (2, 1), out.shape
    if not jnp.allclose(out, ref, atol=1e-3, rtol=1e-3):
        raise AssertionError(f"mismatch: pallas={out} ref={ref}")
    print("KERNEL_OK")
</pallas_src>

<mosaic_0001>
module attributes {stable_mosaic.version = 11 : i64} {
  func.func @_fused_cnn_kernel(%arg0: memref<512x27xf32, #tpu.memory_space<vmem>>, %arg1: memref<512x144xf32, #tpu.memory_space<vmem>>, %arg2: memref<27x16xf32, #tpu.memory_space<vmem>>, %arg3: memref<1x16xf32, #tpu.memory_space<vmem>>, %arg4: memref<144x32xf32, #tpu.memory_space<vmem>>, %arg5: memref<1x32xf32, #tpu.memory_space<vmem>>, %arg6: memref<32x1xf32, #tpu.memory_space<vmem>>, %arg7: memref<1x1xf32, #tpu.memory_space<vmem>>, %arg8: memref<2x1xf32, #tpu.memory_space<vmem>>, %arg9: memref<560x16xf32, #tpu.memory_space<vmem>>) attributes {dimension_semantics = [], scalar_prefetch = 0 : i64, scratch_operands = 1 : i64, tpu.core_type = #tpu.core_type<tc>} {
    %c0 = arith.constant 0 : index
    %c0_0 = arith.constant 0 : index
    %0 = vector.load %arg0[%c0, %c0_0] : memref<512x27xf32, #tpu.memory_space<vmem>>, vector<512x27xf32>
    %c0_1 = arith.constant 0 : index
    %c0_2 = arith.constant 0 : index
    %1 = vector.load %arg2[%c0_1, %c0_2] : memref<27x16xf32, #tpu.memory_space<vmem>>, vector<27x16xf32>
    %cst = arith.constant dense<0.000000e+00> : vector<512x16xf32>
    %2 = tpu.matmul %0, %1, %cst {dimension_numbers = #tpu.dot_dimension_numbers<[1], [0], [0], [1], [0, 0, 1, 1], [], []>} : vector<512x27xf32>, vector<27x16xf32>, vector<512x16xf32> -> vector<512x16xf32>
    %c0_3 = arith.constant 0 : index
    %c0_4 = arith.constant 0 : index
    %3 = vector.load %arg3[%c0_3, %c0_4] : memref<1x16xf32, #tpu.memory_space<vmem>>, vector<1x16xf32>
    %4 = vector.broadcast %3 : vector<1x16xf32> to vector<512x16xf32>
    %5 = arith.addf %2, %4 : vector<512x16xf32>
    %cst_5 = arith.constant 0.000000e+00 : f32
    %6 = vector.broadcast %cst_5 : f32 to vector<512x16xf32>
    %7 = arith.maximumf %5, %6 : vector<512x16xf32>
    %cst_6 = arith.constant 0.000000e+00 : f32
    %8 = vector.broadcast %cst_6 : f32 to vector<24x16xf32>
    %c0_7 = arith.constant 0 : index
    %c0_8 = arith.constant 0 : index
    %9 = vector.load %arg9[%c0_7, %c0_8] : memref<560x16xf32, #tpu.memory_space<vmem>>, vector<24x16xf32>
    tpu.vector_store %arg9[%c0_7, %c0_8], %8 {strides = array<i32>} : memref<560x16xf32, #tpu.memory_space<vmem>>, vector<24x16xf32>,
    %cst_9 = arith.constant 0.000000e+00 : f32
    %10 = vector.broadcast %cst_9 : f32 to vector<24x16xf32>
    %c536 = arith.constant 536 : index
    %c0_10 = arith.constant 0 : index
    %11 = vector.load %arg9[%c536, %c0_10] : memref<560x16xf32, #tpu.memory_space<vmem>>, vector<24x16xf32>
    tpu.vector_store %arg9[%c536, %c0_10], %10 {strides = array<i32>} : memref<560x16xf32, #tpu.memory_space<vmem>>, vector<24x16xf32>,
    %c24 = arith.constant 24 : index
    %c0_11 = arith.constant 0 : index
    %12 = vector.load %arg9[%c24, %c0_11] : memref<560x16xf32, #tpu.memory_space<vmem>>, vector<512x16xf32>
    tpu.vector_store %arg9[%c24, %c0_11], %7 {strides = array<i32>} : memref<560x16xf32, #tpu.memory_space<vmem>>, vector<512x16xf32>,
    %c7 = arith.constant 7 : index
    %c0_12 = arith.constant 0 : index
    %13 = vector.load %arg9[%c7, %c0_12] : memref<560x16xf32, #tpu.memory_space<vmem>>, vector<512x16xf32>
    %c8 = arith.constant 8 : index
    %c0_13 = arith.constant 0 : index
    %14 = vector.load %arg9[%c8, %c0_13] : memref<560x16xf32, #tpu.memory_space<vmem>>, vector<512x16xf32>
    %c9 = arith.constant 9 : index
    %c0_14 = arith.constant 0 : index
    %15 = vector.load %arg9[%c9, %c0_14] : memref<560x16xf32, #tpu.memory_space<vmem>>, vector<512x16xf32>
    %c23 = arith.constant 23 : index
    %c0_15 = arith.constant 0 : index
    %16 = vector.load %arg9[%c23, %c0_15] : memref<560x16xf32, #tpu.memory_space<vmem>>, vector<512x16xf32>
    %c24_16 = arith.constant 24 : index
    %c0_17 = arith.constant 0 : index
    %17 = vector.load %arg9[%c24_16, %c0_17] : memref<560x16xf32, #tpu.memory_space<vmem>>, vector<512x16xf32>
    %c25 = arith.constant 25 : index
    %c0_18 = arith.constant 0 : index
    %18 = vector.load %arg9[%c25, %c0_18] : memref<560x16xf32, #tpu.memory_space<vmem>>, vector<512x16xf32>
    %c39 = arith.constant 39 : index
    %c0_19 = arith.constant 0 : index
    %19 = vector.load %arg9[%c39, %c0_19] : memref<560x16xf32, #tpu.memory_space<vmem>>, vector<512x16xf32>
    %c40 = arith.constant 40 : index
    %c0_20 = arith.constant 0 : index
    %20 = vector.load %arg9[%c40, %c0_20] : memref<560x16xf32, #tpu.memory_space<vmem>>, vector<512x16xf32>
    %c41 = arith.constant 41 : index
    %c0_21 = arith.constant 0 : index
    %21 = vector.load %arg9[%c41, %c0_21] : memref<560x16xf32, #tpu.memory_space<vmem>>, vector<512x16xf32>
    %22 = tpu.concatenate %13, %14, %15, %16, %17, %18, %19, %20, %21 in 1 : vector<512x16xf32>, vector<512x16xf32>, vector<512x16xf32>, vector<512x16xf32>, vector<512x16xf32>, vector<512x16xf32>, vector<512x16xf32>, vector<512x16xf32>, vector<512x16xf32> -> vector<512x144xf32>
    %c0_22 = arith.constant 0 : index
    %c0_23 = arith.constant 0 : index
    %23 = vector.load %arg1[%c0_22, %c0_23] : memref<512x144xf32, #tpu.memory_space<vmem>>, vector<512x144xf32>
    %24 = arith.mulf %22, %23 : vector<512x144xf32>
    %c0_24 = arith.constant 0 : index
    %c0_25 = arith.constant 0 : index
    %25 = vector.load %arg4[%c0_24, %c0_25] : memref<144x32xf32, #tpu.memory_space<vmem>>, vector<144x32xf32>
    %cst_26 = arith.constant dense<0.000000e+00> : vector<512x32xf32>
    %26 = tpu.matmul %24, %25, %cst_26 {dimension_numbers = #tpu.dot_dimension_numbers<[1], [0], [0], [1], [0, 0, 1, 1], [], []>} : vector<512x144xf32>, vector<144x32xf32>, vector<512x32xf32> -> vector<512x32xf32>
    %c0_27 = arith.constant 0 : index
    %c0_28 = arith.constant 0 : index
    %27 = vector.load %arg5[%c0_27, %c0_28] : memref<1x32xf32, #tpu.memory_space<vmem>>, vector<1x32xf32>
    %28 = vector.broadcast %27 : vector<1x32xf32> to vector<512x32xf32>
    %29 = arith.addf %26, %28 : vector<512x32xf32>
    %cst_29 = arith.constant 0.000000e+00 : f32
    %30 = vector.broadcast %cst_29 : f32 to vector<512x32xf32>
    %31 = arith.maximumf %29, %30 : vector<512x32xf32>
    %32 = vector.shape_cast %31 : vector<512x32xf32> to vector<2x256x32xf32>
    %cst_30 = arith.constant dense<0.000000e+00> : vector<2x32xf32>
    %33 = vector.multi_reduction <add>, %32, %cst_30 [1] : vector<2x256x32xf32> to vector<2x32xf32>
    %cst_31 = arith.constant 3.906250e-03 : f32
    %34 = vector.broadcast %cst_31 : f32 to vector<2x32xf32>
    %35 = arith.mulf %33, %34 : vector<2x32xf32>
    %c0_32 = arith.constant 0 : index
    %c0_33 = arith.constant 0 : index
    %36 = vector.load %arg6[%c0_32, %c0_33] : memref<32x1xf32, #tpu.memory_space<vmem>>, vector<32x1xf32>
    %cst_34 = arith.constant dense<0.000000e+00> : vector<2x1xf32>
    %37 = tpu.matmul %35, %36, %cst_34 {dimension_numbers = #tpu.dot_dimension_numbers<[1], [0], [0], [1], [0, 0, 1, 1], [], []>} : vector<2x32xf32>, vector<32x1xf32>, vector<2x1xf32> -> vector<2x1xf32>
    %c0_35 = arith.constant 0 : index
    %c0_36 = arith.constant 0 : index
    %38 = vector.load %arg7[%c0_35, %c0_36] : memref<1x1xf32, #tpu.memory_space<vmem>>, vector<1x1xf32>
    %39 = vector.broadcast %38 : vector<1x1xf32> to vector<2x1xf32>
    %40 = arith.addf %37, %39 : vector<2x1xf32>
    %cst_37 = arith.constant 0.000000e+00 : f32
    %41 = vector.broadcast %cst_37 : f32 to vector<2x1xf32>
    %42 = arith.subf %41, %40 : vector<2x1xf32>
    %43 = math.exp %42 : vector<2x1xf32>
    %cst_38 = arith.constant 1.000000e+00 : f32
    %44 = vector.broadcast %cst_38 : f32 to vector<2x1xf32>
    %45 = arith.addf %44, %43 : vector<2x1xf32>
    %cst_39 = arith.constant 1.000000e+00 : f32
    %46 = vector.broadcast %cst_39 : f32 to vector<2x1xf32>
    %47 = arith.divf %46, %45 : vector<2x1xf32>
    %c0_40 = arith.constant 0 : index
    %c0_41 = arith.constant 0 : index
    %48 = vector.load %arg8[%c0_40, %c0_41] : memref<2x1xf32, #tpu.memory_space<vmem>>, vector<2x1xf32>
    tpu.vector_store %arg8[%c0_40, %c0_41], %47 {strides = array<i32>} : memref<2x1xf32, #tpu.memory_space<vmem>>, vector<2x1xf32>,
    return
  }
}

</mosaic_0001>

<bundles_post_ra>
// kernel: cnn_forward.1
= control target key start
LH: loop header
LB: loop body
LE: loop exit
PB: predicated region body
PF: predicated region fallthrough
CT: control target
= control target key end

     0   :  { %vm299_vm0 = vcmask 1042432   ;;  %vm106_vm1 = vcmask 220160   ;;  %vm4668_vm2 = vmmov 1   ;;  %vm752_vm4 = vcmask 130048   ;;  %s4670_s13 = smov 16   ;;  %s4671_s21 = smov 32   ;;  %s7914_s2 = inlined_call_operand.vmem [shape: f32[27,16], index: 2, kind: input, shape index: {}]   ;;  %s7915_s0 = inlined_call_operand.vmem [shape: f32[512,27], index: 0, kind: input, shape index: {}]   ;;  %s7916_s3 = inlined_call_operand.vmem [shape: f32[1,16], index: 3, kind: input, shape index: {}]   ;;  %s7917_s1 = inlined_call_operand.vmem [shape: f32[512,144], index: 1, kind: input, shape index: {}]   ;;  %s7918_s4 = inlined_call_operand.vmem [shape: f32[144,32], index: 4, kind: input, shape index: {}]   ;;  %s7919_s5 = inlined_call_operand.vmem [shape: f32[1,32], index: 5, kind: input, shape index: {}]   ;;  %s7920_s6 = inlined_call_operand.vmem [shape: f32[32,1], index: 6, kind: input, shape index: {}]   ;;  %s7921_s7 = inlined_call_operand.<no memory space> [shape: f32[1,1], index: 7, kind: input, shape index: {}]   ;;  %s7922_s8 = inlined_call_operand.vmem [shape: f32[2,1], index: 8, kind: output, shape index: {}]  }
   0x1   :  { %v95_v0 = vld [vmem:[%s7914_s2] sm:$0xff]  ;;  %v96_v1 = vld [vmem:[%s7914_s2 + $0x8] sm:$0xff]  ;;  %v97_v2 = vld [vmem:[%s7914_s2 + $0x10] sm:$0xff]  ;;  %v7923_v48 = vmov 0.0   ;;  %s4673_s10 = smov 48   ;;  %s4674_s16 = smov 64  }
   0x2   :  { %v4507_v3 = vpack.c.bf16 %v96_v1, %v95_v0  ;;  %v98_v4 = vld [vmem:[%s7914_s2 + $0x18] sm:$0x7]  ;;  %v31_v5 = vld [vmem:[%s7915_s0] sm:$0xff]  ;;  %vm4512_vm3 = vmpackc.low %vm299_vm0, %vm4668_vm2  ;;  %754 = vst.msk [vmem:[#allocation2 + $0x8] sm:$0xff] %vm752_vm4, %v7923_v48  ;;  %s4675_s25 = smov 80   ;;  %s4676_s30 = smov 112  }
   0x3   :  { %v4511_v6 = vpack.c.bf16 %v98_v4, %v97_v2  ;;  %4400 = vmatprep.mubr.msk.f32.mxu0 %vm106_vm1, %v31_v5  ;;  %v32_v7 = vld [vmem:[%s7915_s0 + $0x8] sm:$0xff]  ;;  %v33_v8 = vld [vmem:[%s7915_s0 + $0x10] sm:$0xff]  ;;  %v34_v9 = vld [vmem:[%s7915_s0 + $0x18] sm:$0xff]  ;;  %753 = vst.msk [vmem:[#allocation2] sm:$0xff] %vm752_vm4, %v7923_v48  ;;  %vm2635_vm5 = vcmask 261120   ;;  %vm2700_vm6 = vcmask 392192  }
   0x4   :  { %4508 = vmatprep.subr.bf16.mxu0 %v4507_v3  ;;  %v35_v10 = vld [vmem:[%s7915_s0 + $0x20] sm:$0xff]  ;;  %v36_v11 = vld [vmem:[%s7915_s0 + $0x28] sm:$0xff]  ;;  %v37_v12 = vld [vmem:[%s7915_s0 + $0x30] sm:$0xff]  ;;  %755 = vst.msk [vmem:[#allocation2 + $0x10] sm:$0xff] %vm752_vm4, %v7923_v48  ;;  %vm2765_vm7 = vcmask 523264   ;;  %vm2830_vm8 = vcmask 654336  }
   0x5   :  { %4510 = vmatpush3.bf16.msra.mxu0 %v4507_v3  ;;  %v38_v13 = vld [vmem:[%s7915_s0 + $0x38] sm:$0xff]  ;;  %v39_v14 = vld [vmem:[%s7915_s0 + $0x40] sm:$0xff]  ;;  %v40_v15 = vld [vmem:[%s7915_s0 + $0x48] sm:$0xff]  ;;  %756 = vst.msk [vmem:[#allocation2 + $0x218] sm:$0xff] %vm752_vm4, %v7923_v48  ;;  %vm2895_vm9 = vcmask 785408   ;;  %vm2960_vm10 = vcmask 916480  }
   0x6   :  { %4513 = vmatprep.subr.msk.bf16.mxu0 %vm4512_vm3, %v4511_v6  ;;  %v41_v16 = vld [vmem:[%s7915_s0 + $0x50] sm:$0xff]  ;;  %v42_v17 = vld [vmem:[%s7915_s0 + $0x58] sm:$0xff]  ;;  %v43_v18 = vld [vmem:[%s7915_s0 + $0x60] sm:$0xff]  ;;  %757 = vst.msk [vmem:[#allocation2 + $0x220] sm:$0xff] %vm752_vm4, %v7923_v48  ;;  %vm4678_vm11 = vmmov 0   ;;  %vm4100_vm12 = vcmask 1041409  }
   0x7   :  { %v44_v19 = vld [vmem:[%s7915_s0 + $0x68] sm:$0xff]  ;;  %v45_v20 = vld [vmem:[%s7915_s0 + $0x70] sm:$0xff]  ;;  %v46_v21 = vld [vmem:[%s7915_s0 + $0x78] sm:$0xff]  ;;  %758 = vst.msk [vmem:[#allocation2 + $0x228] sm:$0xff] %vm752_vm4, %v7923_v48  ;;  %vm4180_vm13 = vcmask 1024  }
   0x8   :  { %v47_v22 = vld [vmem:[%s7915_s0 + $0x80] sm:$0xff]  ;;  %v48_v23 = vld [vmem:[%s7915_s0 + $0x88] sm:$0xff]  ;;  %v49_v24 = vld [vmem:[%s7915_s0 + $0x90] sm:$0xff] }
   0x9   :  { %4516 = vmatpush3.bf16.msk.msra.mxu0 %vm4512_vm3, %v4511_v6  ;;  %v50_v25 = vld [vmem:[%s7915_s0 + $0x98] sm:$0xff]  ;;  %v51_v26 = vld [vmem:[%s7915_s0 + $0xa0] sm:$0xff]  ;;  %v52_v27 = vld [vmem:[%s7915_s0 + $0xa8] sm:$0xff] }
   0xa   :  { %v53_v28 = vld [vmem:[%s7915_s0 + $0xb0] sm:$0xff]  ;;  %v54_v29 = vld [vmem:[%s7915_s0 + $0xb8] sm:$0xff]  ;;  %v55_v30 = vld [vmem:[%s7915_s0 + $0xc0] sm:$0xff] }
   0xb   :  { %v56_v31 = vld [vmem:[%s7915_s0 + $0xc8] sm:$0xff]  ;;  %v57_v32 = vld [vmem:[%s7915_s0 + $0xd0] sm:$0xff]  ;;  %v58_v33 = vld [vmem:[%s7915_s0 + $0xd8] sm:$0xff] }
   0xc   :  { %4401 = vmatmul.mubr.msk.f32.vlgmr.msra.gmra.mrb[0].mxu0 %vm106_vm1, %v32_v7  ;;  %v59_v34 = vld [vmem:[%s7915_s0 + $0xe0] sm:$0xff]  ;;  %v60_v35 = vld [vmem:[%s7915_s0 + $0xe8] sm:$0xff]  ;;  %v61_v36 = vld [vmem:[%s7915_s0 + $0xf0] sm:$0xff] }
   0xd   :  { %4403 = vmatprep.mubr.msk.f32.mxu0 %vm106_vm1, %v33_v8  ;;  %v62_v37 = vld [vmem:[%s7915_s0 + $0xf8] sm:$0xff]  ;;  %v63_v38 = vld [vmem:[%s7915_s0 + $0x100] sm:$0xff]  ;;  %v64_v39 = vld [vmem:[%s7915_s0 + $0x108] sm:$0xff] }
   0xe   :  { %v65_v40 = vld [vmem:[%s7915_s0 + $0x110] sm:$0xff]  ;;  %v66_v41 = vld [vmem:[%s7915_s0 + $0x118] sm:$0xff]  ;;  %v67_v42 = vld [vmem:[%s7915_s0 + $0x120] sm:$0xff] }
   0xf   :  { %v68_v43 = vld [vmem:[%s7915_s0 + $0x128] sm:$0xff]  ;;  %v69_v44 = vld [vmem:[%s7915_s0 + $0x130] sm:$0xff]  ;;  %v70_v45 = vld [vmem:[%s7915_s0 + $0x138] sm:$0xff] }
  0x10   :  { %4404 = vmatmul.mubr.msk.f32.gmra.mrb[2].mxu0 %vm106_vm1, %v34_v9  ;;  %v71_v46 = vld [vmem:[%s7915_s0 + $0x140] sm:$0xff]  ;;  %v72_v47 = vld [vmem:[%s7915_s0 + $0x148] sm:$0xff]  ;;  %v73_v49 = vld [vmem:[%s7915_s0 + $0x150] sm:$0xff] }
  0x11   :  { %4406 = vmatprep.mubr.msk.f32.mxu0 %vm106_vm1, %v35_v10  ;;  %v74_v50 = vld [vmem:[%s7915_s0 + $0x158] sm:$0xff]  ;;  %v75_v51 = vld [vmem:[%s7915_s0 + $0x160] sm:$0xff]  ;;  %v887_v52 = vld [vmem:[#allocation2 + $0x8] sm:$0xff] }
  0x12   :  { %v76_v53 = vld [vmem:[%s7915_s0 + $0x168] sm:$0xff]  ;;  %1091 = vrot.lane.b32.xlu0 %v887_v52, %s4670_s13  ;;  %v77_v54 = vld [vmem:[%s7915_s0 + $0x170] sm:$0xff]  ;;  %v78_v56 = vld [vmem:[%s7915_s0 + $0x178] sm:$0xff] }
  0x13   :  { %v888_v55 = vld [vmem:[#allocation2 + $0x10] sm:$0xff]  ;;  %v79_v57 = vld [vmem:[%s7915_s0 + $0x180] sm:$0xff]  ;;  %v80_v59 = vld [vmem:[%s7915_s0 + $0x188] sm:$0xff] }
  0x14   :  { %4407 = vmatmul.mubr.msk.f32.gmra.mrb[4].mxu0 %vm106_vm1, %v36_v11  ;;  %v951_v58 = vld [vmem:[#allocation2 + $0x9] sm:$0xff]  ;;  %v82_v61 = vld [vmem:[%s7915_s0 + $0x198] sm:$0xff]  ;;  %v83_v62 = vld [vmem:[%s7915_s0 + $0x1a0] sm:$0xff] }
  0x15   :  { %4409 = vmatprep.mubr.msk.f32.mxu0 %vm106_vm1, %v37_v12  ;;  %v81_v60 = vld [vmem:[%s7915_s0 + $0x190] sm:$0xff]  ;;  %v84_v63 = vld [vmem:[%s7915_s0 + $0x1a8] sm:$0xff]  ;;  %v86_v1 = vld [vmem:[%s7915_s0 + $0x1b8] sm:$0xff] }
  0x16   :  { %1093 = vrot.lane.b32.xlu0 %v888_v55, %s4670_s13  ;;  %v85_v0 = vld [vmem:[%s7915_s0 + $0x1b0] sm:$0xff]  ;;  %v87_v2 = vld [vmem:[%s7915_s0 + $0x1c0] sm:$0xff]  ;;  %v88_v3 = vld [vmem:[%s7915_s0 + $0x1c8] sm:$0xff] }
  0x17   :  { %v89_v4 = vld [vmem:[%s7915_s0 + $0x1d0] sm:$0xff]  ;;  %v90_v5 = vld [vmem:[%s7915_s0 + $0x1d8] sm:$0xff]  ;;  %v91_v6 = vld [vmem:[%s7915_s0 + $0x1e0] sm:$0xff] }
  0x18   :  { %4410 = vmatmul.mubr.msk.f32.gmra.mrb[6].mxu0 %vm106_vm1, %v38_v13  ;;  %v92_v7 = vld [vmem:[%s7915_s0 + $0x1e8] sm:$0xff]  ;;  %v93_v8 = vld [vmem:[%s7915_s0 + $0x1f0] sm:$0xff]  ;;  %v94_v9 = vld [vmem:[%s7915_s0 + $0x1f8] sm:$0xff] }
  0x19   :  { %4412 = vmatprep.mubr.msk.f32.mxu0 %vm106_vm1, %v39_v14  ;;  %v5010_v10 = vld [vmem:[%s7916_s3] ss:$0 sm:$0xff] }
  0x1a   :  { %1347 = vrot.lane.b32.xlu0 %v951_v58, %s4671_s21 }
  0x1c   :  { %4413 = vmatmul.mubr.msk.f32.gmra.mrb[8].mxu0 %vm106_vm1, %v40_v15 }
  0x1d   :  { %4415 = vmatprep.mubr.msk.f32.mxu0 %vm106_vm1, %v41_v16 }
  0x20   :  { %4416 = vmatmul.mubr.msk.f32.gmra.mrb[10].mxu0 %vm106_vm1, %v42_v17 }
  0x21   :  { %4418 = vmatprep.mubr.msk.f32.mxu0 %vm106_vm1, %v43_v18 }
  0x24   :  { %4419 = vmatmul.mubr.msk.f32.gmra.mrb[12].mxu0 %vm106_vm1, %v44_v19 }
  0x25   :  { %4421 = vmatprep.mubr.msk.f32.mxu0 %vm106_vm1, %v45_v20 }
  0x28   :  { %4422 = vmatmul.mubr.msk.f32.gmra.mrb[14].mxu0 %vm106_vm1, %v46_v21 }
  0x29   :  { %4424 = vmatprep.mubr.msk.f32.mxu0 %vm106_vm1, %v47_v22 }
  0x2c   :  { %4425 = vmatmul.mubr.msk.f32.gmra.mrb[16].mxu0 %vm106_vm1, %v48_v23 }
  0x2d   :  { %4427 = vmatprep.mubr.msk.f32.mxu0 %vm106_vm1, %v49_v24 }
  0x30   :  { %4428 = vmatmul.mubr.msk.f32.gmra.mrb[18].mxu0 %vm106_vm1, %v50_v25 }
  0x31   :  { %4430 = vmatprep.mubr.msk.f32.mxu0 %vm106_vm1, %v51_v26 }
  0x34   :  { %4431 = vmatmul.mubr.msk.f32.gmra.mrb[20].mxu0 %vm106_vm1, %v52_v27 }
  0x35   :  { %4433 = vmatprep.mubr.msk.f32.mxu0 %vm106_vm1, %v53_v28 }
  0x38   :  { %4434 = vmatmul.mubr.msk.f32.gmra.mrb[22].mxu0 %vm106_vm1, %v54_v29 }
  0x39   :  { %4436 = vmatprep.mubr.msk.f32.mxu0 %vm106_vm1, %v55_v30 }
  0x3c   :  { %4437 = vmatmul.mubr.msk.f32.gmra.mrb[24].mxu0 %vm106_vm1, %v56_v31 }
  0x3d   :  { %4439 = vmatprep.mubr.msk.f32.mxu0 %vm106_vm1, %v57_v32 }
  0x40   :  { %4440 = vmatmul.mubr.msk.f32.gmra.mrb[26].mxu0 %vm106_vm1, %v58_v33 }
  0x41   :  { %4442 = vmatprep.mubr.msk.f32.mxu0 %vm106_vm1, %v59_v34 }
  0x44   :  { %4443 = vmatmul.mubr.msk.f32.gmra.mrb[28].mxu0 %vm106_vm1, %v60_v35 }
  0x45   :  { %4445 = vmatprep.mubr.msk.f32.mxu0 %vm106_vm1, %v61_v36  ;;  %v3026_v36 = vld [vmem:[%s7917_s1 + $0x8] sm:$0xff] }
  0x48   :  { %4446 = vmatmul.mubr.msk.f32.gmra.mrb[30].mxu0 %vm106_vm1, %v62_v37 }
  0x49   :  { %4448 = vmatprep.mubr.msk.f32.mxu0 %vm106_vm1, %v63_v38 }
  0x4c   :  { %4449 = vmatmul.mubr.msk.f32.gmra.mrb[32].mxu0 %vm106_vm1, %v64_v39 }
  0x4d   :  { %4451 = vmatprep.mubr.msk.f32.mxu0 %vm106_vm1, %v65_v40 }
  0x50   :  { %4452 = vmatmul.mubr.msk.f32.gmra.mrb[34].mxu0 %vm106_vm1, %v66_v41 }
  0x51   :  { %4454 = vmatprep.mubr.msk.f32.mxu0 %vm106_vm1, %v67_v42 }
  0x54   :  { %4455 = vmatmul.mubr.msk.f32.gmra.mrb[36].mxu0 %vm106_vm1, %v68_v43 }
  0x55   :  { %4457 = vmatprep.mubr.msk.f32.mxu0 %vm106_vm1, %v69_v44 }
  0x58   :  { %4458 = vmatmul.mubr.msk.f32.gmra.mrb[38].mxu0 %vm106_vm1, %v70_v45 }
  0x59   :  { %4460 = vmatprep.mubr.msk.f32.mxu0 %vm106_vm1, %v71_v46 }
  0x5c   :  { %4461 = vmatmul.mubr.msk.f32.gmra.mrb[40].mxu0 %vm106_vm1, %v72_v47 }
  0x5d   :  { %4463 = vmatprep.mubr.msk.f32.mxu0 %vm106_vm1, %v73_v49 }
  0x60   :  { %4464 = vmatmul.mubr.msk.f32.gmra.mrb[42].mxu0 %vm106_vm1, %v74_v50 }
  0x61   :  { %4466 = vmatprep.mubr.msk.f32.mxu0 %vm106_vm1, %v75_v51 }
  0x64   :  { %4467 = vmatmul.mubr.msk.f32.gmra.mrb[44].mxu0 %vm106_vm1, %v76_v53 }
  0x65   :  { %4469 = vmatprep.mubr.msk.f32.mxu0 %vm106_vm1, %v77_v54 }
  0x68   :  { %4470 = vmatmul.mubr.msk.f32.gmra.mrb[46].mxu0 %vm106_vm1, %v78_v56 }
  0x69   :  { %4472 = vmatprep.mubr.msk.f32.mxu0 %vm106_vm1, %v79_v57 }
  0x6c   :  { %4473 = vmatmul.mubr.msk.f32.gmra.mrb[48].mxu0 %vm106_vm1, %v80_v59 }
  0x6d   :  { %4475 = vmatprep.mubr.msk.f32.mxu0 %vm106_vm1, %v81_v60 }
  0x70   :  { %4476 = vmatmul.mubr.msk.f32.gmra.mrb[50].mxu0 %vm106_vm1, %v82_v61 }
  0x71   :  { %4478 = vmatprep.mubr.msk.f32.mxu0 %vm106_vm1, %v83_v62 }
  0x74   :  { %4479 = vmatmul.mubr.msk.f32.gmra.mrb[52].mxu0 %vm106_vm1, %v84_v63 }
  0x75   :  { %4481 = vmatprep.mubr.msk.f32.mxu0 %vm106_vm1, %v85_v0 }
  0x78   :  { %4482 = vmatmul.mubr.msk.f32.gmra.mrb[54].mxu0 %vm106_vm1, %v86_v1 }
  0x79   :  { %4484 = vmatprep.mubr.msk.f32.mxu0 %vm106_vm1, %v87_v2 }
  0x7c   :  { %4485 = vmatmul.mubr.msk.f32.gmra.mrb[56].mxu0 %vm106_vm1, %v88_v3 }
  0x7d   :  { %4487 = vmatprep.mubr.msk.f32.mxu0 %vm106_vm1, %v89_v4 }
  0x80   :  { %4488 = vmatmul.mubr.msk.f32.gmra.mrb[58].mxu0 %vm106_vm1, %v90_v5 }
  0x81   :  { %4490 = vmatprep.mubr.msk.f32.mxu0 %vm106_vm1, %v91_v6 }
  0x84   :  { %4491 = vmatmul.mubr.msk.f32.gmra.mrb[60].mxu0 %vm106_vm1, %v92_v7 }
  0x85   :  { %4493 = vmatprep.mubr.msk.f32.mxu0 %vm106_vm1, %v93_v8 }
  0x88   :  { %4494 = vmatmul.mubr.msk.f32.gmra.mrb[62].mxu0 %vm106_vm1, %v94_v9 }
  0xdf   :  { %v4402_v11 = vpop.f32.mrb[0].mxu0 }
  0xe0   :  { %v375_v12 = vadd.f32 %v4402_v11, %v5010_v10  ;;  %v369_v13 = vpop.f32.mrb[1].mxu0 }
  0xe1   :  { %v370_v14 = vadd.f32 %v5010_v10, %v369_v13 }
  0xe2   :  { %v689_v15 = vmax.f32 %v375_v12, 0.0 }
  0xe3   :  { %v688_v16 = vmax.f32 %v370_v14, 0.0  ;;  %v4405_v17 = vpop.f32.mrb[2].mxu0 }
  0xe4   :  { %760 = vst.msk [vmem:[#allocation2 + $0x20] sm:$0xff] %vm752_vm4, %v689_v15  ;;  %v385_v18 = vadd.f32 %v4405_v17, %v5010_v10  ;;  %v379_v19 = vpop.f32.mrb[3].mxu0 }
  0xe5   :  { %759 = vst.msk [vmem:[#allocation2 + $0x18] sm:$0xff] %vm752_vm4, %v688_v16  ;;  %v380_v20 = vadd.f32 %v5010_v10, %v379_v19 }
  0xe6   :  { %v691_v21 = vmax.f32 %v385_v18, 0.0 }
  0xe7   :  { %v690_v22 = vmax.f32 %v380_v20, 0.0  ;;  %v4408_v23 = vpop.f32.mrb[4].mxu0 }
  0xe8   :  { %762 = vst.msk [vmem:[#allocation2 + $0x30] sm:$0xff] %vm752_vm4, %v691_v21  ;;  %v395_v24 = vadd.f32 %v4408_v23, %v5010_v10  ;;  %v389_v25 = vpop.f32.mrb[5].mxu0 }
  0xe9   :  { %761 = vst.msk [vmem:[#allocation2 + $0x28] sm:$0xff] %vm752_vm4, %v690_v22  ;;  %v390_v26 = vadd.f32 %v5010_v10, %v389_v25 }
  0xea   :  { %v693_v27 = vmax.f32 %v395_v24, 0.0 }
  0xeb   :  { %v692_v28 = vmax.f32 %v390_v26, 0.0  ;;  %v890_v29 = vld [vmem:[#allocation2 + $0x20] sm:$0xff]  ;;  %v4411_v30 = vpop.f32.mrb[6].mxu0 }
  0xec   :  { %764 = vst.msk [vmem:[#allocation2 + $0x40] sm:$0xff] %vm752_vm4, %v693_v27  ;;  %1097 = vrot.lane.b32.xlu1 %v890_v29, %s4670_s13  ;;  %v953_v31 = vld [vmem:[#allocation2 + $0x19] sm:$0xff]  ;;  %v405_v32 = vadd.f32 %v4411_v30, %v5010_v10  ;;  %v399_v33 = vpop.f32.mrb[7].mxu0  ;;  %v952_v47 = vld [vmem:[#allocation2 + $0x11] sm:$0xff] }
  0xed   :  { %763 = vst.msk [vmem:[#allocation2 + $0x38] sm:$0xff] %vm752_vm4, %v692_v28  ;;  %1351 = vrot.lane.b32.xlu0 %v953_v31, %s4671_s21  ;;  %v400_v34 = vadd.f32 %v5010_v10, %v399_v33  ;;  %v889_v37 = vld [vmem:[#allocation2 + $0x18] sm:$0xff] }
  0xee   :  { %v695_v35 = vmax.f32 %v405_v32, 0.0 }
  0xef   :  { %v694_v38 = vmax.f32 %v400_v34, 0.0  ;;  %v4414_v39 = vpop.f32.mrb[8].mxu0  ;;  %v892_v53 = vld [vmem:[#allocation2 + $0x30] sm:$0xff] }
  0xf0   :  { %1095 = vrot.lane.b32.xlu1 %v889_v37, %s4670_s13  ;;  %v891_v40 = vld [vmem:[#allocation2 + $0x28] sm:$0xff]  ;;  %766 = vst.msk [vmem:[#allocation2 + $0x50] sm:$0xff] %vm752_vm4, %v695_v35  ;;  %v415_v42 = vadd.f32 %v4414_v39, %v5010_v10  ;;  %v409_v43 = vpop.f32.mrb[9].mxu0 }
  0xf1   :  { %v955_v41 = vld [vmem:[#allocation2 + $0x29] sm:$0xff]  ;;  %1099 = vrot.lane.b32.xlu0 %v891_v40, %s4670_s13  ;;  %765 = vst.msk [vmem:[#allocation2 + $0x48] sm:$0xff] %vm752_vm4, %v694_v38  ;;  %v410_v45 = vadd.f32 %v5010_v10, %v409_v43  ;;  %v954_v0 = vld [vmem:[#allocation2 + $0x21] sm:$0xff] }
  0xf2   :  { %v3154_v44 = vmul.f32 %v3026_v36, %v955_v41  ;;  %v697_v46 = vmax.f32 %v415_v42, 0.0 }
  0xf3   :  { %v696_v49 = vmax.f32 %v410_v45, 0.0  ;;  %v4417_v50 = vpop.f32.mrb[10].mxu0  ;;  %v894_v5 = vld [vmem:[#allocation2 + $0x40] sm:$0xff] }
  0xf4   :  { %4253 = vmatprep.mubr.msk.f32.mxu0 %vm752_vm4, %v3154_v44  ;;  %1349 = vrot.lane.b32.xlu1 %v952_v47, %s4671_s21  ;;  %768 = vst.msk [vmem:[#allocation2 + $0x60] sm:$0xff] %vm752_vm4, %v697_v46  ;;  %v425_v51 = vadd.f32 %v4417_v50, %v5010_v10  ;;  %v419_v52 = vpop.f32.mrb[11].mxu0  ;;  %v893_v55 = vld [vmem:[#allocation2 + $0x38] sm:$0xff] }
  0xf5   :  { %1355 = vrot.lane.b32.xlu0 %v955_v41, %s4671_s21  ;;  %767 = vst.msk [vmem:[#allocation2 + $0x58] sm:$0xff] %vm752_vm4, %v696_v49  ;;  %v420_v54 = vadd.f32 %v5010_v10, %v419_v52  ;;  %v957_v62 = vld [vmem:[#allocation2 + $0x39] sm:$0xff]  ;;  %v956_v17 = vld [vmem:[#allocation2 + $0x31] sm:$0xff] }
  0xf6   :  { %v699_v56 = vmax.f32 %v425_v51, 0.0 }
  0xf7   :  { %v698_v57 = vmax.f32 %v420_v54, 0.0  ;;  %v4420_v58 = vpop.f32.mrb[12].mxu0  ;;  %v896_v22 = vld [vmem:[#allocation2 + $0x50] sm:$0xff] }
  0xf8   :  { %1101 = vrot.lane.b32.xlu1 %v892_v53, %s4670_s13  ;;  %770 = vst.msk [vmem:[#allocation2 + $0x70] sm:$0xff] %vm752_vm4, %v699_v56  ;;  %v435_v59 = vadd.f32 %v4420_v58, %v5010_v10  ;;  %v429_v60 = vpop.f32.mrb[13].mxu0  ;;  %v895_v7 = vld [vmem:[#allocation2 + $0x48] sm:$0xff]  ;;  %v3064_v58 = vld [vmem:[%s7917_s1 + $0x138] sm:$0xff] }
  0xf9   :  { %1103 = vrot.lane.b32.xlu0 %v893_v55, %s4670_s13  ;;  %769 = vst.msk [vmem:[#allocation2 + $0x68] sm:$0xff] %vm752_vm4, %v698_v57  ;;  %v430_v61 = vadd.f32 %v5010_v10, %v429_v60  ;;  %v959_v15 = vld [vmem:[#allocation2 + $0x49] sm:$0xff]  ;;  %v958_v33 = vld [vmem:[#allocation2 + $0x41] sm:$0xff] }
  0xfa   :  { %v701_v63 = vmax.f32 %v435_v59, 0.0 }
  0xfb   :  { %v700_v1 = vmax.f32 %v430_v61, 0.0  ;;  %v4423_v2 = vpop.f32.mrb[14].mxu0  ;;  %v898_v38 = vld [vmem:[#allocation2 + $0x60] sm:$0xff] }
  0xfc   :  { %1353 = vrot.lane.b32.xlu1 %v954_v0, %s4671_s21  ;;  %772 = vst.msk [vmem:[#allocation2 + $0x80] sm:$0xff] %vm752_vm4, %v701_v63  ;;  %v445_v3 = vadd.f32 %v4423_v2, %v5010_v10  ;;  %v439_v4 = vpop.f32.mrb[15].mxu0  ;;  %v897_v24 = vld [vmem:[#allocation2 + $0x58] sm:$0xff] }
  0xfd   :  { %1359 = vrot.lane.b32.xlu0 %v957_v62, %s4671_s21  ;;  %771 = vst.msk [vmem:[#allocation2 + $0x78] sm:$0xff] %vm752_vm4, %v700_v1  ;;  %v440_v6 = vadd.f32 %v5010_v10, %v439_v4  ;;  %v961_v31 = vld [vmem:[#allocation2 + $0x59] sm:$0xff]  ;;  %v960_v50 = vld [vmem:[#allocation2 + $0x51] sm:$0xff] }
  0xfe   :  { %v703_v8 = vmax.f32 %v445_v3, 0.0 }
  0xff   :  { %v702_v9 = vmax.f32 %v440_v6, 0.0  ;;  %v4426_v11 = vpop.f32.mrb[16].mxu0  ;;  %v900_v55 = vld [vmem:[#allocation2 + $0x70] sm:$0xff] }
 0x100   :  { %1105 = vrot.lane.b32.xlu1 %v894_v5, %s4670_s13  ;;  %774 = vst.msk [vmem:[#allocation2 + $0x90] sm:$0xff] %vm752_vm4, %v703_v8  ;;  %v455_v12 = vadd.f32 %v4426_v11, %v5010_v10  ;;  %v449_v13 = vpop.f32.mrb[17].mxu0  ;;  %v899_v40 = vld [vmem:[#allocation2 + $0x68] sm:$0xff] }
 0x101   :  { %1107 = vrot.lane.b32.xlu0 %v895_v7, %s4670_s13  ;;  %773 = vst.msk [vmem:[#allocation2 + $0x88] sm:$0xff] %vm752_vm4, %v702_v9  ;;  %v450_v14 = vadd.f32 %v5010_v10, %v449_v13  ;;  %v963_v47 = vld [vmem:[#allocation2 + $0x69] sm:$0xff]  ;;  %v962_v5 = vld [vmem:[#allocation2 + $0x61] sm:$0xff] }
 0x102   :  { %v705_v16 = vmax.f32 %v455_v12, 0.0 }
 0x103   :  { %v704_v18 = vmax.f32 %v450_v14, 0.0  ;;  %v4429_v19 = vpop.f32.mrb[18].mxu0  ;;  %v902_v8 = vld [vmem:[#allocation2 + $0x80] sm:$0xff] }
 0x104   :  { %1357 = vrot.lane.b32.xlu1 %v956_v17, %s4671_s21  ;;  %776 = vst.msk [vmem:[#allocation2 + $0xa0] sm:$0xff] %vm752_vm4, %v705_v16  ;;  %v465_v20 = vadd.f32 %v4429_v19, %v5010_v10  ;;  %v459_v21 = vpop.f32.mrb[19].mxu0  ;;  %v901_v57 = vld [vmem:[#allocation2 + $0x78] sm:$0xff] }
 0x105   :  { %1363 = vrot.lane.b32.xlu0 %v959_v15, %s4671_s21  ;;  %775 = vst.msk [vmem:[#allocation2 + $0x98] sm:$0xff] %vm752_vm4, %v704_v18  ;;  %v460_v23 = vadd.f32 %v5010_v10, %v459_v21  ;;  %v965_v3 = vld [vmem:[#allocation2 + $0x79] sm:$0xff]  ;;  %v964_v17 = vld [vmem:[#allocation2 + $0x71] sm:$0xff]  ;;  %v3282_v21 = vld [vmem:[%s7918_s4 + $0x8] sm:$0xff] }
 0x106   :  { %v707_v25 = vmax.f32 %v465_v20, 0.0  ;;  %v3281_v20 = vld [vmem:[%s7918_s4] sm:$0xff] }
 0x107   :  { %v706_v26 = vmax.f32 %v460_v23, 0.0  ;;  %v4432_v27 = vpop.f32.mrb[20].mxu0  ;;  %v904_v18 = vld [vmem:[#allocation2 + $0x90] sm:$0xff]  ;;  %v7924_v23 = vmov 0.0|0.0  }
 0x108   :  { %1109 = vrot.lane.b32.xlu1 %v896_v22, %s4670_s13  ;;  %778 = vst.msk [vmem:[#allocation2 + $0xb0] sm:$0xff] %vm752_vm4, %v707_v25  ;;  %v475_v28 = vadd.f32 %v4432_v27, %v5010_v10  ;;  %v469_v29 = vpop.f32.mrb[21].mxu0  ;;  %v903_v12 = vld [vmem:[#allocation2 + $0x88] sm:$0xff]  ;;  %v4518_v22 = vpack.c.bf16 %v3282_v21, %v3281_v20  ;;  %4550 = vmatprep.subr.bf16.mxu1 %v7924_v23  ;;  %v3283_v25 = vld [vmem:[%s7918_s4 + $0x10] sm:$0xff] }
 0x109   :  { %1111 = vrot.lane.b32.xlu0 %v897_v24, %s4670_s13  ;;  %777 = vst.msk [vmem:[#allocation2 + $0xa8] sm:$0xff] %vm752_vm4, %v706_v26  ;;  %v470_v30 = vadd.f32 %v5010_v10, %v469_v29  ;;  %v967_v16 = vld [vmem:[#allocation2 + $0x89] sm:$0xff]  ;;  %v3284_v26 = vld [vmem:[%s7918_s4 + $0x18] sm:$0xff]  ;;  %4517 = vmatprep.subr.bf16.mxu0 %v7924_v23  ;;  %v966_v27 = vld [vmem:[#allocation2 + $0x81] sm:$0xff] }
 0x10a   :  { %v709_v32 = vmax.f32 %v475_v28, 0.0  ;;  %4559 = vmatpush1.bf16.msra.mxu1 %v4518_v22  ;;  %v4521_v28 = vpack.c.bf16 %v3284_v26, %v3283_v25  ;;  %4519 = vmatpush1.bf16.msra.mxu0 %v4518_v22 }
 0x10b   :  { %v708_v34 = vmax.f32 %v470_v30, 0.0  ;;  %v4435_v35 = vpop.f32.mrb[22].mxu0  ;;  %4551 = vmatprep.subr.bf16.mxu1 %v7924_v23  ;;  %4520 = vmatprep.subr.bf16.mxu0 %v7924_v23  ;;  %v906_v29 = vld [vmem:[#allocation2 + $0xa0] sm:$0xff] }
 0x10c   :  { %1361 = vrot.lane.b32.xlu1 %v958_v33, %s4671_s21  ;;  %780 = vst.msk [vmem:[#allocation2 + $0xc0] sm:$0xff] %vm752_vm4, %v709_v32  ;;  %v485_v36 = vadd.f32 %v4435_v35, %v5010_v10  ;;  %v479_v37 = vpop.f32.mrb[23].mxu0  ;;  %v905_v19 = vld [vmem:[#allocation2 + $0x98] sm:$0xff]  ;;  %v3286_v32 = vld [vmem:[%s7918_s4 + $0x28] sm:$0xff]  ;;  %v3287_v35 = vld [vmem:[%s7918_s4 + $0x30] sm:$0xff] }
 0x10d   :  { %1367 = vrot.lane.b32.xlu0 %v961_v31, %s4671_s21  ;;  %779 = vst.msk [vmem:[#allocation2 + $0xb8] sm:$0xff] %vm752_vm4, %v708_v34  ;;  %v480_v39 = vadd.f32 %v5010_v10, %v479_v37  ;;  %v969_v24 = vld [vmem:[#allocation2 + $0x99] sm:$0xff]  ;;  %v968_v37 = vld [vmem:[#allocation2 + $0x91] sm:$0xff] }
 0x10e   :  { %v711_v41 = vmax.f32 %v485_v36, 0.0  ;;  %4560 = vmatpush1.bf16.msra.mxu1 %v4521_v28  ;;  %v3285_v31 = vld [vmem:[%s7918_s4 + $0x20] sm:$0xff]  ;;  %4522 = vmatpush1.bf16.msra.mxu0 %v4521_v28  ;;  %v3288_v36 = vld [vmem:[%s7918_s4 + $0x38] sm:$0xff] }
 0x10f   :  { %v710_v42 = vmax.f32 %v480_v39, 0.0  ;;  %v4438_v43 = vpop.f32.mrb[24].mxu0  ;;  %4552 = vmatprep.subr.bf16.mxu1 %v7924_v23  ;;  %v4524_v33 = vpack.c.bf16 %v3286_v32, %v3285_v31  ;;  %4523 = vmatprep.subr.bf16.mxu0 %v7924_v23  ;;  %v908_v39 = vld [vmem:[#allocation2 + $0xb0] sm:$0xff] }
 0x110   :  { %1113 = vrot.lane.b32.xlu1 %v898_v38, %s4670_s13  ;;  %782 = vst.msk [vmem:[#allocation2 + $0xd0] sm:$0xff] %vm752_vm4, %v711_v41  ;;  %v495_v44 = vadd.f32 %v4438_v43, %v5010_v10  ;;  %v489_v45 = vpop.f32.mrb[25].mxu0  ;;  %v907_v30 = vld [vmem:[#allocation2 + $0xa8] sm:$0xff]  ;;  %v4527_v38 = vpack.c.bf16 %v3288_v36, %v3287_v35  ;;  %v3289_v41 = vld [vmem:[%s7918_s4 + $0x40] sm:$0xff] }
 0x111   :  { %1115 = vrot.lane.b32.xlu0 %v899_v40, %s4670_s13  ;;  %781 = vst.msk [vmem:[#allocation2 + $0xc8] sm:$0xff] %vm752_vm4, %v710_v42  ;;  %v490_v46 = vadd.f32 %v5010_v10, %v489_v45  ;;  %v971_v34 = vld [vmem:[#allocation2 + $0xa9] sm:$0xff] }
 0x112   :  { %v713_v49 = vmax.f32 %v495_v44, 0.0  ;;  %4561 = vmatpush1.bf16.msra.mxu1 %v4524_v33  ;;  %4525 = vmatpush1.bf16.msra.mxu0 %v4524_v33  ;;  %v5157_v40 = vld [vmem:[#allocation2 + $0xaf] sm:$0xff] }
 0x113   :  { %v712_v51 = vmax.f32 %v490_v46, 0.0  ;;  %v4441_v52 = vpop.f32.mrb[26].mxu0  ;;  %4553 = vmatprep.subr.bf16.mxu1 %v7924_v23  ;;  %4526 = vmatprep.subr.bf16.mxu0 %v7924_v23  ;;  %v3290_v42 = vld [vmem:[%s7918_s4 + $0x48] sm:$0xff] }
 0x114   :  { %1365 = vrot.lane.b32.xlu1 %v960_v50, %s4671_s21  ;;  %784 = vst.msk [vmem:[#allocation2 + $0xe0] sm:$0xff] %vm752_vm4, %v713_v49  ;;  %v505_v53 = vadd.f32 %v4441_v52, %v5010_v10  ;;  %v499_v54 = vpop.f32.mrb[27].mxu0  ;;  %v4530_v43 = vpack.c.bf16 %v3290_v42, %v3289_v41  ;;  %v3291_v50 = vld [vmem:[%s7918_s4 + $0x50] sm:$0xff] }
 0x115   :  { %1371 = vrot.lane.b32.xlu0 %v963_v47, %s4671_s21  ;;  %783 = vst.msk [vmem:[#allocation2 + $0xd8] sm:$0xff] %vm752_vm4, %v712_v51  ;;  %v500_v56 = vadd.f32 %v5010_v10, %v499_v54  ;;  %v909_v47 = vld [vmem:[#allocation2 + $0xb8] sm:$0xff] }
 0x116   :  { %v715_v59 = vmax.f32 %v505_v53, 0.0  ;;  %4562 = vmatpush1.bf16.msra.mxu1 %v4527_v38  ;;  %4528 = vmatpush1.bf16.msra.mxu0 %v4527_v38  ;;  %v3292_v51 = vld [vmem:[%s7918_s4 + $0x58] sm:$0xff] }
 0x117   :  { %v714_v60 = vmax.f32 %v500_v56, 0.0  ;;  %v4444_v61 = vpop.f32.mrb[28].mxu0  ;;  %4554 = vmatprep.subr.bf16.mxu1 %v7924_v23  ;;  %4529 = vmatprep.subr.bf16.mxu0 %v7924_v23  ;;  %v4533_v53 = vpack.c.bf16 %v3292_v51, %v3291_v50  ;;  %v3293_v56 = vld [vmem:[%s7918_s4 + $0x60] sm:$0xff]  ;;  %v912_v22 = vld [vmem:[#allocation2 + $0xd0] sm:$0xff] }
 0x118   :  { %1117 = vrot.lane.b32.xlu1 %v900_v55, %s4670_s13  ;;  %v5096_v62 = vld [vmem:[#allocation2 + $0xc1] sm:$0xff]  ;;  %786 = vst.msk [vmem:[#allocation2 + $0xf0] sm:$0xff] %vm752_vm4, %v715_v59  ;;  %v515_v63 = vadd.f32 %v4444_v61, %v5010_v10  ;;  %v509_v0 = vpop.f32.mrb[29].mxu0  ;;  %v973_v55 = vld [vmem:[#allocation2 + $0xb9] sm:$0xff]  ;;  %v3295_v61 = vld [vmem:[%s7918_s4 + $0x70] sm:$0xff] }
 0x119   :  { %1119 = vrot.lane.b32.xlu0 %v901_v57, %s4670_s13  ;;  %v3192_v1 = vmul.f32 %v3064_v58, %v5096_v62  ;;  %785 = vst.msk [vmem:[#allocation2 + $0xe8] sm:$0xff] %vm752_vm4, %v714_v60  ;;  %v510_v2 = vadd.f32 %v5010_v10, %v509_v0  ;;  %v3294_v57 = vld [vmem:[%s7918_s4 + $0x68] sm:$0xff]  ;;  %v910_v60 = vld [vmem:[#allocation2 + $0xc0] sm:$0xff] }
 0x11a   :  { %v717_v4 = vmax.f32 %v515_v63, 0.0  ;;  %4563 = vmatpush1.bf16.msra.mxu1 %v4530_v43  ;;  %4531 = vmatpush1.bf16.msra.mxu0 %v4530_v43  ;;  %v970_v58 = vld [vmem:[#allocation2 + $0xa1] sm:$0xff]  ;;  %v4536_v59 = vpack.c.bf16 %v3294_v57, %v3293_v56  ;;  %v3296_v63 = vld [vmem:[%s7918_s4 + $0x78] sm:$0xff]  ;;  %v5279_v33 = vld [vmem:[#allocation2 + $0xcf] sm:$0xff] }
 0x11b   :  { %4272 = vmatprep.mubr.msk.f32.mxu1 %vm752_vm4, %v3192_v1  ;;  %v716_v6 = vmax.f32 %v510_v2, 0.0  ;;  %v4447_v7 = vpop.f32.mrb[30].mxu0  ;;  %4555 = vmatprep.subr.bf16.mxu1 %v7924_v23  ;;  %v4539_v0 = vpack.c.bf16 %v3296_v63, %v3295_v61  ;;  %v972_v1 = vld [vmem:[#allocation2 + $0xb1] sm:$0xff]  ;;  %v3297_v2 = vld [vmem:[%s7918_s4 + $0x80] sm:$0xff] }
 0x11c   :  { %1369 = vrot.lane.b32.xlu1 %v962_v5, %s4671_s21  ;;  %788 = vst.msk [vmem:[#allocation2 + $0x100] sm:$0xff] %vm752_vm4, %v717_v4  ;;  %v525_v9 = vadd.f32 %v4447_v7, %v5010_v10  ;;  %v519_v11 = vpop.f32.mrb[31].mxu0  ;;  %4532 = vmatprep.subr.bf16.mxu0 %v7924_v23  ;;  %v5212_v5 = vld [vmem:[#allocation2 + $0xb7] sm:$0xff]  ;;  %v911_v7 = vld [vmem:[#allocation2 + $0xc8] sm:$0xff] }
 0x11d   :  { %1375 = vrot.lane.b32.xlu0 %v965_v3, %s4671_s21  ;;  %787 = vst.msk [vmem:[#allocation2 + $0xf8] sm:$0xff] %vm752_vm4, %v716_v6  ;;  %v520_v13 = vadd.f32 %v5010_v10, %v519_v11  ;;  %v3298_v3 = vld [vmem:[%s7918_s4 + $0x88] sm:$0xff]  ;;  %v5220_v6 = vpop.permute.xlu0 %1091  ;;  %s4677_s4 = smov 96  }
 0x11e   :  { %v719_v14 = vmax.f32 %v525_v9, 0.0  ;;  %4564 = vmatpush1.bf16.msra.mxu1 %v4533_v53  ;;  %4534 = vmatpush1.bf16.msra.mxu0 %v4533_v53  ;;  %v4542_v4 = vpack.c.bf16 %v3298_v3, %v3297_v2  ;;  %v5226_v9 = vld [vmem:[#allocation2 + $0xbf] sm:$0xff] }
 0x11f   :  { %v718_v15 = vmax.f32 %v520_v13, 0.0  ;;  %v4450_v44 = vpop.f32.mrb[32].mxu0  ;;  %4556 = vmatprep.subr.bf16.mxu1 %v7924_v23  ;;  %4535 = vmatprep.subr.bf16.mxu0 %v7924_v23  ;;  %v5323_v53 = vld [vmem:[#allocation2 + $0xf0] sm:$0xff] }
 0x120   :  { %1121 = vrot.lane.b32.xlu1 %v902_v8, %s4670_s13  ;;  %790 = vst.msk [vmem:[#allocation2 + $0x110] sm:$0xff] %vm752_vm4, %v719_v14  ;;  %v535_v45 = vadd.f32 %v4450_v44, %v5010_v10  ;;  %v529_v46 = vpop.f32.mrb[33].mxu0  ;;  %v5224_v8 = vld [vmem:[#allocation2 + $0xc9] sm:$0xff] }
 0x121   :  { %1123 = vrot.lane.b32.xlu0 %v903_v12, %s4670_s13  ;;  %789 = vst.msk [vmem:[#allocation2 + $0x108] sm:$0xff] %vm752_vm4, %v718_v15  ;;  %v530_v49 = vadd.f32 %v5010_v10, %v529_v46  ;;  %v5228_v11 = vpop.permute.xlu0 %1093  ;;  %v5332_v56 = vld [vmem:[#allocation2 + $0xe8] sm:$0xff] }
 0x122   :  { %v721_v52 = vmax.f32 %v535_v45, 0.0  ;;  %4565 = vmatpush1.bf16.msra.mxu1 %v4536_v59  ;;  %4537 = vmatpush1.bf16.msra.mxu0 %v4536_v59  ;;  %v5304_v45 = vld [vmem:[#allocation2 + $0xd1] sm:$0xff]  ;;  %v5348_v63 = vld [vmem:[#allocation2 + $0xe7] sm:$0xff] }
 0x123   :  { %v720_v54 = vmax.f32 %v530_v49, 0.0  ;;  %4557 = vmatprep.subr.bf16.mxu1 %v7924_v23  ;;  %4538 = vmatprep.subr.bf16.mxu0 %v7924_v23  ;;  %v4453_v12 = vpop.f32.mrb[34].mxu0  ;;  %v914_v49 = vld [vmem:[#allocation2 + $0xe0] sm:$0xff] }
 0x124   :  { %1373 = vrot.lane.b32.xlu1 %v964_v17, %s4671_s21  ;;  %792 = vst.msk [vmem:[#allocation2 + $0x120] sm:$0xff] %vm752_vm4, %v721_v52  ;;  %v545_v13 = vadd.f32 %v4453_v12, %v5010_v10  ;;  %v539_v14 = vpop.f32.mrb[35].mxu0  ;;  %v5237_v17 = vld [vmem:[#allocation2 + $0xc7] sm:$0xff]  ;;  %v5358_v12 = vld [vmem:[#allocation2 + $0xd9] sm:$0xff] }
 0x125   :  { %1379 = vrot.lane.b32.xlu0 %v967_v16, %s4671_s21  ;;  %791 = vst.msk [vmem:[#allocation2 + $0x118] sm:$0xff] %vm752_vm4, %v720_v54  ;;  %v540_v15 = vadd.f32 %v5010_v10, %v539_v14 }
 0x126   :  { %4566 = vmatpush1.bf16.msra.mxu1 %v4539_v0  ;;  %4540 = vmatpush1.bf16.msra.mxu0 %v4539_v0  ;;  %v723_v16 = vmax.f32 %v545_v13, 0.0 }
 0x127   :  { %4558 = vmatprep.subr.bf16.mxu1 %v7924_v23  ;;  %4541 = vmatprep.subr.bf16.mxu0 %v7924_v23  ;;  %v4456_v35 = vpop.f32.mrb[36].mxu0 }
 0x128   :  { %1125 = vrot.lane.b32.xlu1 %v904_v18, %s4670_s13  ;;  %v722_v18 = vmax.f32 %v540_v15, 0.0  ;;  %794 = vst.msk [vmem:[#allocation2 + $0x130] sm:$0xff] %vm752_vm4, %v723_v16  ;;  %v555_v36 = vadd.f32 %v4456_v35, %v5010_v10 }
 0x129   :  { %1127 = vrot.lane.b32.xlu0 %v905_v19, %s4670_s13  ;;  %v5241_v19 = vpop.permute.xlu0 %1347 }
 0x12a   :  { %4567 = vmatpush1.bf16.msra.mxu1 %v4542_v4  ;;  %4543 = vmatpush1.bf16.msra.mxu0 %v4542_v4  ;;  %793 = vst.msk [vmem:[#allocation2 + $0x128] sm:$0xff] %vm752_vm4, %v722_v18  ;;  %v725_v41 = vmax.f32 %v555_v36, 0.0 }
 0x12b   :  { %4544 = vmatprep.subr.bf16.mxu0 %v7924_v23 }
 0x12c   :  { %1377 = vrot.lane.b32.xlu1 %v966_v27, %s4671_s21  ;;  %796 = vst.msk [vmem:[#allocation2 + $0x140] sm:$0xff] %vm752_vm4, %v725_v41 }
 0x12d   :  { %1383 = vrot.lane.b32.xlu0 %v969_v24, %s4671_s21 }
 0x130   :  { %1129 = vrot.lane.b32.xlu1 %v906_v29, %s4670_s13  ;;  %v913_v29 = vld [vmem:[#allocation2 + $0xd8] sm:$0xff] }
 0x131   :  { %1131 = vrot.lane.b32.xlu0 %v907_v30, %s4670_s13 }
 0x134   :  { %1381 = vrot.lane.b32.xlu1 %v968_v37, %s4671_s21 }
 0x135   :  { %1387 = vrot.lane.b32.xlu0 %v971_v34, %s4671_s21  ;;  %v5283_v34 = vld [vmem:[#allocation2 + $0xd7] sm:$0xff] }
 0x138   :  { %1133 = vrot.lane.b32.xlu1 %v908_v39, %s4670_s13 }
 0x139   :  { %1641 = vrot.lane.b32.xlu0 %v5157_v40, %s4673_s10 }
 0x13c   :  { %1835 = vrot.lane.b32.xlu1 %v908_v39, %s4674_s16 }
 0x13d   :  { %1135 = vrot.lane.b32.xlu0 %v909_v47, %s4670_s13 }
 0x140   :  { %1385 = vrot.lane.b32.xlu1 %v970_v58, %s4671_s21 }
 0x141   :  { %1391 = vrot.lane.b32.xlu0 %v973_v55, %s4671_s21 }
 0x144   :  { %1137 = vrot.lane.b32.xlu1 %v910_v60, %s4670_s13 }
 0x145   :  { %2029 = vrot.lane.b32.xlu0 %v972_v1, %s4675_s25 }
 0x148   :  { %2417 = vrot.lane.b32.xlu1 %v910_v60, %s4676_s30 }
 0x149   :  { %1643 = vrot.lane.b32.xlu0 %v5212_v5, %s4673_s10 }
 0x14c   :  { %1839 = vrot.lane.b32.xlu1 %v910_v60, %s4674_s16  ;;  %v5344_v60 = vld [vmem:[#allocation2 + $0xdf] sm:$0xff] }
 0x14d   :  { %1837 = vrot.lane.b32.xlu0 %v909_v47, %s4674_s16 }
 0x150   :  { %1389 = vrot.lane.b32.xlu1 %v972_v1, %s4671_s21 }
 0x151   :  { %1139 = vrot.lane.b32.xlu0 %v911_v7, %s4670_s13 }
 0x154   :  { %2223 = vrot.lane.b32.xlu1 %v5226_v9, %s4677_s4 }
 0x155   :  { %1395 = vrot.lane.b32.xlu0 %v5224_v8, %s4671_s21 }
 0x158   :  { %2031 = vrot.lane.b32.xlu1 %v973_v55, %s4675_s25 }
 0x159   :  { %2225 = vrot.lane.b32.xlu0 %v5237_v17, %s4677_s4 }
 0x15c   :  { %1645 = vrot.lane.b32.xlu1 %v5226_v9, %s4673_s10 }
 0x15d   :  { %2419 = vrot.lane.b32.xlu0 %v911_v7, %s4676_s30 }
 0x15e   :  { %v5248_v20 = vpop.permute.xlu1 %1097 }
 0x15f   :  { %v5250_v21 = vpop.permute.xlu0 %1351 }
 0x160   :  { %1141 = vrot.lane.b32.xlu1 %v912_v22, %s4670_s13 }
 0x161   :  { %2033 = vrot.lane.b32.xlu0 %v5096_v62, %s4675_s25 }
 0x162   :  { %v5255_v24 = vpop.permute.xlu1 %1095 }
 0x163   :  { %v5257_v25 = vpop.permute.xlu0 %1099 }
 0x164   :  { %2421 = vrot.lane.b32.xlu1 %v912_v22, %s4676_s30 }
 0x165   :  { %1647 = vrot.lane.b32.xlu0 %v5237_v17, %s4673_s10 }
 0x166   :  { %v5262_v26 = vpop.permute.xlu1 %1349 }
 0x167   :  { %v5264_v27 = vpop.permute.xlu0 %1355 }
 0x168   :  { %1843 = vrot.lane.b32.xlu1 %v912_v22, %s4674_s16 }
 0x169   :  { %1841 = vrot.lane.b32.xlu0 %v911_v7, %s4674_s16 }
 0x16a   :  { %v5268_v28 = vpop.permute.xlu1 %1101 }
 0x16b   :  { %v5270_v30 = vpop.permute.xlu0 %1103 }
 0x16c   :  { %7926 = vst [vmem:[#allocation4_spill] sm:$0xff] %v5270_v30  ;;  %1393 = vrot.lane.b32.xlu1 %v5096_v62, %s4671_s21  ;;  %v549_v62 = vpop.f32.mrb[37].mxu0 }
 0x16d   :  { %1143 = vrot.lane.b32.xlu0 %v913_v29, %s4670_s13  ;;  %v550_v38 = vadd.f32 %v5010_v10, %v549_v62  ;;  %v4459_v61 = vpop.f32.mrb[38].mxu0 }
 0x16e   :  { %v5275_v31 = vpop.permute.xlu1 %1353  ;;  %v565_v0 = vadd.f32 %v4459_v61, %v5010_v10  ;;  %v559_v1 = vpop.f32.mrb[39].mxu0 }
 0x16f   :  { %v5277_v32 = vpop.permute.xlu0 %1359  ;;  %v724_v42 = vmax.f32 %v550_v38, 0.0  ;;  %v560_v4 = vadd.f32 %v5010_v10, %v559_v1  ;;  %v4462_v13 = vpop.f32.mrb[40].mxu0 }
 0x170   :  { %7927 = vst [vmem:[#allocation5_spill] sm:$0xff] %v5277_v32  ;;  %2227 = vrot.lane.b32.xlu1 %v5279_v33, %s4677_s4  ;;  %v727_v3 = vmax.f32 %v565_v0, 0.0  ;;  %v575_v15 = vadd.f32 %v4462_v13, %v5010_v10  ;;  %v569_v16 = vpop.f32.mrb[41].mxu0  ;;  %v5389_v13 = vld [vmem:[#allocation2 + $0xef] sm:$0xff] }
 0x171   :  { %2229 = vrot.lane.b32.xlu0 %v5283_v34, %s4677_s4  ;;  %795 = vst.msk [vmem:[#allocation2 + $0x138] sm:$0xff] %vm752_vm4, %v724_v42  ;;  %v726_v14 = vmax.f32 %v560_v4, 0.0  ;;  %v570_v18 = vadd.f32 %v5010_v10, %v569_v16  ;;  %v4465_v35 = vpop.f32.mrb[42].mxu0  ;;  %v5375_v42 = vld [vmem:[#allocation2 + $0xe1] sm:$0xff] }
 0x172   :  { %v5288_v37 = vpop.permute.xlu1 %1105  ;;  %798 = vst.msk [vmem:[#allocation2 + $0x150] sm:$0xff] %vm752_vm4, %v727_v3  ;;  %v585_v38 = vadd.f32 %v4465_v35, %v5010_v10  ;;  %v579_v41 = vpop.f32.mrb[43].mxu0 }
 0x173   :  { %7928 = vst [vmem:[#allocation6_spill] sm:$0xff] %v5288_v37  ;;  %v5291_v39 = vpop.permute.xlu0 %1107  ;;  %797 = vst.msk [vmem:[#allocation2 + $0x148] sm:$0xff] %vm752_vm4, %v726_v14  ;;  %v728_v62 = vmax.f32 %v570_v18, 0.0  ;;  %v4468_v4 = vpop.f32.mrb[44].mxu0 }
 0x174   :  { %7929 = vst [vmem:[#allocation7_spill] sm:$0xff] %v5291_v39  ;;  %2035 = vrot.lane.b32.xlu1 %v5224_v8, %s4675_s25  ;;  %v731_v61 = vmax.f32 %v585_v38, 0.0  ;;  %v595_v14 = vadd.f32 %v4468_v4, %v5010_v10  ;;  %v5411_v4 = vld [vmem:[#allocation2 + $0x100] sm:$0xff] }
 0x175   :  { %2423 = vrot.lane.b32.xlu0 %v913_v29, %s4676_s30  ;;  %799 = vst.msk [vmem:[#allocation2 + $0x158] sm:$0xff] %vm752_vm4, %v728_v62 }
 0x176   :  { %v5297_v43 = vpop.permute.xlu1 %1357  ;;  %802 = vst.msk [vmem:[#allocation2 + $0x170] sm:$0xff] %vm752_vm4, %v731_v61 }
 0x177   :  { %v5300_v44 = vpop.permute.xlu0 %1363 }
 0x178   :  { %7930 = vst [vmem:[#allocation8_spill] sm:$0xff] %v5300_v44  ;;  %1649 = vrot.lane.b32.xlu1 %v5279_v33, %s4673_s10 }
 0x179   :  { %2037 = vrot.lane.b32.xlu0 %v5304_v45, %s4675_s25 }
 0x17a   :  { %v5308_v46 = vpop.permute.xlu1 %1109 }
 0x17b   :  { %7931 = vst [vmem:[#allocation9_spill] sm:$0xff] %v5308_v46  ;;  %v5310_v47 = vpop.permute.xlu0 %1111 }
 0x17c   :  { %7932 = vst [vmem:[#allocation10_spill] sm:$0xff] %v5310_v47  ;;  %1145 = vrot.lane.b32.xlu1 %v914_v49, %s4670_s13  ;;  %v5510_v47 = vld [vmem:[#allocation2 + $0x108] sm:$0xff] }
 0x17d   :  { %1651 = vrot.lane.b32.xlu0 %v5283_v34, %s4673_s10 }
 0x17e   :  { %v5315_v50 = vpop.permute.xlu1 %1361 }
 0x17f   :  { %7933 = vst [vmem:[#allocation11_spill] sm:$0xff] %v5315_v50  ;;  %v5317_v51 = vpop.permute.xlu0 %1367 }
 0x180   :  { %7934 = vst [vmem:[#allocation12_spill] sm:$0xff] %v5317_v51  ;;  %2425 = vrot.lane.b32.xlu1 %v914_v49, %s4676_s30 }
 0x181   :  { %1845 = vrot.lane.b32.xlu0 %v913_v29, %s4674_s16  ;;  %v729_v29 = vmax.f32 %v575_v15, 0.0  ;;  %v589_v15 = vpop.f32.mrb[45].mxu0 }
 0x182   :  { %v5321_v52 = vpop.permute.xlu1 %1113  ;;  %v590_v16 = vadd.f32 %v5010_v10, %v589_v15  ;;  %v4471_v38 = vpop.f32.mrb[46].mxu0 }
 0x183   :  { %7935 = vst [vmem:[#allocation13_spill] sm:$0xff] %v5321_v52  ;;  %v5325_v54 = vpop.permute.xlu0 %1115  ;;  %800 = vst.msk [vmem:[#allocation2 + $0x160] sm:$0xff] %vm752_vm4, %v729_v29  ;;  %v733_v29 = vmax.f32 %v595_v14, 0.0  ;;  %v599_v61 = vpop.f32.mrb[47].mxu0 }
 0x184   :  { %7936 = vst [vmem:[#allocation14_spill] sm:$0xff] %v5325_v54  ;;  %1847 = vrot.lane.b32.xlu1 %v914_v49, %s4674_s16  ;;  %v580_v49 = vadd.f32 %v5010_v10, %v579_v41  ;;  %v732_v62 = vmax.f32 %v590_v16, 0.0  ;;  %v5402_v41 = vld [vmem:[#allocation2 + $0xe9] sm:$0xff]  ;;  %v600_v15 = vadd.f32 %v5010_v10, %v599_v61  ;;  %v4474_v48 = vpop.f32.mrb[48].mxu0  ;;  %v5493_v54 = vld [vmem:[#allocation2 + $0xf9] sm:$0xff] }
 0x185   :  { %2429 = vrot.lane.b32.xlu0 %v5323_v53, %s4676_s30  ;;  %804 = vst.msk [vmem:[#allocation2 + $0x180] sm:$0xff] %vm752_vm4, %v733_v29 }
 0x186   :  { %v5330_v55 = vpop.permute.xlu1 %1365  ;;  %v730_v1 = vmax.f32 %v580_v49, 0.0  ;;  %v605_v49 = vadd.f32 %v4471_v38, %v5010_v10  ;;  %803 = vst.msk [vmem:[#allocation2 + $0x178] sm:$0xff] %vm752_vm4, %v732_v62  ;;  %v734_v29 = vmax.f32 %v600_v15, 0.0  ;;  %v615_v38 = vadd.f32 %v4474_v48, %v5010_v10  ;;  %v609_v62 = vpop.f32.mrb[49].mxu0 }
 0x187   :  { %7937 = vst [vmem:[#allocation15_spill] sm:$0xff] %v5330_v55  ;;  %v5334_v57 = vpop.permute.xlu0 %1371 }
 0x188   :  { %7938 = vst [vmem:[#allocation16_spill] sm:$0xff] %v5334_v57  ;;  %1397 = vrot.lane.b32.xlu1 %v5304_v45, %s4671_s21  ;;  %801 = vst.msk [vmem:[#allocation2 + $0x168] sm:$0xff] %vm752_vm4, %v730_v1  ;;  %v735_v14 = vmax.f32 %v605_v49, 0.0  ;;  %v5424_v49 = vld [vmem:[#allocation2 + $0xf8] sm:$0xff]  ;;  %v737_v61 = vmax.f32 %v615_v38, 0.0 }
 0x189   :  { %1147 = vrot.lane.b32.xlu0 %v5332_v56, %s4670_s13  ;;  %805 = vst.msk [vmem:[#allocation2 + $0x188] sm:$0xff] %vm752_vm4, %v734_v29 }
 0x18a   :  { %v5340_v58 = vpop.permute.xlu1 %1117  ;;  %806 = vst.msk [vmem:[#allocation2 + $0x190] sm:$0xff] %vm752_vm4, %v735_v14  ;;  %808 = vst.msk [vmem:[#allocation2 + $0x1a0] sm:$0xff] %vm752_vm4, %v737_v61 }
 0x18b   :  { %7939 = vst [vmem:[#allocation17_spill] sm:$0xff] %v5340_v58  ;;  %v5342_v59 = vpop.permute.xlu0 %1119 }
 0x18c   :  { %7940 = vst [vmem:[#allocation18_spill] sm:$0xff] %v5342_v59  ;;  %2231 = vrot.lane.b32.xlu1 %v5344_v60, %s4677_s4  ;;  %v5473_v59 = vld [vmem:[#allocation2 + $0xf1] sm:$0xff] }
 0x18d   :  { %2233 = vrot.lane.b32.xlu0 %v5348_v63, %s4677_s4 }
 0x18e   :  { %v5353_v2 = vpop.permute.xlu1 %1369 }
 0x18f   :  { %7941 = vst [vmem:[#allocation19_spill] sm:$0xff] %v5353_v2  ;;  %v5356_v7 = vpop.permute.xlu0 %1375  ;;  %v5499_v2 = vld [vmem:[#allocation2 + $0x110] sm:$0xff]  ;;  %v6142_v30 = vld [vmem:[#allocation2 + $0x167] sm:$0xff] }
 0x190   :  { %7942 = vst [vmem:[#allocation20_spill] sm:$0xff] %v5356_v7  ;;  %2039 = vrot.lane.b32.xlu1 %v5358_v12, %s4675_s25 }
 0x191   :  { %2427 = vrot.lane.b32.xlu0 %v5332_v56, %s4676_s30  ;;  %v938_v44 = vld [vmem:[#allocation2 + $0x1a0] sm:$0xff] }
 0x192   :  { %v5367_v22 = vpop.permute.xlu1 %1121 }
 0x193   :  { %7943 = vst [vmem:[#allocation21_spill] sm:$0xff] %v5367_v22  ;;  %v5370_v36 = vpop.permute.xlu0 %1123 }
 0x194   :  { %7944 = vst [vmem:[#allocation22_spill] sm:$0xff] %v5370_v36  ;;  %1653 = vrot.lane.b32.xlu1 %v5344_v60, %s4673_s10 }
 0x195   :  { %2041 = vrot.lane.b32.xlu0 %v5375_v42, %s4675_s25 }
 0x196   :  { %v5382_v0 = vpop.permute.xlu1 %1373 }
 0x197   :  { %7945 = vst [vmem:[#allocation23_spill] sm:$0xff] %v5382_v0  ;;  %v5384_v3 = vpop.permute.xlu0 %1379  ;;  %v5484_v0 = vld [vmem:[#allocation2 + $0xff] sm:$0xff] }
 0x198   :  { %7946 = vst [vmem:[#allocation24_spill] sm:$0xff] %v5384_v3  ;;  %1399 = vrot.lane.b32.xlu1 %v5358_v12, %s4671_s21 }
 0x199   :  { %2235 = vrot.lane.b32.xlu0 %v5389_v13, %s4677_s4 }
 0x19a   :  { %v5396_v18 = vpop.permute.xlu1 %1125 }
 0x19b   :  { %7947 = vst [vmem:[#allocation25_spill] sm:$0xff] %v5396_v18  ;;  %v5398_v35 = vpop.permute.xlu0 %1127 }
 0x19c   :  { %7948 = vst [vmem:[#allocation26_spill] sm:$0xff] %v5398_v35  ;;  %1149 = vrot.lane.b32.xlu1 %v5323_v53, %s4670_s13 }
 0x19d   :  { %2043 = vrot.lane.b32.xlu0 %v5402_v41, %s4675_s25 }
 0x19e   :  { %v5409_v1 = vpop.permute.xlu1 %1377 }
 0x19f   :  { %7949 = vst [vmem:[#allocation27_spill] sm:$0xff] %v5409_v1  ;;  %v5414_v16 = vpop.permute.xlu0 %1383 }
 0x1a0   :  { %7950 = vst [vmem:[#allocation28_spill] sm:$0xff] %v5414_v16  ;;  %1851 = vrot.lane.b32.xlu1 %v5323_v53, %s4674_s16  ;;  %v610_v16 = vadd.f32 %v5010_v10, %v609_v62  ;;  %v4477_v53 = vpop.f32.mrb[50].mxu0 }
 0x1a1   :  { %2433 = vrot.lane.b32.xlu0 %v5411_v4, %s4676_s30  ;;  %v625_v14 = vadd.f32 %v4477_v53, %v5010_v10  ;;  %v619_v15 = vpop.f32.mrb[51].mxu0 }
 0x1a2   :  { %v5422_v23 = vpop.permute.xlu1 %1129  ;;  %v736_v48 = vmax.f32 %v610_v16, 0.0  ;;  %v620_v38 = vadd.f32 %v5010_v10, %v619_v15  ;;  %v4480_v3 = vpop.f32.mrb[52].mxu0  ;;  %v5444_v16 = vld [vmem:[#allocation2 + $0xf7] sm:$0xff] }
 0x1a3   :  { %v5428_v35 = vpop.permute.xlu0 %1131  ;;  %v739_v29 = vmax.f32 %v625_v14, 0.0  ;;  %v635_v53 = vadd.f32 %v4480_v3, %v5010_v10 }
 0x1a4   :  { %1655 = vrot.lane.b32.xlu1 %v5348_v63, %s4673_s10  ;;  %807 = vst.msk [vmem:[#allocation2 + $0x198] sm:$0xff] %vm752_vm4, %v736_v48  ;;  %v738_v61 = vmax.f32 %v620_v38, 0.0  ;;  %v629_v48 = vpop.f32.mrb[53].mxu0 }
 0x1a5   :  { %1151 = vrot.lane.b32.xlu0 %v5424_v49, %s4670_s13  ;;  %810 = vst.msk [vmem:[#allocation2 + $0x1b0] sm:$0xff] %vm752_vm4, %v739_v29  ;;  %v741_v15 = vmax.f32 %v635_v53, 0.0 }
 0x1a6   :  { %v5436_v18 = vpop.permute.xlu1 %1381  ;;  %809 = vst.msk [vmem:[#allocation2 + $0x1a8] sm:$0xff] %vm752_vm4, %v738_v61 }
 0x1a7   :  { %7951 = vst [vmem:[#allocation29_spill] sm:$0xff] %v5436_v18  ;;  %v5440_v62 = vpop.permute.xlu0 %1387  ;;  %v630_v18 = vadd.f32 %v5010_v10, %v629_v48  ;;  %812 = vst.msk [vmem:[#allocation2 + $0x1c0] sm:$0xff] %vm752_vm4, %v741_v15 }
 0x1a8   :  { %1849 = vrot.lane.b32.xlu1 %v5332_v56, %s4674_s16  ;;  %v4483_v56 = vpop.f32.mrb[54].mxu0 }
 0x1a9   :  { %2237 = vrot.lane.b32.xlu0 %v5444_v16, %s4677_s4  ;;  %v740_v3 = vmax.f32 %v630_v18, 0.0  ;;  %v645_v29 = vadd.f32 %v4483_v56, %v5010_v10  ;;  %v639_v38 = vpop.f32.mrb[55].mxu0  ;;  %v4583_v18 = vld [vmem:[%s7916_s3] ss:$0 sm:$0xff] }
 0x1aa   :  { %v5450_v14 = vpop.permute.xlu1 %1133  ;;  %v640_v61 = vadd.f32 %v5010_v10, %v639_v38  ;;  %v4486_v1 = vpop.f32.mrb[56].mxu0 }
 0x1ab   :  { %v5454_v36 = vpop.permute.xlu0 %1641  ;;  %811 = vst.msk [vmem:[#allocation2 + $0x1b8] sm:$0xff] %vm752_vm4, %v740_v3  ;;  %v743_v48 = vmax.f32 %v645_v29, 0.0  ;;  %v655_v15 = vadd.f32 %v4583_v18, %v4486_v1  ;;  %v649_v56 = vpop.f32.mrb[57].mxu0 }
 0x1ac   :  { %1401 = vrot.lane.b32.xlu1 %v5375_v42, %s4671_s21  ;;  %v742_v7 = vmax.f32 %v640_v61, 0.0  ;;  %v650_v10 = vadd.f32 %v4583_v18, %v649_v56  ;;  %v4489_v1 = vpop.f32.mrb[58].mxu0 }
 0x1ad   :  { %2431 = vrot.lane.b32.xlu0 %v5424_v49, %s4676_s30  ;;  %814 = vst.msk [vmem:[#allocation2 + $0x1d0] sm:$0xff] %vm752_vm4, %v743_v48  ;;  %v745_v3 = vmax.f32 %v655_v15, 0.0  ;;  %v665_v48 = vadd.f32 %v4583_v18, %v4489_v1  ;;  %v659_v56 = vpop.f32.mrb[59].mxu0 }
 0x1ae   :  { %v5463_v53 = vpop.permute.xlu1 %1835  ;;  %813 = vst.msk [vmem:[#allocation2 + $0x1c8] sm:$0xff] %vm752_vm4, %v742_v7  ;;  %v744_v38 = vmax.f32 %v650_v10, 0.0  ;;  %v660_v7 = vadd.f32 %v4583_v18, %v659_v56 }
 0x1af   :  { %v5466_v22 = vpop.permute.xlu0 %1135  ;;  %816 = vst.msk [vmem:[#allocation2 + $0x1e0] sm:$0xff] %vm752_vm4, %v745_v3  ;;  %v747_v10 = vmax.f32 %v665_v48, 0.0  ;;  %v4492_v3 = vpop.f32.mrb[60].mxu0 }
 0x1b0   :  { %1657 = vrot.lane.b32.xlu1 %v5389_v13, %s4673_s10  ;;  %815 = vst.msk [vmem:[#allocation2 + $0x1d8] sm:$0xff] %vm752_vm4, %v744_v38  ;;  %v746_v57 = vmax.f32 %v660_v7, 0.0  ;;  %v675_v38 = vadd.f32 %v4583_v18, %v4492_v3  ;;  %v669_v1 = vpop.f32.mrb[61].mxu0 }
 0x1b1   :  { %2045 = vrot.lane.b32.xlu0 %v5473_v59, %s4675_s25  ;;  %818 = vst.msk [vmem:[#allocation2 + $0x1f0] sm:$0xff] %vm752_vm4, %v747_v10  ;;  %v670_v7 = vadd.f32 %v4583_v18, %v669_v1  ;;  %v842_v10 = vld [vmem:[#allocation2 + $0x9f] sm:$0xff]  ;;  %v4495_v1 = vpop.f32.mrb[62].mxu0 }
 0x1b2   :  { %v1386_v29 = vpop.permute.xlu1 %1385  ;;  %817 = vst.msk [vmem:[#allocation2 + $0x1e8] sm:$0xff] %vm752_vm4, %v746_v57  ;;  %v749_v48 = vmax.f32 %v675_v38, 0.0  ;;  %v2590_v57 = vsel %vm752_vm4, %v842_v10, %v5422_v23  ;;  %v679_v10 = vpop.f32.mrb[63].mxu0 }
 0x1b3   :  { %v5479_v61 = vpop.permute.xlu0 %1391  ;;  %v748_v51 = vmax.f32 %v670_v7, 0.0  ;;  %v685_v7 = vadd.f32 %v4583_v18, %v4495_v1 }
 0x1b4   :  { %1403 = vrot.lane.b32.xlu1 %v5402_v41, %s4671_s21  ;;  %820 = vst.msk [vmem:[#allocation2 + $0x200] sm:$0xff] %vm752_vm4, %v749_v48 }
 0x1b5   :  { %2239 = vrot.lane.b32.xlu0 %v5484_v0, %s4677_s4  ;;  %819 = vst.msk [vmem:[#allocation2 + $0x1f8] sm:$0xff] %vm752_vm4, %v748_v51  ;;  %v751_v55 = vmax.f32 %v685_v7, 0.0  ;;  %v843_v7 = vld [vmem:[#allocation2 + $0xa7] sm:$0xff] }
 0x1b6   :  { %v5489_v15 = vpop.permute.xlu1 %1137 }
 0x1b7   :  { %v2030_v58 = vpop.permute.xlu0 %2029  ;;  %822 = vst.msk [vmem:[#allocation2 + $0x210] sm:$0xff] %vm752_vm4, %v751_v55 }
 0x1b8   :  { %1153 = vrot.lane.b32.xlu1 %v5411_v4, %s4670_s13 }
 0x1b9   :  { %2047 = vrot.lane.b32.xlu0 %v5493_v54, %s4675_s25  ;;  %v947_v50 = vld [vmem:[#allocation2 + $0x1e8] sm:$0xff] }
 0x1ba   :  { %v2418_v56 = vpop.permute.xlu1 %2417 }
 0x1bb   :  { %v1644_v52 = vpop.permute.xlu0 %1643 }
 0x1bc   :  { %1855 = vrot.lane.b32.xlu1 %v5411_v4, %s4674_s16  ;;  %v2655_v4 = vsel %vm2635_vm5, %v2590_v57, %v1386_v29  ;;  %v680_v29 = vadd.f32 %v4583_v18, %v679_v10  ;;  %v5526_v57 = vld [vmem:[#allocation2 + $0x107] sm:$0xff]  ;;  %v3063_v18 = vld [vmem:[%s7917_s1 + $0x130] sm:$0xff] }
 0x1bd   :  { %2437 = vrot.lane.b32.xlu0 %v5499_v2, %s4676_s30  ;;  %v2720_v23 = vsel %vm2700_vm6, %v2655_v4, %v5454_v36 }
 0x1be   :  { %v5508_v3 = vpop.permute.xlu1 %1839  ;;  %v2785_v46 = vsel %vm2765_vm7, %v2720_v23, %v5463_v53  ;;  %v750_v36 = vmax.f32 %v680_v29, 0.0 }
 0x1bf   :  { %v1838_v38 = vpop.permute.xlu0 %1837  ;;  %v2850_v4 = vsel %vm2830_vm8, %v2785_v46, %v2030_v58  ;;  %v2591_v46 = vsel %vm752_vm4, %v843_v7, %v5428_v35 }
 0x1c0   :  { %1659 = vrot.lane.b32.xlu1 %v5444_v16, %s4673_s10  ;;  %821 = vst.msk [vmem:[#allocation2 + $0x208] sm:$0xff] %vm752_vm4, %v750_v36  ;;  %v2656_v55 = vsel %vm2635_vm5, %v2591_v46, %v5440_v62  ;;  %v5560_v62 = vld [vmem:[#allocation2 + $0x101] sm:$0xff] }
 0x1c1   :  { %1155 = vrot.lane.b32.xlu0 %v5510_v47, %s4670_s13 }
 0x1c2   :  { %v5520_v48 = vpop.permute.xlu1 %1389 }
 0x1c3   :  { %v5522_v51 = vpop.permute.xlu0 %1139 }
 0x1c4   :  { %1853 = vrot.lane.b32.xlu1 %v5424_v49, %s4674_s16  ;;  %v3066_v49 = vld [vmem:[%s7917_s1 + $0x148] sm:$0xff] }
 0x1c5   :  { %2241 = vrot.lane.b32.xlu0 %v5526_v57, %s4677_s4  ;;  %v3194_v29 = vmul.f32 %v3066_v49, %v5224_v8 }
 0x1c6   :  { %v2224_v1 = vpop.permute.xlu1 %2223 }
 0x1c7   :  { %v2915_v53 = vsel %vm2895_vm9, %v2850_v4, %v2224_v1  ;;  %v5541_v23 = vpop.permute.xlu0 %1395  ;;  %v2721_v4 = vsel %vm2700_vm6, %v2656_v55, %v1644_v52  ;;  %v3065_v52 = vld [vmem:[%s7917_s1 + $0x140] sm:$0xff] }
 0x1c8   :  { %v2980_v58 = vsel %vm2960_vm10, %v2915_v53, %v2418_v56  ;;  %1405 = vrot.lane.b32.xlu1 %v5473_v59, %s4671_s21  ;;  %v2786_v1 = vsel %vm2765_vm7, %v2721_v4, %v1838_v38  ;;  %v3068_v38 = vld [vmem:[%s7917_s1 + $0x158] sm:$0xff]  ;;  %v5574_v53 = vld [vmem:[#allocation2 + $0x10f] sm:$0xff] }
 0x1c9   :  { %2435 = vrot.lane.b32.xlu0 %v5510_v47, %s4676_s30  ;;  %v3191_v10 = vmul.f32 %v3063_v18, %v2980_v58  ;;  %v3196_v58 = vmul.f32 %v3068_v38, %v5304_v45 }
 0x1ca   :  { %v2032_v36 = vpop.permute.xlu1 %2031 }
 0x1cb   :  { %v2226_v35 = vpop.permute.xlu0 %2225  ;;  %3658 = vmatmul.mubr.f32.vlgmr.msra.gmra.mrb[0].mxu1 %v3191_v10  ;;  %v2851_v56 = vsel %vm2830_vm8, %v2786_v1, %v2032_v36  ;;  %v922_v36 = vld [vmem:[#allocation2 + $0x120] sm:$0xff] }
 0x1cc   :  { %1661 = vrot.lane.b32.xlu1 %v5484_v0, %s4673_s10  ;;  %4273 = vmatprep.mubr.msk.f32.mxu1 %vm752_vm4, %v3194_v29  ;;  %v2916_v18 = vsel %vm2895_vm9, %v2851_v56, %v2226_v35  ;;  %v5584_v29 = vld [vmem:[#allocation2 + $0x109] sm:$0xff]  ;;  %v5593_v35 = vld [vmem:[#allocation2 + $0x118] sm:$0xff] }
 0x1cd   :  { %2049 = vrot.lane.b32.xlu0 %v5560_v62, %s4675_s25 }
 0x1ce   :  { %v1646_v8 = vpop.permute.xlu1 %1645 }
 0x1cf   :  { %v2420_v49 = vpop.permute.xlu0 %2419 }
 0x1d0   :  { %v2981_v7 = vsel %vm2960_vm10, %v2916_v18, %v2420_v49  ;;  %1407 = vrot.lane.b32.xlu1 %v5493_v54, %s4671_s21 }
 0x1d1   :  { %v3193_v46 = vmul.f32 %v3065_v52, %v2981_v7  ;;  %2243 = vrot.lane.b32.xlu0 %v5574_v53, %s4677_s4  ;;  %v2592_v52 = vsel %vm752_vm4, %v5157_v40, %v5450_v14  ;;  %v5609_v7 = vld [vmem:[#allocation2 + $0x117] sm:$0xff] }
 0x1d2   :  { %v5579_v55 = vpop.permute.xlu1 %1141  ;;  %v2657_v38 = vsel %vm2635_vm5, %v2592_v52, %v5520_v48 }
 0x1d3   :  { %v2034_v10 = vpop.permute.xlu0 %2033  ;;  %3663 = vmatmul.mubr.f32.gmra.mrb[2].mxu1 %v3193_v46  ;;  %v3070_v46 = vld [vmem:[%s7917_s1 + $0x168] sm:$0xff] }
 0x1d4   :  { %1157 = vrot.lane.b32.xlu1 %v5499_v2, %s4670_s13  ;;  %4274 = vmatprep.mubr.msk.f32.mxu1 %vm752_vm4, %v3196_v58 }
 0x1d5   :  { %2051 = vrot.lane.b32.xlu0 %v5584_v29, %s4675_s25 }
 0x1d6   :  { %v2422_v4 = vpop.permute.xlu1 %2421 }
 0x1d7   :  { %v1648_v1 = vpop.permute.xlu0 %1647 }
 0x1d8   :  { %1859 = vrot.lane.b32.xlu1 %v5499_v2, %s4674_s16  ;;  %v2722_v2 = vsel %vm2700_vm6, %v2657_v38, %v1646_v8  ;;  %v3067_v8 = vld [vmem:[%s7917_s1 + $0x150] sm:$0xff] }
 0x1d9   :  { %2441 = vrot.lane.b32.xlu0 %v922_v36, %s4676_s30  ;;  %v2787_v40 = vsel %vm2765_vm7, %v2722_v2, %v5508_v3 }
 0x1da   :  { %v5591_v45 = vpop.permute.xlu1 %1843  ;;  %v2852_v14 = vsel %vm2830_vm8, %v2787_v40, %v2034_v10  ;;  %v3198_v40 = vmul.f32 %v3070_v46, %v5358_v12  ;;  %v5647_v12 = vld [vmem:[#allocation2 + $0x111] sm:$0xff] }
 0x1db   :  { %v1842_v56 = vpop.permute.xlu0 %1841 }
 0x1dc   :  { %1663 = vrot.lane.b32.xlu1 %v5526_v57, %s4673_s10 }
 0x1dd   :  { %1159 = vrot.lane.b32.xlu0 %v5593_v35, %s4670_s13 }
 0x1de   :  { %v1394_v18 = vpop.permute.xlu1 %1393 }
 0x1df   :  { %v5605_v49 = vpop.permute.xlu0 %1143 }
 0x1e0   :  { %1857 = vrot.lane.b32.xlu1 %v5510_v47, %s4674_s16  ;;  %v2593_v47 = vsel %vm752_vm4, %v5212_v5, %v5466_v22 }
 0x1e1   :  { %2245 = vrot.lane.b32.xlu0 %v5609_v7, %s4677_s4  ;;  %v2658_v52 = vsel %vm2635_vm5, %v2593_v47, %v5479_v61  ;;  %v3069_v61 = vld [vmem:[%s7917_s1 + $0x160] sm:$0xff] }
 0x1e2   :  { %v2228_v48 = vpop.permute.xlu1 %2227  ;;  %v2723_v38 = vsel %vm2700_vm6, %v2658_v52, %v1648_v1  ;;  %v3072_v1 = vld [vmem:[%s7917_s1 + $0x178] sm:$0xff] }
 0x1e3   :  { %v2917_v3 = vsel %vm2895_vm9, %v2852_v14, %v2228_v48  ;;  %v2230_v58 = vpop.permute.xlu0 %2229  ;;  %v2788_v5 = vsel %vm2765_vm7, %v2723_v38, %v1842_v56  ;;  %v3200_v47 = vmul.f32 %v3072_v1, %v5375_v42  ;;  %v5663_v38 = vld [vmem:[#allocation2 + $0x119] sm:$0xff] }
 0x1e4   :  { %v2982_v10 = vsel %vm2960_vm10, %v2917_v3, %v2422_v4  ;;  %1409 = vrot.lane.b32.xlu1 %v5560_v62, %s4671_s21 }
 0x1e5   :  { %2439 = vrot.lane.b32.xlu0 %v5593_v35, %s4676_s30  ;;  %v3195_v2 = vmul.f32 %v3067_v8, %v2982_v10 }
 0x1e6   :  { %v2036_v22 = vpop.permute.xlu1 %2035 }
 0x1e7   :  { %v2853_v14 = vsel %vm2830_vm8, %v2788_v5, %v2036_v22  ;;  %v2424_v4 = vpop.permute.xlu0 %2423  ;;  %3668 = vmatmul.mubr.f32.gmra.mrb[4].mxu1 %v3195_v2  ;;  %v5667_v2 = vld [vmem:[#allocation2 + $0x130] sm:$0xff]  ;;  %v2594_v5 = vsel %vm752_vm4, %v5226_v9, %v5489_v15  ;;  %v5689_v9 = vld [vmem:[#allocation2 + $0x127] sm:$0xff] }
 0x1e8   :  { %v2918_v48 = vsel %vm2895_vm9, %v2853_v14, %v2230_v58  ;;  %1665 = vrot.lane.b32.xlu1 %v5574_v53, %s4673_s10  ;;  %4275 = vmatprep.mubr.msk.f32.mxu1 %vm752_vm4, %v3198_v40  ;;  %v5655_v58 = vld [vmem:[#allocation2 + $0x11f] sm:$0xff]  ;;  %v5675_v14 = vld [vmem:[#allocation2 + $0x128] sm:$0xff] }
 0x1e9   :  { %v2983_v56 = vsel %vm2960_vm10, %v2918_v48, %v2424_v4  ;;  %2053 = vrot.lane.b32.xlu0 %v5647_v12, %s4675_s25 }
 0x1ea   :  { %v3197_v8 = vmul.f32 %v3069_v61, %v2983_v56  ;;  %v1650_v46 = vpop.permute.xlu1 %1649  ;;  %v2659_v61 = vsel %vm2635_vm5, %v2594_v5, %v1394_v18 }
 0x1eb   :  { %v2038_v3 = vpop.permute.xlu0 %2037  ;;  %v2724_v1 = vsel %vm2700_vm6, %v2659_v61, %v1650_v46 }
 0x1ec   :  { %1411 = vrot.lane.b32.xlu1 %v5584_v29, %s4671_s21  ;;  %3673 = vmatmul.mubr.f32.gmra.mrb[6].mxu1 %v3197_v8  ;;  %v2789_v48 = vsel %vm2765_vm7, %v2724_v1, %v5591_v45  ;;  %v3071_v8 = vld [vmem:[%s7917_s1 + $0x170] sm:$0xff]  ;;  %v3074_v45 = vld [vmem:[%s7917_s1 + $0x188] sm:$0xff] }
 0x1ed   :  { %2247 = vrot.lane.b32.xlu0 %v5655_v58, %s4677_s4  ;;  %4276 = vmatprep.mubr.msk.f32.mxu1 %vm752_vm4, %v3200_v47  ;;  %v2854_v15 = vsel %vm2830_vm8, %v2789_v48, %v2038_v3  ;;  %v3202_v48 = vmul.f32 %v3074_v45, %v5402_v41  ;;  %v5725_v41 = vld [vmem:[#allocation2 + $0x121] sm:$0xff] }
 0x1ee   :  { %v5660_v52 = vpop.permute.xlu1 %1145 }
 0x1ef   :  { %v1652_v10 = vpop.permute.xlu0 %1651 }
 0x1f0   :  { %1161 = vrot.lane.b32.xlu1 %v922_v36, %s4670_s13 }
 0x1f1   :  { %2055 = vrot.lane.b32.xlu0 %v5663_v38, %s4675_s25 }
 0x1f2   :  { %v2426_v42 = vpop.permute.xlu1 %2425 }
 0x1f3   :  { %v1846_v40 = vpop.permute.xlu0 %1845 }
 0x1f4   :  { %1863 = vrot.lane.b32.xlu1 %v922_v36, %s4674_s16 }
 0x1f5   :  { %2445 = vrot.lane.b32.xlu0 %v5667_v2, %s4676_s30 }
 0x1f6   :  { %v1848_v22 = vpop.permute.xlu1 %1847 }
 0x1f7   :  { %v2430_v4 = vpop.permute.xlu0 %2429 }
 0x1f8   :  { %1667 = vrot.lane.b32.xlu1 %v5609_v7, %s4673_s10 }
 0x1f9   :  { %1163 = vrot.lane.b32.xlu0 %v5675_v14, %s4670_s13 }
 0x1fa   :  { %v1398_v36 = vpop.permute.xlu1 %1397 }
 0x1fb   :  { %v5685_v56 = vpop.permute.xlu0 %1147 }
 0x1fc   :  { %1861 = vrot.lane.b32.xlu1 %v5593_v35, %s4674_s16  ;;  %v2595_v35 = vsel %vm752_vm4, %v5237_v17, %v5522_v51 }
 0x1fd   :  { %2249 = vrot.lane.b32.xlu0 %v5689_v9, %s4677_s4  ;;  %v2660_v5 = vsel %vm2635_vm5, %v2595_v35, %v5541_v23  ;;  %v3073_v23 = vld [vmem:[%s7917_s1 + $0x180] sm:$0xff] }
 0x1fe   :  { %v2232_v18 = vpop.permute.xlu1 %2231  ;;  %v2725_v61 = vsel %vm2700_vm6, %v2660_v5, %v1652_v10  ;;  %v3076_v10 = vld [vmem:[%s7917_s1 + $0x198] sm:$0xff] }
 0x1ff   :  { %v2919_v46 = vsel %vm2895_vm9, %v2854_v15, %v2232_v18  ;;  %v2234_v47 = vpop.permute.xlu0 %2233  ;;  %v2790_v17 = vsel %vm2765_vm7, %v2725_v61, %v1846_v40  ;;  %v2596_v40 = vsel %vm752_vm4, %v5279_v33, %v5579_v55  ;;  %v5739_v33 = vld [vmem:[#allocation2 + $0x12f] sm:$0xff] }
 0x200   :  { %v2984_v3 = vsel %vm2960_vm10, %v2919_v46, %v2426_v42  ;;  %1413 = vrot.lane.b32.xlu1 %v5647_v12, %s4671_s21  ;;  %v2661_v45 = vsel %vm2635_vm5, %v2596_v40, %v1398_v36 }
 0x201   :  { %2443 = vrot.lane.b32.xlu0 %v5675_v14, %s4676_s30  ;;  %v3199_v1 = vmul.f32 %v3071_v8, %v2984_v3 }
 0x202   :  { %v2040_v51 = vpop.permute.xlu1 %2039 }
 0x203   :  { %v2855_v15 = vsel %vm2830_vm8, %v2790_v17, %v2040_v51  ;;  %v2428_v42 = vpop.permute.xlu0 %2427  ;;  %3678 = vmatmul.mubr.f32.gmra.mrb[8].mxu1 %v3199_v1  ;;  %v3075_v1 = vld [vmem:[%s7917_s1 + $0x190] sm:$0xff] }
 0x204   :  { %v2920_v18 = vsel %vm2895_vm9, %v2855_v15, %v2234_v47  ;;  %1669 = vrot.lane.b32.xlu1 %v5655_v58, %s4673_s10  ;;  %4277 = vmatprep.mubr.msk.f32.mxu1 %vm752_vm4, %v3202_v48  ;;  %v3204_v47 = vmul.f32 %v3076_v10, %v5473_v59  ;;  %v5754_v17 = vld [vmem:[#allocation2 + $0x129] sm:$0xff] }
 0x205   :  { %v2985_v8 = vsel %vm2960_vm10, %v2920_v18, %v2428_v42  ;;  %2057 = vrot.lane.b32.xlu0 %v5725_v41, %s4675_s25  ;;  %v5761_v42 = vld [vmem:[#allocation2 + $0x138] sm:$0xff] }
 0x206   :  { %v3201_v35 = vmul.f32 %v3073_v23, %v2985_v8  ;;  %v1654_v46 = vpop.permute.xlu1 %1653  ;;  %v5771_v8 = vld [vmem:[#allocation2 + $0x137] sm:$0xff] }
 0x207   :  { %v2726_v5 = vsel %vm2700_vm6, %v2661_v45, %v1654_v46  ;;  %v2042_v3 = vpop.permute.xlu0 %2041  ;;  %v5775_v45 = vld [vmem:[#allocation2 + $0x148] sm:$0xff]  ;;  %v2597_v46 = vsel %vm752_vm4, %v5283_v34, %v5605_v49  ;;  %v3077_v49 = vld [vmem:[%s7917_s1 + $0x1a0] sm:$0xff] }
 0x208   :  { %v2791_v61 = vsel %vm2765_vm7, %v2726_v5, %v1848_v22  ;;  %1415 = vrot.lane.b32.xlu1 %v5663_v38, %s4671_s21  ;;  %3683 = vmatmul.mubr.f32.gmra.mrb[10].mxu1 %v3201_v35  ;;  %v3078_v22 = vld [vmem:[%s7917_s1 + $0x1a8] sm:$0xff] }
 0x209   :  { %2251 = vrot.lane.b32.xlu0 %v5739_v33, %s4677_s4  ;;  %4278 = vmatprep.mubr.msk.f32.mxu1 %vm752_vm4, %v3204_v47  ;;  %v2856_v36 = vsel %vm2830_vm8, %v2791_v61, %v2042_v3  ;;  %v3206_v10 = vmul.f32 %v3078_v22, %v5493_v54  ;;  %v5788_v3 = vld [vmem:[#allocation2 + $0x158] sm:$0xff] }
 0x20a   :  { %v1400_v55 = vpop.permute.xlu1 %1399 }
 0x20b   :  { %v2236_v59 = vpop.permute.xlu0 %2235  ;;  %v2662_v47 = vsel %vm2635_vm5, %v2597_v46, %v1400_v55  ;;  %v5799_v55 = vld [vmem:[#allocation2 + $0x168] sm:$0xff] }
 0x20c   :  { %v2921_v48 = vsel %vm2895_vm9, %v2856_v36, %v2236_v59  ;;  %1165 = vrot.lane.b32.xlu1 %v5667_v2, %s4670_s13 }
 0x20d   :  { %v2986_v51 = vsel %vm2960_vm10, %v2921_v48, %v2430_v4  ;;  %2059 = vrot.lane.b32.xlu0 %v5754_v17, %s4675_s25 }
 0x20e   :  { %v5759_v15 = vpop.permute.xlu1 %1149  ;;  %v3203_v23 = vmul.f32 %v3075_v1, %v2986_v51  ;;  %v3080_v1 = vld [vmem:[%s7917_s1 + $0x1b8] sm:$0xff]  ;;  %v5805_v51 = vld [vmem:[#allocation2 + $0x140] sm:$0xff] }
 0x20f   :  { %v2044_v18 = vpop.permute.xlu0 %2043 }
 0x210   :  { %1671 = vrot.lane.b32.xlu1 %v5689_v9, %s4673_s10  ;;  %3688 = vmatmul.mubr.f32.gmra.mrb[12].mxu1 %v3203_v23 }
 0x211   :  { %1167 = vrot.lane.b32.xlu0 %v5761_v42, %s4670_s13  ;;  %4279 = vmatprep.mubr.msk.f32.mxu1 %vm752_vm4, %v3206_v10  ;;  %v2598_v10 = vsel %vm752_vm4, %v5344_v60, %v5660_v52 }
 0x212   :  { %v1852_v4 = vpop.permute.xlu1 %1851 }
 0x213   :  { %v2434_v40 = vpop.permute.xlu0 %2433 }
 0x214   :  { %1865 = vrot.lane.b32.xlu1 %v5675_v14, %s4674_s16 }
 0x215   :  { %2253 = vrot.lane.b32.xlu0 %v5771_v8, %s4677_s4 }
 0x216   :  { %v1656_v54 = vpop.permute.xlu1 %1655 }
 0x217   :  { %v5777_v35 = vpop.permute.xlu0 %1151  ;;  %v2727_v14 = vsel %vm2700_vm6, %v2662_v47, %v1656_v54  ;;  %v3208_v54 = vmul.f32 %v3080_v1, %v5560_v62  ;;  %v5828_v62 = vld [vmem:[#allocation2 + $0x188] sm:$0xff] }
 0x218   :  { %1417 = vrot.lane.b32.xlu1 %v5725_v41, %s4671_s21  ;;  %v3082_v1 = vld [vmem:[%s7917_s1 + $0x1c8] sm:$0xff] }
 0x219   :  { %1171 = vrot.lane.b32.xlu0 %v5775_v45, %s4670_s13 }
 0x21a   :  { %v1850_v5 = vpop.permute.xlu1 %1849 }
 0x21b   :  { %v2792_v61 = vsel %vm2765_vm7, %v2727_v14, %v1850_v5  ;;  %v2238_v36 = vpop.permute.xlu0 %2237  ;;  %v5817_v14 = vld [vmem:[#allocation2 + $0x178] sm:$0xff] }
 0x21c   :  { %v2857_v59 = vsel %vm2830_vm8, %v2792_v61, %v2044_v18  ;;  %1673 = vrot.lane.b32.xlu1 %v5739_v33, %s4673_s10 }
 0x21d   :  { %1175 = vrot.lane.b32.xlu0 %v5788_v3, %s4670_s13  ;;  %v2922_v22 = vsel %vm2895_vm9, %v2857_v59, %v2238_v36  ;;  %v5820_v36 = vld [vmem:[#allocation2 + $0x150] sm:$0xff] }
 0x21e   :  { %v1402_v34 = vpop.permute.xlu1 %1401 }
 0x21f   :  { %v2432_v48 = vpop.permute.xlu0 %2431  ;;  %v2663_v46 = vsel %vm2635_vm5, %v2598_v10, %v1402_v34 }
 0x220   :  { %v2987_v23 = vsel %vm2960_vm10, %v2922_v22, %v2432_v48  ;;  %1169 = vrot.lane.b32.xlu1 %v5805_v51, %s4670_s13 }
 0x221   :  { %v3205_v18 = vmul.f32 %v3077_v49, %v2987_v23  ;;  %1179 = vrot.lane.b32.xlu0 %v5799_v55, %s4670_s13  ;;  %v5831_v49 = vld [vmem:[#allocation2 + $0x160] sm:$0xff] }
 0x222   :  { %v1658_v47 = vpop.permute.xlu1 %1657 }
 0x223   :  { %v2728_v5 = vsel %vm2700_vm6, %v2663_v46, %v1658_v47  ;;  %v2046_v61 = vpop.permute.xlu0 %2045  ;;  %3693 = vmatmul.mubr.f32.gmra.mrb[14].mxu1 %v3205_v18  ;;  %v937_v18 = vld [vmem:[#allocation2 + $0x198] sm:$0xff]  ;;  %v5848_v47 = vld [vmem:[#allocation2 + $0x170] sm:$0xff] }
 0x224   :  { %v2793_v59 = vsel %vm2765_vm7, %v2728_v5, %v1852_v4  ;;  %1173 = vrot.lane.b32.xlu1 %v5820_v36, %s4670_s13  ;;  %4280 = vmatprep.mubr.msk.f32.mxu1 %vm752_vm4, %v3208_v54  ;;  %v3079_v4 = vld [vmem:[%s7917_s1 + $0x1b0] sm:$0xff]  ;;  %v3210_v54 = vmul.f32 %v3082_v1, %v5584_v29  ;;  %v939_v5 = vld [vmem:[#allocation2 + $0x1a8] sm:$0xff]  ;;  %v2599_v1 = vsel %vm752_vm4, %v5348_v63, %v5685_v56  ;;  %v3081_v56 = vld [vmem:[%s7917_s1 + $0x1c0] sm:$0xff] }
 0x225   :  { %1183 = vrot.lane.b32.xlu0 %v5817_v14, %s4670_s13  ;;  %v2858_v52 = vsel %vm2830_vm8, %v2793_v59, %v2046_v61  ;;  %v5854_v59 = vld [vmem:[#allocation2 + $0x180] sm:$0xff] }
 0x226   :  { %v1404_v60 = vpop.permute.xlu1 %1403 }
 0x227   :  { %v2240_v34 = vpop.permute.xlu0 %2239 }
 0x228   :  { %v2923_v22 = vsel %vm2895_vm9, %v2858_v52, %v2240_v34  ;;  %1177 = vrot.lane.b32.xlu1 %v5831_v49, %s4670_s13  ;;  %v941_v52 = vld [vmem:[#allocation2 + $0x1b8] sm:$0xff] }
 0x229   :  { %v2988_v48 = vsel %vm2960_vm10, %v2923_v22, %v2434_v40  ;;  %1187 = vrot.lane.b32.xlu0 %v5828_v62, %s4670_s13  ;;  %v2664_v22 = vsel %vm2635_vm5, %v2599_v1, %v1404_v60  ;;  %v945_v60 = vld [vmem:[#allocation2 + $0x1d8] sm:$0xff] }
 0x22a   :  { %v5845_v23 = vpop.permute.xlu1 %1153  ;;  %v3207_v10 = vmul.f32 %v3079_v4, %v2988_v48  ;;  %v5861_v4 = vld [vmem:[#allocation2 + $0x190] sm:$0xff] }
 0x22b   :  { %v2048_v46 = vpop.permute.xlu0 %2047 }
 0x22c   :  { %1181 = vrot.lane.b32.xlu1 %v5848_v47, %s4670_s13  ;;  %3698 = vmatmul.mubr.f32.gmra.mrb[16].mxu1 %v3207_v10 }
 0x22d   :  { %1191 = vrot.lane.b32.xlu0 %v937_v18, %s4670_s13  ;;  %4281 = vmatprep.mubr.msk.f32.mxu1 %vm752_vm4, %v3210_v54  ;;  %v943_v18 = vld [vmem:[#allocation2 + $0x1c8] sm:$0xff] }
 0x22e   :  { %v1856_v40 = vpop.permute.xlu1 %1855 }
 0x22f   :  { %v2438_v61 = vpop.permute.xlu0 %2437 }
 0x230   :  { %1185 = vrot.lane.b32.xlu1 %v5854_v59, %s4670_s13 }
 0x231   :  { %1195 = vrot.lane.b32.xlu0 %v939_v5, %s4670_s13 }
 0x232   :  { %v1660_v29 = vpop.permute.xlu1 %1659 }
 0x233   :  { %v5859_v34 = vpop.permute.xlu0 %1155  ;;  %v2729_v48 = vsel %vm2700_vm6, %v2664_v22, %v1660_v29  ;;  %v3084_v29 = vld [vmem:[%s7917_s1 + $0x1d8] sm:$0xff]  ;;  %v940_v22 = vld [vmem:[#allocation2 + $0x1b0] sm:$0xff] }
 0x234   :  { %1189 = vrot.lane.b32.xlu1 %v5861_v4, %s4670_s13 }
 0x235   :  { %1199 = vrot.lane.b32.xlu0 %v941_v52, %s4670_s13 }
 0x236   :  { %v1854_v10 = vpop.permute.xlu1 %1853 }
 0x237   :  { %v2794_v54 = vsel %vm2765_vm7, %v2729_v48, %v1854_v10  ;;  %v2242_v5 = vpop.permute.xlu0 %2241  ;;  %v3212_v10 = vmul.f32 %v3084_v29, %v5647_v12 }
 0x238   :  { %v2859_v39 = vsel %vm2830_vm8, %v2794_v54, %v2048_v46  ;;  %1193 = vrot.lane.b32.xlu1 %v938_v44, %s4670_s13  ;;  %v2600_v44 = vsel %vm752_vm4, %v5389_v13, %v5759_v15  ;;  %v949_v15 = vld [vmem:[#allocation2 + $0x1f8] sm:$0xff] }
 0x239   :  { %1203 = vrot.lane.b32.xlu0 %v943_v18, %s4670_s13  ;;  %v2924_v52 = vsel %vm2895_vm9, %v2859_v39, %v2242_v5 }
 0x23a   :  { %v1406_v63 = vpop.permute.xlu1 %1405 }
 0x23b   :  { %v2436_v1 = vpop.permute.xlu0 %2435  ;;  %v2665_v18 = vsel %vm2635_vm5, %v2600_v44, %v1406_v63 }
 0x23c   :  { %v2989_v46 = vsel %vm2960_vm10, %v2924_v52, %v2436_v1  ;;  %1197 = vrot.lane.b32.xlu1 %v940_v22, %s4670_s13  ;;  %v942_v52 = vld [vmem:[#allocation2 + $0x1c0] sm:$0xff] }
 0x23d   :  { %v3209_v48 = vmul.f32 %v3081_v56, %v2989_v46  ;;  %1207 = vrot.lane.b32.xlu0 %v945_v60, %s4670_s13  ;;  %v944_v56 = vld [vmem:[#allocation2 + $0x1d0] sm:$0xff] }
 0x23e   :  { %v1662_v54 = vpop.permute.xlu1 %1661  ;;  %v3083_v60 = vld [vmem:[%s7917_s1 + $0x1d0] sm:$0xff] }
 0x23f   :  { %v2730_v39 = vsel %vm2700_vm6, %v2665_v18, %v1662_v54  ;;  %v2050_v5 = vpop.permute.xlu0 %2049  ;;  %3703 = vmatmul.mubr.f32.gmra.mrb[18].mxu1 %v3209_v48 }
 0x240   :  { %v2795_v1 = vsel %vm2765_vm7, %v2730_v39, %v1856_v40  ;;  %1201 = vrot.lane.b32.xlu1 %v942_v52, %s4670_s13  ;;  %4282 = vmatprep.mubr.msk.f32.mxu1 %vm752_vm4, %v3212_v10  ;;  %v3086_v40 = vld [vmem:[%s7917_s1 + $0x1e8] sm:$0xff]  ;;  %v946_v10 = vld [vmem:[#allocation2 + $0x1e0] sm:$0xff]  ;;  %v5914_v39 = vld [vmem:[#allocation2 + $0x131] sm:$0xff] }
 0x241   :  { %1211 = vrot.lane.b32.xlu0 %v947_v50, %s4670_s13  ;;  %v2860_v12 = vsel %vm2830_vm8, %v2795_v1, %v2050_v5  ;;  %v3214_v44 = vmul.f32 %v3086_v40, %v5663_v38  ;;  %v950_v52 = vld [vmem:[#allocation2 + $0x200] sm:$0xff]  ;;  %v2601_v1 = vsel %vm752_vm4, %v5444_v16, %v5777_v35 }
 0x242   :  { %v1408_v13 = vpop.permute.xlu1 %1407  ;;  %v3085_v35 = vld [vmem:[%s7917_s1 + $0x1e0] sm:$0xff] }
 0x243   :  { %v2244_v63 = vpop.permute.xlu0 %2243 }
 0x244   :  { %v2925_v29 = vsel %vm2895_vm9, %v2860_v12, %v2244_v63  ;;  %1205 = vrot.lane.b32.xlu1 %v944_v56, %s4670_s13  ;;  %v2666_v12 = vsel %vm2635_vm5, %v2601_v1, %v1408_v13  ;;  %v3088_v13 = vld [vmem:[%s7917_s1 + $0x1f8] sm:$0xff] }
 0x245   :  { %v2990_v50 = vsel %vm2960_vm10, %v2925_v29, %v2438_v61  ;;  %1215 = vrot.lane.b32.xlu0 %v949_v15, %s4670_s13  ;;  %v948_v61 = vld [vmem:[#allocation2 + $0x1f0] sm:$0xff]  ;;  %v5924_v15 = vld [vmem:[#allocation2 + $0x13f] sm:$0xff] }
 0x246   :  { %v5906_v22 = vpop.permute.xlu1 %1157  ;;  %v3211_v46 = vmul.f32 %v3083_v60, %v2990_v50 }
 0x247   :  { %v2052_v48 = vpop.permute.xlu0 %2051 }
 0x248   :  { %1209 = vrot.lane.b32.xlu1 %v946_v10, %s4670_s13  ;;  %3708 = vmatmul.mubr.f32.gmra.mrb[20].mxu1 %v3211_v46 }
 0x249   :  { %2447 = vrot.lane.b32.xlu0 %v5761_v42, %s4676_s30  ;;  %4283 = vmatprep.mubr.msk.f32.mxu1 %vm752_vm4, %v3214_v44 }
 0x24a   :  { %v1860_v18 = vpop.permute.xlu1 %1859 }
 0x24b   :  { %v2442_v54 = vpop.permute.xlu0 %2441 }
 0x24c   :  { %1213 = vrot.lane.b32.xlu1 %v948_v61, %s4670_s13  ;;  %v3216_v61 = vmul.f32 %v3088_v13, %v5725_v41 }
 0x24d   :  { %2061 = vrot.lane.b32.xlu0 %v5914_v39, %s4675_s25 }
 0x24e   :  { %v1664_v38 = vpop.permute.xlu1 %1663 }
 0x24f   :  { %v5918_v5 = vpop.permute.xlu0 %1159  ;;  %v2731_v63 = vsel %vm2700_vm6, %v2666_v12, %v1664_v38 }
 0x250   :  { %1217 = vrot.lane.b32.xlu1 %v950_v52, %s4670_s13 }
 0x251   :  { %2255 = vrot.lane.b32.xlu0 %v5924_v15, %s4677_s4 }
 0x252   :  { %v1858_v56 = vpop.permute.xlu1 %1857 }
 0x253   :  { %v2796_v60 = vsel %vm2765_vm7, %v2731_v63, %v1858_v56  ;;  %v2246_v40 = vpop.permute.xlu0 %2245 }
 0x254   :  { %v2861_v29 = vsel %vm2830_vm8, %v2796_v60, %v2052_v48  ;;  %1867 = vrot.lane.b32.xlu1 %v5667_v2, %s4674_s16  ;;  %v5946_v2 = vld [vmem:[#allocation2 + $0x139] sm:$0xff]  ;;  %v2602_v48 = vsel %vm752_vm4, %v5484_v0, %v5845_v23  ;;  %v5960_v0 = vld [vmem:[#allocation2 + $0x147] sm:$0xff]  ;;  %v3087_v60 = vld [vmem:[%s7917_s1 + $0x1f0] sm:$0xff] }
 0x255   :  { %2449 = vrot.lane.b32.xlu0 %v5805_v51, %s4676_s30  ;;  %v2926_v50 = vsel %vm2895_vm9, %v2861_v29, %v2246_v40 }
 0x256   :  { %v1410_v16 = vpop.permute.xlu1 %1409 }
 0x257   :  { %v2440_v46 = vpop.permute.xlu0 %2439  ;;  %v2667_v38 = vsel %vm2635_vm5, %v2602_v48, %v1410_v16 }
 0x258   :  { %v2991_v44 = vsel %vm2960_vm10, %v2926_v50, %v2440_v46  ;;  %1419 = vrot.lane.b32.xlu1 %v5754_v17, %s4671_s21  ;;  %v5982_v46 = vld [vmem:[#allocation2 + $0x141] sm:$0xff] }
 0x259   :  { %v3213_v10 = vmul.f32 %v3085_v35, %v2991_v44  ;;  %2063 = vrot.lane.b32.xlu0 %v5946_v2, %s4675_s25  ;;  %v5989_v44 = vld [vmem:[#allocation2 + $0x14f] sm:$0xff] }
 0x25a   :  { %v1666_v52 = vpop.permute.xlu1 %1665 }
 0x25b   :  { %v2732_v1 = vsel %vm2700_vm6, %v2667_v38, %v1666_v52  ;;  %v2054_v12 = vpop.permute.xlu0 %2053  ;;  %3713 = vmatmul.mubr.f32.gmra.mrb[22].mxu1 %v3213_v10  ;;  %v2603_v10 = vsel %vm752_vm4, %v5526_v57, %v5859_v34  ;;  %v3092_v34 = vld [vmem:[%s7917_s1 + $0x218] sm:$0xff] }
 0x25c   :  { %v2797_v63 = vsel %vm2765_vm7, %v2732_v1, %v1860_v18  ;;  %1675 = vrot.lane.b32.xlu1 %v5771_v8, %s4673_s10  ;;  %4284 = vmatprep.mubr.msk.f32.mxu1 %vm752_vm4, %v3216_v61  ;;  %v3090_v18 = vld [vmem:[%s7917_s1 + $0x208] sm:$0xff] }
 0x25d   :  { %2257 = vrot.lane.b32.xlu0 %v5960_v0, %s4677_s4  ;;  %v2862_v23 = vsel %vm2830_vm8, %v2797_v63, %v2054_v12  ;;  %v3218_v13 = vmul.f32 %v3090_v18, %v5754_v17  ;;  %v6005_v63 = vld [vmem:[#allocation2 + $0x17] sm:$0xff]  ;;  %v2604_v18 = vsel %vm752_vm4, %v5574_v53, %v5906_v22 }
 0x25e   :  { %v1412_v41 = vpop.permute.xlu1 %1411  ;;  %v6034_v53 = vld [vmem:[#allocation2 + $0x157] sm:$0xff] }
 0x25f   :  { %v2248_v56 = vpop.permute.xlu0 %2247  ;;  %v2668_v61 = vsel %vm2635_vm5, %v2603_v10, %v1412_v41 }
 0x260   :  { %v2927_v40 = vsel %vm2895_vm9, %v2862_v23, %v2248_v56  ;;  %1869 = vrot.lane.b32.xlu1 %v5761_v42, %s4674_s16 }
 0x261   :  { %v2992_v29 = vsel %vm2960_vm10, %v2927_v40, %v2442_v54  ;;  %2451 = vrot.lane.b32.xlu0 %v5775_v45, %s4676_s30 }
 0x262   :  { %v5977_v16 = vpop.permute.xlu1 %1161  ;;  %v3215_v35 = vmul.f32 %v3087_v60, %v2992_v29  ;;  %v3220_v29 = vmul.f32 %v3092_v34, %v5914_v39 }
 0x263   :  { %v2056_v50 = vpop.permute.xlu0 %2055 }
 0x264   :  { %1421 = vrot.lane.b32.xlu1 %v5914_v39, %s4671_s21  ;;  %3718 = vmatmul.mubr.f32.gmra.mrb[24].mxu1 %v3215_v35 }
 0x265   :  { %2065 = vrot.lane.b32.xlu0 %v5982_v46, %s4675_s25  ;;  %4285 = vmatprep.mubr.msk.f32.mxu1 %vm752_vm4, %v3218_v13 }
 0x266   :  { %v1864_v42 = vpop.permute.xlu1 %1863 }
 0x267   :  { %v2446_v54 = vpop.permute.xlu0 %2445 }
 0x268   :  { %1677 = vrot.lane.b32.xlu1 %v5924_v15, %s4673_s10 }
 0x269   :  { %2259 = vrot.lane.b32.xlu0 %v5989_v44, %s4677_s4 }
 0x26a   :  { %v1668_v17 = vpop.permute.xlu1 %1667 }
 0x26b   :  { %v5993_v48 = vpop.permute.xlu0 %1163  ;;  %v2733_v38 = vsel %vm2700_vm6, %v2668_v61, %v1668_v17 }
 0x26c   :  { %1871 = vrot.lane.b32.xlu1 %v5805_v51, %s4674_s16  ;;  %v3089_v51 = vld [vmem:[%s7917_s1 + $0x200] sm:$0xff] }
 0x26d   :  { %2453 = vrot.lane.b32.xlu0 %v5820_v36, %s4676_s30 }
 0x26e   :  { %v1862_v52 = vpop.permute.xlu1 %1861 }
 0x26f   :  { %v2798_v1 = vsel %vm2765_vm7, %v2733_v38, %v1862_v52  ;;  %v2250_v12 = vpop.permute.xlu0 %2249  ;;  %v6041_v38 = vld [vmem:[#allocation2 + $0x149] sm:$0xff] }
 0x270   :  { %v2863_v23 = vsel %vm2830_vm8, %v2798_v1, %v2056_v50  ;;  %1423 = vrot.lane.b32.xlu1 %v5946_v2, %s4671_s21 }
 0x271   :  { %1603 = vrot.lane.b32.xlu0 %v6005_v63, %s4673_s10  ;;  %v2928_v41 = vsel %vm2895_vm9, %v2863_v23, %v2250_v12  ;;  %v4584_v12 = vld [vmem:[#allocation2 + $0x19] sm:$0xff] }
 0x272   :  { %v1414_v57 = vpop.permute.xlu1 %1413 }
 0x273   :  { %v2444_v56 = vpop.permute.xlu0 %2443  ;;  %v2669_v35 = vsel %vm2635_vm5, %v2604_v18, %v1414_v57 }
 0x274   :  { %v2993_v60 = vsel %vm2960_vm10, %v2928_v41, %v2444_v56  ;;  %1679 = vrot.lane.b32.xlu1 %v5960_v0, %s4673_s10  ;;  %v4585_v41 = vld [vmem:[#allocation2 + $0x18] sm:$0xff] }
 0x275   :  { %v3217_v40 = vmul.f32 %v3089_v51, %v2993_v60  ;;  %1425 = vrot.lane.b32.xlu0 %v5982_v46, %s4671_s21  ;;  %v6067_v60 = vld [vmem:[#allocation2 + $0x1f] sm:$0xff] }
 0x276   :  { %v1670_v13 = vpop.permute.xlu1 %1669 }
 0x277   :  { %v2734_v50 = vsel %vm2700_vm6, %v2669_v35, %v1670_v13  ;;  %v2058_v17 = vpop.permute.xlu0 %2057  ;;  %3723 = vmatmul.mubr.f32.gmra.mrb[26].mxu1 %v3217_v40  ;;  %v4587_v13 = vld [vmem:[#allocation2 + $0x20] sm:$0xff] }
 0x278   :  { %v2799_v10 = vsel %vm2765_vm7, %v2734_v50, %v1864_v42  ;;  %1873 = vrot.lane.b32.xlu1 %v5775_v45, %s4674_s16  ;;  %4286 = vmatprep.mubr.msk.f32.mxu1 %vm752_vm4, %v3220_v29  ;;  %v3091_v42 = vld [vmem:[%s7917_s1 + $0x210] sm:$0xff]  ;;  %v3094_v45 = vld [vmem:[%s7917_s1 + $0x228] sm:$0xff] }
 0x279   :  { %2261 = vrot.lane.b32.xlu0 %v6034_v53, %s4677_s4  ;;  %v2864_v39 = vsel %vm2830_vm8, %v2799_v10, %v2058_v17  ;;  %v3222_v51 = vmul.f32 %v3094_v45, %v5946_v2  ;;  %v6082_v29 = vld [vmem:[#allocation2 + $0x27] sm:$0xff]  ;;  %v6093_v10 = vld [vmem:[#allocation2 + $0x151] sm:$0xff] }
 0x27a   :  { %v6038_v22 = vpop.permute.xlu1 %1415 }
 0x27b   :  { %v2252_v61 = vpop.permute.xlu0 %2251 }
 0x27c   :  { %v2929_v52 = vsel %vm2895_vm9, %v2864_v39, %v2252_v61  ;;  %2067 = vrot.lane.b32.xlu1 %v6041_v38, %s4675_s25 }
 0x27d   :  { %v2994_v1 = vsel %vm2960_vm10, %v2929_v52, %v2446_v54  ;;  %1991 = vrot.lane.b32.xlu0 %v4584_v12, %s4675_s25  ;;  %v6111_v52 = vld [vmem:[#allocation2 + $0x15f] sm:$0xff] }
 0x27e   :  { %v6054_v23 = vpop.permute.xlu1 %1165  ;;  %v3219_v57 = vmul.f32 %v3091_v42, %v2994_v1  ;;  %v6113_v1 = vld [vmem:[#allocation2 + $0x2f] sm:$0xff] }
 0x27f   :  { %v6057_v34 = vpop.permute.xlu0 %2059 }
 0x280   :  { %1797 = vrot.lane.b32.xlu1 %v4585_v41, %s4674_s16  ;;  %3728 = vmatmul.mubr.f32.gmra.mrb[28].mxu1 %v3219_v57  ;;  %v6124_v41 = vld [vmem:[#allocation2 + $0x159] sm:$0xff] }
 0x281   :  { %4287 = vmatprep.mubr.msk.f32.mxu1 %vm752_vm4, %v3222_v51  ;;  %1875 = vrot.lane.b32.xlu0 %v5820_v36, %s4674_s16  ;;  %v4586_v36 = vld [vmem:[#allocation2 + $0x28] sm:$0xff] }
 0x282   :  { %v6063_v54 = vpop.permute.xlu1 %1671  ;;  %v4588_v51 = vld [vmem:[#allocation2 + $0x21] sm:$0xff] }
 0x283   :  { %v6065_v56 = vpop.permute.xlu0 %1167 }
 0x284   :  { %1681 = vrot.lane.b32.xlu1 %v5989_v44, %s4673_s10 }
 0x285   :  { %1605 = vrot.lane.b32.xlu0 %v6067_v60, %s4673_s10 }
 0x286   :  { %v6073_v2 = vpop.permute.xlu1 %1865 }
 0x287   :  { %v6075_v18 = vpop.permute.xlu0 %2253 }
 0x288   :  { %2455 = vrot.lane.b32.xlu1 %v5788_v3, %s4676_s30 }
 0x289   :  { %2379 = vrot.lane.b32.xlu0 %v4586_v36, %s4676_s30 }
 0x28a   :  { %v6080_v40 = vpop.permute.xlu1 %1417 }
 0x28b   :  { %v6084_v35 = vpop.permute.xlu0 %1171 }
 0x28c   :  { %2185 = vrot.lane.b32.xlu1 %v6082_v29, %s4677_s4 }
 0x28d   :  { %1799 = vrot.lane.b32.xlu0 %v4587_v13, %s4674_s16 }
 0x28e   :  { %v6089_v50 = vpop.permute.xlu1 %1673 }
 0x28f   :  { %v6091_v17 = vpop.permute.xlu0 %1175 }
 0x290   :  { %2069 = vrot.lane.b32.xlu1 %v6093_v10, %s4675_s25 }
 0x291   :  { %1683 = vrot.lane.b32.xlu0 %v6034_v53, %s4673_s10 }
 0x292   :  { %v6099_v39 = vpop.permute.xlu1 %1169 }
 0x293   :  { %v6101_v61 = vpop.permute.xlu0 %1179 }
 0x294   :  { %7952 = vst [vmem:[#allocation30_spill] sm:$0xff] %v6101_v61  ;;  %1427 = vrot.lane.b32.xlu1 %v6041_v38, %s4671_s21 }
 0x295   :  { %2457 = vrot.lane.b32.xlu0 %v5831_v49, %s4676_s30 }
 0x296   :  { %v6107_v42 = vpop.permute.xlu1 %1173 }
 0x297   :  { %v6109_v45 = vpop.permute.xlu0 %1183 }
 0x298   :  { %7953 = vst [vmem:[#allocation31_spill] sm:$0xff] %v6109_v45  ;;  %2263 = vrot.lane.b32.xlu1 %v6111_v52, %s4677_s4 }
 0x299   :  { %2187 = vrot.lane.b32.xlu0 %v6113_v1, %s4677_s4 }
 0x29a   :  { %v6119_v12 = vpop.permute.xlu1 %1177 }
 0x29b   :  { %v6121_v57 = vpop.permute.xlu0 %1187 }
 0x29c   :  { %7954 = vst [vmem:[#allocation32_spill] sm:$0xff] %v6121_v57  ;;  %1993 = vrot.lane.b32.xlu1 %v4588_v51, %s4675_s25 }
 0x29d   :  { %2071 = vrot.lane.b32.xlu0 %v6124_v41, %s4675_s25 }
 0x29e   :  { %v6128_v13 = vpop.f32.mrb[0].mxu1  ;;  %v6130_v45 = vpop.permute.xlu1 %1181 }
 0x29f   :  { %7955 = vst [vmem:[#allocation33_spill] sm:$0xff] %v6128_v13  ;;  %7956 = vst [vmem:[#allocation34_spill] sm:$0xff] %v6130_v45  ;;  %v6132_v37 = vpop.permute.xlu0 %1191  ;;  %v3661_v32 = vpop.f32.mrb[1].mxu1  ;;  %v4589_v45 = vld [vmem:[#allocation2 + $0x30] sm:$0xff] }
 0x2a0   :  { %7957 = vst [vmem:[#allocation35_spill] sm:$0xff] %v6132_v37  ;;  %1877 = vrot.lane.b32.xlu1 %v5788_v3, %s4674_s16 }
 0x2a1   :  { %1429 = vrot.lane.b32.xlu0 %v6093_v10, %s4671_s21 }
 0x2a2   :  { %v6138_v57 = vpop.permute.xlu1 %1185 }
 0x2a3   :  { %7958 = vst [vmem:[#allocation36_spill] sm:$0xff] %v6138_v57  ;;  %v6140_v51 = vpop.permute.xlu0 %1195  ;;  %v4590_v57 = vld [vmem:[#allocation2 + $0x29] sm:$0xff] }
 0x2a4   :  { %7959 = vst [vmem:[#allocation37_spill] sm:$0xff] %v6140_v51  ;;  %1607 = vrot.lane.b32.xlu1 %v6082_v29, %s4673_s10 }
 0x2a5   :  { %2265 = vrot.lane.b32.xlu0 %v6142_v30, %s4677_s4 }
 0x2a6   :  { %v6148_v13 = vpop.f32.mrb[2].mxu1  ;;  %v6150_v32 = vpop.permute.xlu1 %1189 }
 0x2a7   :  { %7960 = vst [vmem:[#allocation38_spill] sm:$0xff] %v6148_v13  ;;  %7961 = vst [vmem:[#allocation39_spill] sm:$0xff] %v6150_v32  ;;  %v6152_v3 = vpop.permute.xlu0 %1199  ;;  %v3666_v37 = vpop.f32.mrb[3].mxu1 }
 0x2a8   :  { %7962 = vst [vmem:[#allocation40_spill] sm:$0xff] %v6152_v3  ;;  %2381 = vrot.lane.b32.xlu1 %v4589_v45, %s4676_s30  ;;  %v2605_v37 = vsel %vm752_vm4, %v5609_v7, %v5918_v5  ;;  %v6186_v3 = vld [vmem:[#allocation2 + $0x38] sm:$0xff] }
 0x2a9   :  { %1995 = vrot.lane.b32.xlu0 %v4590_v57, %s4675_s25  ;;  %v6192_v5 = vld [vmem:[#allocation2 + $0x37] sm:$0xff] }
 0x2aa   :  { %v6156_v51 = vpop.permute.xlu1 %1193 }
 0x2ab   :  { %7963 = vst [vmem:[#allocation41_spill] sm:$0xff] %v6156_v51  ;;  %v6158_v61 = vpop.permute.xlu0 %1203 }
 0x2ac   :  { %7964 = vst [vmem:[#allocation42_spill] sm:$0xff] %v6158_v61  ;;  %1801 = vrot.lane.b32.xlu1 %v4586_v36, %s4674_s16  ;;  %v2670_v36 = vsel %vm2635_vm5, %v2605_v37, %v6038_v22  ;;  %v3093_v37 = vld [vmem:[%s7917_s1 + $0x220] sm:$0xff] }
 0x2ad   :  { %1879 = vrot.lane.b32.xlu0 %v5831_v49, %s4674_s16 }
 0x2ae   :  { %v6163_v13 = vpop.permute.xlu1 %1197 }
 0x2af   :  { %7965 = vst [vmem:[#allocation43_spill] sm:$0xff] %v6163_v13  ;;  %v6165_v32 = vpop.permute.xlu0 %1207 }
 0x2b0   :  { %7966 = vst [vmem:[#allocation44_spill] sm:$0xff] %v6165_v32  ;;  %1685 = vrot.lane.b32.xlu1 %v6111_v52, %s4673_s10  ;;  %v2735_v32 = vsel %vm2700_vm6, %v2670_v36, %v6063_v54  ;;  %v3096_v36 = vld [vmem:[%s7917_s1 + $0x238] sm:$0xff] }
 0x2b1   :  { %1609 = vrot.lane.b32.xlu0 %v6113_v1, %s4673_s10  ;;  %v2800_v61 = vsel %vm2765_vm7, %v2735_v32, %v6073_v2 }
 0x2b2   :  { %v6174_v57 = vpop.permute.xlu1 %1201  ;;  %v2865_v54 = vsel %vm2830_vm8, %v2800_v61, %v6057_v34 }
 0x2b3   :  { %7967 = vst [vmem:[#allocation45_spill] sm:$0xff] %v6174_v57  ;;  %v6178_v49 = vpop.permute.xlu0 %1211  ;;  %v2930_v34 = vsel %vm2895_vm9, %v2865_v54, %v6075_v18  ;;  %v6232_v54 = vld [vmem:[#allocation2 + $0x16f] sm:$0xff] }
 0x2b4   :  { %7968 = vst [vmem:[#allocation46_spill] sm:$0xff] %v6178_v49  ;;  %2459 = vrot.lane.b32.xlu1 %v5799_v55, %s4676_s30  ;;  %v6213_v49 = vld [vmem:[#allocation2 + $0x161] sm:$0xff] }
 0x2b5   :  { %2383 = vrot.lane.b32.xlu0 %v6186_v3, %s4676_s30 }
 0x2b6   :  { %v6190_v7 = vpop.permute.xlu1 %1205 }
 0x2b7   :  { %7969 = vst [vmem:[#allocation47_spill] sm:$0xff] %v6190_v7  ;;  %v6194_v22 = vpop.permute.xlu0 %1215 }
 0x2b8   :  { %7970 = vst [vmem:[#allocation48_spill] sm:$0xff] %v6194_v22  ;;  %2189 = vrot.lane.b32.xlu1 %v6192_v5, %s4677_s4 }
 0x2b9   :  { %1803 = vrot.lane.b32.xlu0 %v4589_v45, %s4674_s16 }
 0x2ba   :  { %v6201_v2 = vpop.f32.mrb[4].mxu1  ;;  %v6203_v32 = vpop.permute.xlu1 %1209 }
 0x2bb   :  { %7971 = vst [vmem:[#allocation49_spill] sm:$0xff] %v6201_v2  ;;  %7972 = vst [vmem:[#allocation50_spill] sm:$0xff] %v6203_v32  ;;  %v2448_v61 = vpop.permute.xlu0 %2447  ;;  %v3671_v22 = vpop.f32.mrb[5].mxu1  ;;  %v3224_v32 = vmul.f32 %v3096_v36, %v5982_v46 }
 0x2bc   :  { %v2995_v45 = vsel %vm2960_vm10, %v2930_v34, %v2448_v61  ;;  %2073 = vrot.lane.b32.xlu1 %v6213_v49, %s4675_s25 }
 0x2bd   :  { %v3221_v2 = vmul.f32 %v3093_v37, %v2995_v45  ;;  %1687 = vrot.lane.b32.xlu0 %v6142_v30, %s4673_s10  ;;  %v6234_v37 = vld [vmem:[#allocation2 + $0x3f] sm:$0xff] }
 0x2be   :  { %v6221_v7 = vpop.permute.xlu1 %1213 }
 0x2bf   :  { %7973 = vst [vmem:[#allocation51_spill] sm:$0xff] %v6221_v7  ;;  %v2062_v57 = vpop.permute.xlu0 %2061  ;;  %v6223_v13 = vpop.f32.mrb[6].mxu1  ;;  %3733 = vmatmul.mubr.f32.gmra.mrb[30].mxu1 %v3221_v2  ;;  %v2606_v2 = vsel %vm752_vm4, %v5655_v58, %v5977_v16  ;;  %v3095_v58 = vld [vmem:[%s7917_s1 + $0x230] sm:$0xff] }
 0x2c0   :  { %7974 = vst [vmem:[#allocation52_spill] sm:$0xff] %v6223_v13  ;;  %v3676_v18 = vpop.f32.mrb[7].mxu1  ;;  %1431 = vrot.lane.b32.xlu1 %v6124_v41, %s4671_s21  ;;  %4288 = vmatprep.mubr.msk.f32.mxu1 %vm752_vm4, %v3224_v32  ;;  %v2671_v32 = vsel %vm2635_vm5, %v2606_v2, %v6080_v40  ;;  %v6252_v16 = vld [vmem:[#allocation2 + $0x31] sm:$0xff]  ;;  %v6256_v40 = vld [vmem:[#allocation2 + $0x169] sm:$0xff] }
 0x2c1   :  { %2461 = vrot.lane.b32.xlu0 %v5848_v47, %s4676_s30  ;;  %v2736_v36 = vsel %vm2700_vm6, %v2671_v32, %v6089_v50  ;;  %v3098_v50 = vld [vmem:[%s7917_s1 + $0x248] sm:$0xff] }
 0x2c2   :  { %v6230_v22 = vpop.permute.xlu1 %1217 }
 0x2c3   :  { %7975 = vst [vmem:[#allocation53_spill] sm:$0xff] %v6230_v22  ;;  %v2256_v46 = vpop.permute.xlu0 %2255 }
 0x2c4   :  { %2267 = vrot.lane.b32.xlu1 %v6232_v54, %s4677_s4 }
 0x2c5   :  { %2191 = vrot.lane.b32.xlu0 %v6234_v37, %s4677_s4 }
 0x2c6   :  { %v1868_v34 = vpop.permute.xlu1 %1867 }
 0x2c7   :  { %v2801_v61 = vsel %vm2765_vm7, %v2736_v36, %v1868_v34  ;;  %v2450_v45 = vpop.permute.xlu0 %2449 }
 0x2c8   :  { %v2866_v18 = vsel %vm2830_vm8, %v2801_v61, %v2062_v57  ;;  %1997 = vrot.lane.b32.xlu1 %v6252_v16, %s4675_s25  ;;  %v3226_v61 = vmul.f32 %v3098_v50, %v6041_v38 }
 0x2c9   :  { %v2931_v2 = vsel %vm2895_vm9, %v2866_v18, %v2256_v46  ;;  %2075 = vrot.lane.b32.xlu0 %v6256_v40, %s4675_s25 }
 0x2ca   :  { %v2996_v57 = vsel %vm2960_vm10, %v2931_v2, %v2450_v45  ;;  %v1420_v32 = vpop.permute.xlu1 %1419  ;;  %v2607_v45 = vsel %vm752_vm4, %v5689_v9, %v5993_v48  ;;  %v6274_v2 = vld [vmem:[#allocation2 + $0x177] sm:$0xff]  ;;  %v3097_v9 = vld [vmem:[%s7917_s1 + $0x240] sm:$0xff] }
 0x2cb   :  { %v3223_v36 = vmul.f32 %v3095_v58, %v2996_v57  ;;  %v2064_v34 = vpop.permute.xlu0 %2063  ;;  %7976 = vst [vmem:[#allocation54_spill] sm:$0xff] %v6274_v2  ;;  %v2672_v38 = vsel %vm2635_vm5, %v2607_v45, %v1420_v32  ;;  %v4593_v48 = vld [vmem:[#allocation2 + $0x40] sm:$0xff]  ;;  %v3100_v32 = vld [vmem:[%s7917_s1 + $0x258] sm:$0xff] }
 0x2cc   :  { %1881 = vrot.lane.b32.xlu1 %v5799_v55, %s4674_s16  ;;  %v3228_v13 = vmul.f32 %v3100_v32, %v6093_v10 }
 0x2cd   :  { %3738 = vmatmul.mubr.f32.gmra.mrb[32].mxu1 %v3223_v36  ;;  %1433 = vrot.lane.b32.xlu0 %v6213_v49, %s4671_s21 }
 0x2ce   :  { %4289 = vmatprep.mubr.msk.f32.mxu1 %vm752_vm4, %v3226_v61  ;;  %v1676_v46 = vpop.permute.xlu1 %1675 }
 0x2cf   :  { %v2258_v18 = vpop.permute.xlu0 %2257  ;;  %v2737_v55 = vsel %vm2700_vm6, %v2672_v38, %v1676_v46  ;;  %v6292_v46 = vld [vmem:[#allocation2 + $0x39] sm:$0xff] }
 0x2d0   :  { %1611 = vrot.lane.b32.xlu1 %v6192_v5, %s4673_s10 }
 0x2d1   :  { %2269 = vrot.lane.b32.xlu0 %v6274_v2, %s4677_s4 }
 0x2d2   :  { %v1870_v58 = vpop.permute.xlu1 %1869 }
 0x2d3   :  { %v2802_v50 = vsel %vm2765_vm7, %v2737_v55, %v1870_v58  ;;  %v2452_v57 = vpop.permute.xlu0 %2451 }
 0x2d4   :  { %v2867_v36 = vsel %vm2830_vm8, %v2802_v50, %v2064_v34  ;;  %2385 = vrot.lane.b32.xlu1 %v4593_v48, %s4676_s30 }
 0x2d5   :  { %v2932_v61 = vsel %vm2895_vm9, %v2867_v36, %v2258_v18  ;;  %1999 = vrot.lane.b32.xlu0 %v6292_v46, %s4675_s25 }
 0x2d6   :  { %v2997_v34 = vsel %vm2960_vm10, %v2932_v61, %v2452_v57  ;;  %v6297_v45 = vpop.f32.mrb[8].mxu1  ;;  %v1422_v38 = vpop.permute.xlu1 %1421 }
 0x2d7   :  { %7977 = vst [vmem:[#allocation55_spill] sm:$0xff] %v6297_v45  ;;  %v3225_v55 = vmul.f32 %v3097_v9, %v2997_v34  ;;  %v2066_v58 = vpop.permute.xlu0 %2065  ;;  %v3681_v50 = vpop.f32.mrb[9].mxu1  ;;  %v2608_v9 = vsel %vm752_vm4, %v5739_v33, %v6054_v23  ;;  %v3099_v33 = vld [vmem:[%s7917_s1 + $0x250] sm:$0xff]  ;;  %v3102_v23 = vld [vmem:[%s7917_s1 + $0x268] sm:$0xff]  ;;  %v6369_v45 = vld [vmem:[#allocation2 + $0x179] sm:$0xff] }
 0x2d8   :  { %1805 = vrot.lane.b32.xlu1 %v6186_v3, %s4674_s16  ;;  %v2673_v10 = vsel %vm2635_vm5, %v2608_v9, %v1422_v38 }
 0x2d9   :  { %3743 = vmatmul.mubr.f32.gmra.mrb[34].mxu1 %v3225_v55  ;;  %1883 = vrot.lane.b32.xlu0 %v5848_v47, %s4674_s16  ;;  %v6327_v55 = vld [vmem:[#allocation2 + $0x48] sm:$0xff] }
 0x2da   :  { %4290 = vmatprep.mubr.msk.f32.mxu1 %vm752_vm4, %v3228_v13  ;;  %v1678_v18 = vpop.permute.xlu1 %1677 }
 0x2db   :  { %v2260_v36 = vpop.permute.xlu0 %2259  ;;  %v6305_v57 = vpop.f32.mrb[10].mxu1  ;;  %v2738_v47 = vsel %vm2700_vm6, %v2673_v10, %v1678_v18  ;;  %v6332_v18 = vld [vmem:[#allocation2 + $0x47] sm:$0xff] }
 0x2dc   :  { %7978 = vst [vmem:[#allocation56_spill] sm:$0xff] %v6305_v57  ;;  %v3686_v61 = vpop.f32.mrb[11].mxu1  ;;  %1689 = vrot.lane.b32.xlu1 %v6232_v54, %s4673_s10  ;;  %v6365_v57 = vld [vmem:[#allocation2 + $0x41] sm:$0xff] }
 0x2dd   :  { %1613 = vrot.lane.b32.xlu0 %v6234_v37, %s4673_s10 }
 0x2de   :  { %v1872_v13 = vpop.permute.xlu1 %1871 }
 0x2df   :  { %v2803_v3 = vsel %vm2765_vm7, %v2738_v47, %v1872_v13  ;;  %v2454_v32 = vpop.permute.xlu0 %2453  ;;  %v3230_v47 = vmul.f32 %v3102_v23, %v6124_v41 }
 0x2e0   :  { %v2868_v34 = vsel %vm2830_vm8, %v2803_v3, %v2066_v58  ;;  %2463 = vrot.lane.b32.xlu1 %v5817_v14, %s4676_s30 }
 0x2e1   :  { %v2933_v38 = vsel %vm2895_vm9, %v2868_v34, %v2260_v36  ;;  %2387 = vrot.lane.b32.xlu0 %v6327_v55, %s4676_s30 }
 0x2e2   :  { %v2998_v58 = vsel %vm2960_vm10, %v2933_v38, %v2454_v32  ;;  %v1424_v50 = vpop.permute.xlu1 %1423  ;;  %v6343_v32 = vld [vmem:[#allocation2 + $0x171] sm:$0xff] }
 0x2e3   :  { %v3227_v9 = vmul.f32 %v3099_v33, %v2998_v58  ;;  %v6334_v61 = vpop.f32.mrb[12].mxu1  ;;  %v1604_v10 = vpop.permute.xlu0 %1603  ;;  %v6353_v33 = vld [vmem:[#allocation2 + $0x17f] sm:$0xff]  ;;  %v6355_v38 = vld [vmem:[#allocation2 + $0x4f] sm:$0xff] }
 0x2e4   :  { %7979 = vst [vmem:[#allocation57_spill] sm:$0xff] %v6334_v61  ;;  %v3691_v13 = vpop.f32.mrb[13].mxu1  ;;  %2193 = vrot.lane.b32.xlu1 %v6332_v18, %s4677_s4 }
 0x2e5   :  { %3748 = vmatmul.mubr.f32.gmra.mrb[36].mxu1 %v3227_v9  ;;  %1807 = vrot.lane.b32.xlu0 %v4593_v48, %s4674_s16  ;;  %v823_v9 = vld [vmem:[#allocation2 + $0x7] sm:$0xff] }
 0x2e6   :  { %4291 = vmatprep.mubr.msk.f32.mxu1 %vm752_vm4, %v3230_v47  ;;  %v1680_v36 = vpop.permute.xlu1 %1679  ;;  %v2609_v47 = vsel %vm752_vm4, %v5771_v8, %v6065_v56  ;;  %v2571_v7 = vsel %vm752_vm4, %v823_v9, %v5220_v6  ;;  %v3101_v6 = vld [vmem:[%s7917_s1 + $0x260] sm:$0xff] }
 0x2e7   :  { %v6341_v3 = vpop.permute.xlu0 %1425  ;;  %v2674_v61 = vsel %vm2635_vm5, %v2609_v47, %v1424_v50 }
 0x2e8   :  { %2077 = vrot.lane.b32.xlu1 %v6343_v32, %s4675_s25  ;;  %v2739_v22 = vsel %vm2700_vm6, %v2674_v61, %v1680_v36  ;;  %v2636_v61 = vsel %vm2635_vm5, %v2571_v7, %v5241_v19 }
 0x2e9   :  { %1691 = vrot.lane.b32.xlu0 %v6274_v2, %s4673_s10 }
 0x2ea   :  { %v1874_v41 = vpop.permute.xlu1 %1873 }
 0x2eb   :  { %v2262_v34 = vpop.permute.xlu0 %2261  ;;  %v2804_v8 = vsel %vm2765_vm7, %v2739_v22, %v1874_v41  ;;  %v3104_v22 = vld [vmem:[%s7917_s1 + $0x278] sm:$0xff] }
 0x2ec   :  { %1435 = vrot.lane.b32.xlu1 %v6256_v40, %s4671_s21 }
 0x2ed   :  { %2465 = vrot.lane.b32.xlu0 %v5854_v59, %s4676_s30 }
 0x2ee   :  { %v2068_v48 = vpop.permute.xlu1 %2067 }
 0x2ef   :  { %v1992_v23 = vpop.permute.xlu0 %1991  ;;  %v2869_v47 = vsel %vm2830_vm8, %v2804_v8, %v2068_v48  ;;  %v6398_v48 = vld [vmem:[#allocation2 + $0x187] sm:$0xff]  ;;  %v3232_v8 = vmul.f32 %v3104_v22, %v6213_v49 }
 0x2f0   :  { %2271 = vrot.lane.b32.xlu1 %v6353_v33, %s4677_s4  ;;  %v2934_v41 = vsel %vm2895_vm9, %v2869_v47, %v2262_v34  ;;  %v3028_v47 = vld [vmem:[%s7917_s1 + $0x18] sm:$0xff] }
 0x2f1   :  { %2195 = vrot.lane.b32.xlu0 %v6355_v38, %s4677_s4 }
 0x2f2   :  { %v1798_v58 = vpop.permute.xlu1 %1797 }
 0x2f3   :  { %v1876_v13 = vpop.permute.xlu0 %1875 }
 0x2f4   :  { %2001 = vrot.lane.b32.xlu1 %v6365_v57, %s4675_s25 }
 0x2f5   :  { %2079 = vrot.lane.b32.xlu0 %v6369_v45, %s4675_s25 }
 0x2f6   :  { %v6377_v56 = vpop.f32.mrb[14].mxu1  ;;  %v1682_v50 = vpop.permute.xlu1 %1681 }
 0x2f7   :  { %v3696_v51 = vpop.f32.mrb[15].mxu1  ;;  %v6380_v2 = vpop.permute.xlu0 %1605 }
 0x2f8   :  { %1885 = vrot.lane.b32.xlu1 %v5817_v14, %s4674_s16  ;;  %v2701_v51 = vsel %vm2700_vm6, %v2636_v61, %v1604_v10  ;;  %v3025_v10 = vld [vmem:[%s7917_s1] sm:$0xff] }
 0x2f9   :  { %1437 = vrot.lane.b32.xlu0 %v6343_v32, %s4671_s21  ;;  %v2766_v14 = vsel %vm2765_vm7, %v2701_v51, %v1798_v58 }
 0x2fa   :  { %v2456_v36 = vpop.permute.xlu1 %2455  ;;  %v2831_v58 = vsel %vm2830_vm8, %v2766_v14, %v1992_v23  ;;  %v6418_v23 = vld [vmem:[#allocation2 + $0x49] sm:$0xff]  ;;  %v3156_v14 = vmul.f32 %v6252_v16, %v3028_v47 }
 0x2fb   :  { %v2999_v19 = vsel %vm2960_vm10, %v2934_v41, %v2456_v36  ;;  %v2380_v7 = vpop.permute.xlu0 %2379  ;;  %v4597_v36 = vld [vmem:[#allocation2 + $0x50] sm:$0xff] }
 0x2fc   :  { %v3229_v9 = vmul.f32 %v3101_v6, %v2999_v19  ;;  %1615 = vrot.lane.b32.xlu1 %v6332_v18, %s4673_s10 }
 0x2fd   :  { %2273 = vrot.lane.b32.xlu0 %v6398_v48, %s4677_s4 }
 0x2fe   :  { %v2186_v34 = vpop.permute.xlu1 %2185  ;;  %3753 = vmatmul.mubr.f32.gmra.mrb[38].mxu1 %v3229_v9 }
 0x2ff   :  { %v2896_v61 = vsel %vm2895_vm9, %v2831_v58, %v2186_v34  ;;  %v6413_v6 = vpop.f32.mrb[16].mxu1  ;;  %4292 = vmatprep.mubr.msk.f32.mxu1 %vm752_vm4, %v3232_v8  ;;  %v1800_v49 = vpop.permute.xlu0 %1799 }
 0x300   :  { %v2961_v22 = vsel %vm2960_vm10, %v2896_v61, %v2380_v7  ;;  %v3701_v51 = vpop.f32.mrb[17].mxu1  ;;  %2389 = vrot.lane.b32.xlu1 %v4597_v36, %s4676_s30  ;;  %v2610_v7 = vsel %vm752_vm4, %v5924_v15, %v6099_v39 }
 0x301   :  { %v3153_v41 = vmul.f32 %v3025_v10, %v2961_v22  ;;  %2003 = vrot.lane.b32.xlu0 %v6418_v23, %s4675_s25  ;;  %v2675_v8 = vsel %vm2635_vm5, %v2610_v7, %v6341_v3  ;;  %v3103_v3 = vld [vmem:[%s7917_s1 + $0x270] sm:$0xff] }
 0x302   :  { %v2070_v19 = vpop.permute.xlu1 %2069  ;;  %v2740_v16 = vsel %vm2700_vm6, %v2675_v8, %v1682_v50  ;;  %v6457_v51 = vld [vmem:[#allocation2 + $0x57] sm:$0xff] }
 0x303   :  { %3563 = vmatmul.mubr.f32.vlgmr.msra.gmra.mrb[64].mxu0 %v3153_v41  ;;  %v6423_v9 = vpop.permute.xlu0 %1683  ;;  %v2805_v15 = vsel %vm2765_vm7, %v2740_v16, %v1876_v13  ;;  %v6469_v16 = vld [vmem:[#allocation2 + $0x181] sm:$0xff] }
 0x304   :  { %1809 = vrot.lane.b32.xlu1 %v6327_v55, %s4674_s16  ;;  %4254 = vmatprep.mubr.msk.f32.mxu0 %vm752_vm4, %v3156_v14  ;;  %v2870_v39 = vsel %vm2830_vm8, %v2805_v15, %v2070_v19  ;;  %v824_v14 = vld [vmem:[#allocation2 + $0xf] sm:$0xff] }
 0x305   :  { %1887 = vrot.lane.b32.xlu0 %v5854_v59, %s4674_s16  ;;  %v3106_v59 = vld [vmem:[%s7917_s1 + $0x288] sm:$0xff]  ;;  %v2572_v7 = vsel %vm752_vm4, %v824_v14, %v5228_v11 }
 0x306   :  { %v1428_v10 = vpop.permute.xlu1 %1427  ;;  %v3234_v61 = vmul.f32 %v3106_v59, %v6256_v40 }
 0x307   :  { %v2458_v34 = vpop.permute.xlu0 %2457 }
 0x308   :  { %1693 = vrot.lane.b32.xlu1 %v6353_v33, %s4673_s10 }
 0x309   :  { %1617 = vrot.lane.b32.xlu0 %v6355_v38, %s4673_s10  ;;  %v6452_v38 = vld [vmem:[#allocation2 + $0x58] sm:$0xff] }
 0x30a   :  { %v2264_v55 = vpop.permute.xlu1 %2263 }
 0x30b   :  { %v2935_v50 = vsel %vm2895_vm9, %v2870_v39, %v2264_v55  ;;  %v2188_v58 = vpop.permute.xlu0 %2187 }
 0x30c   :  { %v3000_v47 = vsel %vm2960_vm10, %v2935_v50, %v2458_v34  ;;  %2467 = vrot.lane.b32.xlu1 %v5828_v62, %s4676_s30  ;;  %v2637_v34 = vsel %vm2635_vm5, %v2572_v7, %v5262_v26  ;;  %v3027_v26 = vld [vmem:[%s7917_s1 + $0x10] sm:$0xff] }
 0x30d   :  { %2391 = vrot.lane.b32.xlu0 %v6452_v38, %s4676_s30  ;;  %v3231_v13 = vmul.f32 %v3103_v3, %v3000_v47  ;;  %v6492_v3 = vld [vmem:[#allocation2 + $0x18f] sm:$0xff] }
 0x30e   :  { %v1994_v22 = vpop.permute.xlu1 %1993 }
 0x30f   :  { %3758 = vmatmul.mubr.f32.gmra.mrb[40].mxu1 %v3231_v13  ;;  %v2072_v41 = vpop.permute.xlu0 %2071  ;;  %v6497_v13 = vld [vmem:[#allocation2 + $0x5f] sm:$0xff] }
 0x310   :  { %2197 = vrot.lane.b32.xlu1 %v6457_v51, %s4677_s4  ;;  %4293 = vmatprep.mubr.msk.f32.mxu1 %vm752_vm4, %v3234_v61 }
 0x311   :  { %1811 = vrot.lane.b32.xlu0 %v4597_v36, %s4674_s16  ;;  %v2702_v36 = vsel %vm2700_vm6, %v2637_v34, %v6380_v2  ;;  %v3030_v2 = vld [vmem:[%s7917_s1 + $0x28] sm:$0xff]  ;;  %v6509_v34 = vld [vmem:[#allocation2 + $0x51] sm:$0xff] }
 0x312   :  { %v6463_v62 = vpop.f32.mrb[18].mxu1  ;;  %v1878_v19 = vpop.permute.xlu1 %1877  ;;  %v2767_v15 = vsel %vm2765_vm7, %v2702_v36, %v1800_v49 }
 0x313   :  { %v3706_v40 = vpop.f32.mrb[19].mxu1  ;;  %v6467_v8 = vpop.permute.xlu0 %1429  ;;  %v2832_v39 = vsel %vm2830_vm8, %v2767_v15, %v1994_v22  ;;  %v3158_v22 = vmul.f32 %v6292_v46, %v3030_v2  ;;  %v6513_v46 = vld [vmem:[#allocation2 + $0x189] sm:$0xff] }
 0x314   :  { %2081 = vrot.lane.b32.xlu1 %v6469_v16, %s4675_s25  ;;  %v2897_v49 = vsel %vm2895_vm9, %v2832_v39, %v2188_v58  ;;  %v2611_v58 = vsel %vm752_vm4, %v5960_v0, %v6084_v35  ;;  %v2573_v35 = vsel %vm752_vm4, %v6005_v63, %v5255_v24  ;;  %v4601_v39 = vld [vmem:[#allocation2 + $0x188] sm:$0xff]  ;;  %v3105_v24 = vld [vmem:[%s7917_s1 + $0x280] sm:$0xff]  ;;  %v3108_v63 = vld [vmem:[%s7917_s1 + $0x298] sm:$0xff] }
 0x315   :  { %1695 = vrot.lane.b32.xlu0 %v6398_v48, %s4673_s10  ;;  %v2676_v14 = vsel %vm2635_vm5, %v2611_v58, %v1428_v10  ;;  %v3032_v58 = vld [vmem:[%s7917_s1 + $0x38] sm:$0xff] }
 0x316   :  { %v1608_v11 = vpop.permute.xlu1 %1607  ;;  %v2741_v0 = vsel %vm2700_vm6, %v2676_v14, %v6423_v9 }
 0x317   :  { %v2266_v55 = vpop.permute.xlu0 %2265  ;;  %v2806_v10 = vsel %vm2765_vm7, %v2741_v0, %v1878_v19  ;;  %v4602_v0 = vld [vmem:[#allocation2 + $0x60] sm:$0xff] }
 0x318   :  { %1439 = vrot.lane.b32.xlu1 %v6369_v45, %s4671_s21  ;;  %v2871_v9 = vsel %vm2830_vm8, %v2806_v10, %v2072_v41  ;;  %v3160_v10 = vmul.f32 %v6365_v57, %v3032_v58  ;;  %v4604_v57 = vld [vmem:[#allocation2 + $0x190] sm:$0xff]  ;;  %v6600_v58 = vld [vmem:[#allocation2 + $0x67] sm:$0xff] }
 0x319   :  { %2469 = vrot.lane.b32.xlu0 %v5861_v4, %s4676_s30  ;;  %v2936_v2 = vsel %vm2895_vm9, %v2871_v9, %v2266_v55 }
 0x31a   :  { %v2382_v48 = vpop.permute.xlu1 %2381 }
 0x31b   :  { %v2962_v59 = vsel %vm2960_vm10, %v2897_v49, %v2382_v48  ;;  %v6495_v50 = vpop.f32.mrb[20].mxu1  ;;  %v1996_v47 = vpop.permute.xlu0 %1995 }
 0x31c   :  { %v3155_v4 = vmul.f32 %v3027_v26, %v2962_v59  ;;  %v3711_v61 = vpop.f32.mrb[21].mxu1  ;;  %2275 = vrot.lane.b32.xlu1 %v6492_v3, %s4677_s4  ;;  %v2638_v26 = vsel %vm2635_vm5, %v2573_v35, %v5250_v21  ;;  %v6541_v59 = vld [vmem:[#allocation2 + $0x197] sm:$0xff] }
 0x31d   :  { %2199 = vrot.lane.b32.xlu0 %v6497_v13, %s4677_s4  ;;  %v2703_v19 = vsel %vm2700_vm6, %v2638_v26, %v1608_v11  ;;  %v3236_v61 = vmul.f32 %v3108_v63, %v6343_v32  ;;  %v2612_v63 = vsel %vm752_vm4, %v5989_v44, %v6107_v42 }
 0x31e   :  { %v1802_v7 = vpop.permute.xlu1 %1801  ;;  %3568 = vmatmul.mubr.f32.gmra.mrb[66].mxu0 %v3155_v4 }
 0x31f   :  { %4255 = vmatprep.mubr.msk.f32.mxu0 %vm752_vm4, %v3158_v22  ;;  %v1880_v40 = vpop.permute.xlu0 %1879  ;;  %v2768_v21 = vsel %vm2765_vm7, %v2703_v19, %v1802_v7  ;;  %v3029_v22 = vld [vmem:[%s7917_s1 + $0x20] sm:$0xff]  ;;  %v2677_v19 = vsel %vm2635_vm5, %v2612_v63, %v6467_v8  ;;  %v3107_v8 = vld [vmem:[%s7917_s1 + $0x290] sm:$0xff] }
 0x320   :  { %2005 = vrot.lane.b32.xlu1 %v6509_v34, %s4675_s25  ;;  %v2833_v55 = vsel %vm2830_vm8, %v2768_v21, %v1996_v47  ;;  %v6559_v47 = vld [vmem:[#allocation2 + $0x59] sm:$0xff] }
 0x321   :  { %2083 = vrot.lane.b32.xlu0 %v6513_v46, %s4675_s25 }
 0x322   :  { %v1686_v36 = vpop.permute.xlu1 %1685 }
 0x323   :  { %v6523_v15 = vpop.permute.xlu0 %1609 }
 0x324   :  { %1889 = vrot.lane.b32.xlu1 %v4601_v39, %s4674_s16 }
 0x325   :  { %1441 = vrot.lane.b32.xlu0 %v6469_v16, %s4671_s21 }
 0x326   :  { %v2460_v48 = vpop.permute.xlu1 %2459 }
 0x327   :  { %v3001_v41 = vsel %vm2960_vm10, %v2936_v2, %v2460_v48  ;;  %v2384_v49 = vpop.permute.xlu0 %2383  ;;  %v2742_v2 = vsel %vm2700_vm6, %v2677_v19, %v1686_v36  ;;  %v3110_v36 = vld [vmem:[%s7917_s1 + $0x2a8] sm:$0xff]  ;;  %v6625_v19 = vld [vmem:[#allocation2 + $0x1a0] sm:$0xff] }
 0x328   :  { %v3233_v4 = vmul.f32 %v3105_v24, %v3001_v41  ;;  %1619 = vrot.lane.b32.xlu1 %v6457_v51, %s4673_s10  ;;  %v2807_v44 = vsel %vm2765_vm7, %v2742_v2, %v1880_v40 }
 0x329   :  { %2277 = vrot.lane.b32.xlu0 %v6541_v59, %s4677_s4 }
 0x32a   :  { %v2190_v11 = vpop.permute.xlu1 %2189  ;;  %3763 = vmatmul.mubr.f32.gmra.mrb[42].mxu1 %v3233_v4 }
 0x32b   :  { %v2898_v14 = vsel %vm2895_vm9, %v2833_v55, %v2190_v11  ;;  %4294 = vmatprep.mubr.msk.f32.mxu1 %vm752_vm4, %v3236_v61  ;;  %v1804_v32 = vpop.permute.xlu0 %1803  ;;  %v6595_v61 = vld [vmem:[#allocation2 + $0x68] sm:$0xff]  ;;  %v3238_v55 = vmul.f32 %v3110_v36, %v6369_v45  ;;  %v6611_v45 = vld [vmem:[#allocation2 + $0x191] sm:$0xff] }
 0x32c   :  { %v2963_v7 = vsel %vm2960_vm10, %v2898_v14, %v2384_v49  ;;  %2393 = vrot.lane.b32.xlu1 %v4602_v0, %s4676_s30 }
 0x32d   :  { %2007 = vrot.lane.b32.xlu0 %v6559_v47, %s4675_s25  ;;  %v3157_v35 = vmul.f32 %v3029_v22, %v2963_v7 }
 0x32e   :  { %v6564_v39 = vpop.f32.mrb[22].mxu1  ;;  %v2074_v26 = vpop.permute.xlu1 %2073 }
 0x32f   :  { %v3716_v9 = vpop.f32.mrb[23].mxu1  ;;  %v6566_v24 = vpop.permute.xlu0 %1687  ;;  %3573 = vmatmul.mubr.f32.gmra.mrb[68].mxu0 %v3157_v35  ;;  %v2872_v42 = vsel %vm2830_vm8, %v2807_v44, %v2074_v26  ;;  %v2574_v35 = vsel %vm752_vm4, %v6067_v60, %v5248_v20  ;;  %v6639_v44 = vld [vmem:[#allocation2 + $0x6f] sm:$0xff] }
 0x330   :  { %1813 = vrot.lane.b32.xlu1 %v6452_v38, %s4674_s16  ;;  %4256 = vmatprep.mubr.msk.f32.mxu0 %vm752_vm4, %v3160_v10  ;;  %v2639_v26 = vsel %vm2635_vm5, %v2574_v35, %v5275_v31  ;;  %v3031_v31 = vld [vmem:[%s7917_s1 + $0x30] sm:$0xff]  ;;  %v2575_v35 = vsel %vm752_vm4, %v6082_v29, %v5257_v25  ;;  %v3112_v25 = vld [vmem:[%s7917_s1 + $0x2b8] sm:$0xff] }
 0x331   :  { %1891 = vrot.lane.b32.xlu0 %v4604_v57, %s4674_s16  ;;  %v2704_v9 = vsel %vm2700_vm6, %v2639_v26, %v6523_v15  ;;  %v3034_v15 = vld [vmem:[%s7917_s1 + $0x48] sm:$0xff]  ;;  %v6636_v57 = vld [vmem:[#allocation2 + $0x19f] sm:$0xff] }
 0x332   :  { %v1432_v48 = vpop.permute.xlu1 %1431 }
 0x333   :  { %v2462_v21 = vpop.permute.xlu0 %2461 }
 0x334   :  { %1697 = vrot.lane.b32.xlu1 %v6492_v3, %s4673_s10 }
 0x335   :  { %1621 = vrot.lane.b32.xlu0 %v6497_v13, %s4673_s10  ;;  %v4605_v13 = vld [vmem:[#allocation2 + $0x198] sm:$0xff] }
 0x336   :  { %v2268_v38 = vpop.permute.xlu1 %2267 }
 0x337   :  { %v2937_v41 = vsel %vm2895_vm9, %v2872_v42, %v2268_v38  ;;  %v6591_v49 = vpop.f32.mrb[24].mxu1  ;;  %v2192_v3 = vpop.permute.xlu0 %2191  ;;  %v3162_v38 = vmul.f32 %v6418_v23, %v3034_v15  ;;  %v6657_v23 = vld [vmem:[#allocation2 + $0x199] sm:$0xff]  ;;  %v6691_v15 = vld [vmem:[#allocation2 + $0x1a7] sm:$0xff] }
 0x338   :  { %v3002_v40 = vsel %vm2960_vm10, %v2937_v41, %v2462_v21  ;;  %v3721_v4 = vpop.f32.mrb[25].mxu1  ;;  %2471 = vrot.lane.b32.xlu1 %v4605_v13, %s4676_s30 }
 0x339   :  { %2395 = vrot.lane.b32.xlu0 %v6595_v61, %s4676_s30  ;;  %v3235_v11 = vmul.f32 %v3107_v8, %v3002_v40  ;;  %v2613_v8 = vsel %vm752_vm4, %v6034_v53, %v6091_v17 }
 0x33a   :  { %v1998_v22 = vpop.permute.xlu1 %1997  ;;  %v2678_v36 = vsel %vm2635_vm5, %v2613_v8, %v1432_v48 }
 0x33b   :  { %3768 = vmatmul.mubr.f32.gmra.mrb[44].mxu1 %v3235_v11  ;;  %v2076_v14 = vpop.permute.xlu0 %2075  ;;  %v6653_v11 = vld [vmem:[#allocation2 + $0x61] sm:$0xff]  ;;  %v2743_v53 = vsel %vm2700_vm6, %v2678_v36, %v6566_v24  ;;  %v2640_v24 = vsel %vm2635_vm5, %v2575_v35, %v5264_v27  ;;  %v6714_v35 = vld [vmem:[#allocation2 + $0x69] sm:$0xff] }
 0x33c   :  { %2201 = vrot.lane.b32.xlu1 %v6600_v58, %s4677_s4  ;;  %4295 = vmatprep.mubr.msk.f32.mxu1 %vm752_vm4, %v3238_v55  ;;  %v6667_v55 = vld [vmem:[%s7919_s5] ss:$0 sm:$0xff] }
 0x33d   :  { %1815 = vrot.lane.b32.xlu0 %v4602_v0, %s4674_s16  ;;  %v2769_v0 = vsel %vm2765_vm7, %v2704_v9, %v1804_v32  ;;  %v3109_v9 = vld [vmem:[%s7917_s1 + $0x2a0] sm:$0xff] }
 0x33e   :  { %v1882_v7 = vpop.permute.xlu1 %1881  ;;  %v2834_v20 = vsel %vm2830_vm8, %v2769_v0, %v1998_v22  ;;  %v3033_v36 = vld [vmem:[%s7917_s1 + $0x40] sm:$0xff] }
 0x33f   :  { %v6609_v10 = vpop.permute.xlu0 %1433  ;;  %v2899_v32 = vsel %vm2895_vm9, %v2834_v20, %v2192_v3  ;;  %v2808_v17 = vsel %vm2765_vm7, %v2743_v53, %v1882_v7  ;;  %v4609_v53 = vld [vmem:[#allocation2 + $0x70] sm:$0xff] }
 0x340   :  { %2085 = vrot.lane.b32.xlu1 %v6611_v45, %s4675_s25  ;;  %v2873_v7 = vsel %vm2830_vm8, %v2808_v17, %v2076_v14 }
 0x341   :  { %1699 = vrot.lane.b32.xlu0 %v6541_v59, %s4673_s10 }
 0x342   :  { %v1612_v63 = vpop.permute.xlu1 %1611 }
 0x343   :  { %v2270_v60 = vpop.permute.xlu0 %2269  ;;  %v2705_v29 = vsel %vm2700_vm6, %v2640_v24, %v1612_v63  ;;  %v3240_v63 = vmul.f32 %v3112_v25, %v6469_v16  ;;  %v2614_v25 = vsel %vm752_vm4, %v6111_v52, %v6119_v12 }
 0x344   :  { %1443 = vrot.lane.b32.xlu1 %v6513_v46, %s4671_s21 }
 0x345   :  { %2473 = vrot.lane.b32.xlu0 %v6625_v19, %s4676_s30 }
 0x346   :  { %v2386_v59 = vpop.permute.xlu1 %2385 }
 0x347   :  { %v2964_v2 = vsel %vm2960_vm10, %v2899_v32, %v2386_v59  ;;  %v2000_v21 = vpop.permute.xlu0 %1999 }
 0x348   :  { %v3159_v42 = vmul.f32 %v3031_v31, %v2964_v2  ;;  %2279 = vrot.lane.b32.xlu1 %v6636_v57, %s4677_s4 }
 0x349   :  { %2203 = vrot.lane.b32.xlu0 %v6639_v44, %s4677_s4 }
 0x34a   :  { %v3724_v41 = vpop.f32.mrb[26].mxu1  ;;  %v1806_v3 = vpop.permute.xlu1 %1805  ;;  %3578 = vmatmul.mubr.f32.gmra.mrb[70].mxu0 %v3159_v42 }
 0x34b   :  { %v3726_v40 = vpop.f32.mrb[27].mxu1  ;;  %v6650_v4 = vpop.permute.xlu0 %1883  ;;  %4257 = vmatprep.mubr.msk.f32.mxu0 %vm752_vm4, %v3162_v38  ;;  %v3725_v26 = vadd.f32 %v6667_v55, %v3724_v41  ;;  %v2770_v27 = vsel %vm2765_vm7, %v2705_v29, %v1806_v3  ;;  %v3036_v41 = vld [vmem:[%s7917_s1 + $0x58] sm:$0xff]  ;;  %v2679_v29 = vsel %vm2635_vm5, %v2614_v25, %v6609_v10  ;;  %v3111_v10 = vld [vmem:[%s7917_s1 + $0x2b0] sm:$0xff] }
 0x34c   :  { %2009 = vrot.lane.b32.xlu1 %v6653_v11, %s4675_s25  ;;  %v2835_v8 = vsel %vm2830_vm8, %v2770_v27, %v2000_v21  ;;  %v3164_v24 = vmul.f32 %v6509_v34, %v3036_v41  ;;  %v6775_v41 = vld [vmem:[#allocation2 + $0x1b0] sm:$0xff] }
 0x34d   :  { %2087 = vrot.lane.b32.xlu0 %v6657_v23, %s4675_s25  ;;  %v3915_v59 = vmax.f32 %v3725_v26, 0.0 }
 0x34e   :  { %v1690_v48 = vpop.permute.xlu1 %1689 }
 0x34f   :  { %v6669_v22 = vpop.permute.xlu0 %1613  ;;  %v4016_v3 = vsel %vm2635_vm5, %v3915_v59, 0.0  ;;  %v2744_v34 = vsel %vm2700_vm6, %v2679_v29, %v1690_v48  ;;  %v837_v59 = vld [vmem:[#allocation2 + $0x77] sm:$0xff] }
 0x350   :  { %1893 = vrot.lane.b32.xlu1 %v4605_v13, %s4674_s16  ;;  %v2938_v13 = vsel %vm2895_vm9, %v2873_v7, %v2270_v60  ;;  %v2809_v52 = vsel %vm2765_vm7, %v2744_v34, %v6650_v4  ;;  %v4611_v4 = vld [vmem:[#allocation2 + $0x1a8] sm:$0xff] }
 0x351   :  { %1445 = vrot.lane.b32.xlu0 %v6611_v45, %s4671_s21 }
 0x352   :  { %v2464_v0 = vpop.permute.xlu1 %2463 }
 0x353   :  { %v3003_v14 = vsel %vm2960_vm10, %v2938_v13, %v2464_v0  ;;  %v3729_v20 = vpop.f32.mrb[28].mxu1  ;;  %v2388_v31 = vpop.permute.xlu0 %2387 }
 0x354   :  { %v3237_v32 = vmul.f32 %v3109_v9, %v3003_v14  ;;  %v3730_v2 = vadd.f32 %v6667_v55, %v3729_v20  ;;  %v3731_v42 = vpop.f32.mrb[29].mxu1  ;;  %1623 = vrot.lane.b32.xlu1 %v6600_v58, %s4673_s10 }
 0x355   :  { %2281 = vrot.lane.b32.xlu0 %v6691_v15, %s4677_s4  ;;  %v2576_v42 = vsel %vm752_vm4, %v6113_v1, %v5268_v28 }
 0x356   :  { %v3916_v60 = vmax.f32 %v3730_v2, 0.0  ;;  %v2194_v38 = vpop.permute.xlu1 %2193  ;;  %3773 = vmatmul.mubr.f32.gmra.mrb[46].mxu1 %v3237_v32 }
 0x357   :  { %v2900_v58 = vsel %vm2895_vm9, %v2835_v8, %v2194_v38  ;;  %4296 = vmatprep.mubr.msk.f32.mxu1 %vm752_vm4, %v3240_v63  ;;  %v1808_v16 = vpop.permute.xlu0 %1807 }
 0x358   :  { %v4017_v40 = vsel %vm2635_vm5, %v3916_v60, 0.0  ;;  %v2965_v21 = vsel %vm2960_vm10, %v2900_v58, %v2388_v31  ;;  %2397 = vrot.lane.b32.xlu1 %v4609_v53, %s4676_s30  ;;  %v6761_v60 = vld [vmem:[#allocation2 + $0x1a1] sm:$0xff] }
 0x359   :  { %v6712_v17 = vadd.f32 %v4017_v40, %v4016_v3  ;;  %2011 = vrot.lane.b32.xlu0 %v6714_v35, %s4675_s25  ;;  %v3161_v26 = vmul.f32 %v3033_v36, %v2965_v21  ;;  %v6789_v21 = vld [vmem:[#allocation2 + $0x7f] sm:$0xff] }
 0x35a   :  { %v2078_v7 = vpop.permute.xlu1 %2077 }
 0x35b   :  { %v6719_v9 = vpop.permute.xlu0 %1691  ;;  %3583 = vmatmul.mubr.f32.gmra.mrb[72].mxu0 %v3161_v26  ;;  %v2874_v12 = vsel %vm2830_vm8, %v2809_v52, %v2078_v7 }
 0x35c   :  { %1817 = vrot.lane.b32.xlu1 %v6595_v61, %s4674_s16  ;;  %4258 = vmatprep.mubr.msk.f32.mxu0 %vm752_vm4, %v3164_v24  ;;  %v7980_v24 = vld [vmem:[#allocation30_spill] sm:$0xff] }
 0x35d   :  { %1895 = vrot.lane.b32.xlu0 %v6625_v19, %s4674_s16  ;;  %v3114_v19 = vld [vmem:[%s7917_s1 + $0x2c8] sm:$0xff]  ;;  %v2615_v7 = vsel %vm752_vm4, %v6142_v30, %v7980_v24 }
 0x35e   :  { %v1436_v13 = vpop.permute.xlu1 %1435  ;;  %v3242_v20 = vmul.f32 %v3114_v19, %v6513_v46  ;;  %v2641_v46 = vsel %vm2635_vm5, %v2576_v42, %v5297_v43  ;;  %v3035_v43 = vld [vmem:[%s7917_s1 + $0x50] sm:$0xff]  ;;  %v7982_v19 = vld [vmem:[#allocation5_spill] sm:$0xff] }
 0x35f   :  { %v2466_v0 = vpop.permute.xlu0 %2465  ;;  %v2706_v38 = vsel %vm2700_vm6, %v2641_v46, %v6669_v22  ;;  %v3038_v22 = vld [vmem:[%s7917_s1 + $0x68] sm:$0xff]  ;;  %v2680_v25 = vsel %vm2635_vm5, %v2615_v7, %v1436_v13 }
 0x360   :  { %1701 = vrot.lane.b32.xlu1 %v6636_v57, %s4673_s10  ;;  %v2771_v8 = vsel %vm2765_vm7, %v2706_v38, %v1808_v16  ;;  %v6786_v16 = vld [vmem:[#allocation2 + $0x1af] sm:$0xff]  ;;  %v3166_v26 = vmul.f32 %v6559_v47, %v3038_v22  ;;  %v2745_v30 = vsel %vm2700_vm6, %v2680_v25, %v6719_v9  ;;  %v3113_v9 = vld [vmem:[%s7917_s1 + $0x2c0] sm:$0xff] }
 0x361   :  { %1625 = vrot.lane.b32.xlu0 %v6639_v44, %s4673_s10  ;;  %v6748_v44 = vld [vmem:[#allocation2 + $0x78] sm:$0xff]  ;;  %v6805_v47 = vld [vmem:[#allocation2 + $0x1a9] sm:$0xff] }
 0x362   :  { %v2272_v61 = vpop.permute.xlu1 %2271  ;;  %v6850_v22 = vld [vmem:[#allocation2 + $0x79] sm:$0xff] }
 0x363   :  { %v2939_v48 = vsel %vm2895_vm9, %v2874_v12, %v2272_v61  ;;  %v2196_v57 = vpop.permute.xlu0 %2195  ;;  %v7981_v61 = vld [vmem:[#allocation4_spill] sm:$0xff] }
 0x364   :  { %v3004_v27 = vsel %vm2960_vm10, %v2939_v48, %v2466_v0  ;;  %2475 = vrot.lane.b32.xlu1 %v4611_v4, %s4676_s30  ;;  %v6801_v0 = vld [vmem:[#allocation2 + $0x71] sm:$0xff] }
 0x365   :  { %2399 = vrot.lane.b32.xlu0 %v6748_v44, %s4676_s30  ;;  %v3239_v14 = vmul.f32 %v3111_v10, %v3004_v27  ;;  %v2577_v10 = vsel %vm752_vm4, %v6192_v5, %v7981_v61  ;;  %v3116_v27 = vld [vmem:[%s7917_s1 + $0x2d8] sm:$0xff] }
 0x366   :  { %v2002_v31 = vpop.permute.xlu1 %2001  ;;  %v2642_v48 = vsel %vm2635_vm5, %v2577_v10, %v7982_v19  ;;  %v3244_v46 = vmul.f32 %v3116_v27, %v6611_v45 }
 0x367   :  { %3778 = vmatmul.mubr.f32.gmra.mrb[48].mxu1 %v3239_v14  ;;  %v2080_v32 = vpop.permute.xlu0 %2079  ;;  %v2836_v28 = vsel %vm2830_vm8, %v2771_v8, %v2002_v31 }
 0x368   :  { %2205 = vrot.lane.b32.xlu1 %v837_v59, %s4677_s4  ;;  %4297 = vmatprep.mubr.msk.f32.mxu1 %vm752_vm4, %v3242_v20  ;;  %v2901_v58 = vsel %vm2895_vm9, %v2836_v28, %v2196_v57  ;;  %v3040_v28 = vld [vmem:[%s7917_s1 + $0x78] sm:$0xff] }
 0x369   :  { %1819 = vrot.lane.b32.xlu0 %v4609_v53, %s4674_s16 }
 0x36a   :  { %v1886_v2 = vpop.permute.xlu1 %1885 }
 0x36b   :  { %v6759_v63 = vpop.permute.xlu0 %1437  ;;  %v2810_v13 = vsel %vm2765_vm7, %v2745_v30, %v1886_v2  ;;  %v6833_v2 = vld [vmem:[#allocation2 + $0x1b7] sm:$0xff] }
 0x36c   :  { %2089 = vrot.lane.b32.xlu1 %v6761_v60, %s4675_s25  ;;  %v2875_v57 = vsel %vm2830_vm8, %v2810_v13, %v2080_v32 }
 0x36d   :  { %1703 = vrot.lane.b32.xlu0 %v6691_v15, %s4673_s10 }
 0x36e   :  { %v1616_v36 = vpop.permute.xlu1 %1615 }
 0x36f   :  { %v2274_v1 = vpop.permute.xlu0 %2273  ;;  %v2707_v5 = vsel %vm2700_vm6, %v2642_v48, %v1616_v36  ;;  %v3037_v36 = vld [vmem:[%s7917_s1 + $0x60] sm:$0xff] }
 0x370   :  { %1447 = vrot.lane.b32.xlu1 %v6657_v23, %s4671_s21  ;;  %v6893_v48 = vld [vmem:[#allocation2 + $0x87] sm:$0xff] }
 0x371   :  { %2477 = vrot.lane.b32.xlu0 %v6775_v41, %s4676_s30 }
 0x372   :  { %v2390_v15 = vpop.permute.xlu1 %2389 }
 0x373   :  { %v2966_v3 = vsel %vm2960_vm10, %v2901_v58, %v2390_v15  ;;  %v2004_v40 = vpop.permute.xlu0 %2003  ;;  %v3168_v58 = vmul.f32 %v6653_v11, %v3040_v28 }
 0x374   :  { %v3163_v53 = vmul.f32 %v3035_v43, %v2966_v3  ;;  %2283 = vrot.lane.b32.xlu1 %v6786_v16, %s4677_s4  ;;  %v4615_v43 = vld [vmem:[#allocation2 + $0x80] sm:$0xff] }
 0x375   :  { %2207 = vrot.lane.b32.xlu0 %v6789_v21, %s4677_s4 }
 0x376   :  { %v1810_v29 = vpop.permute.xlu1 %1809  ;;  %3588 = vmatmul.mubr.f32.gmra.mrb[74].mxu0 %v3163_v53  ;;  %v7983_v53 = vld [vmem:[#allocation34_spill] sm:$0xff] }
 0x377   :  { %v1888_v34 = vpop.permute.xlu0 %1887  ;;  %4259 = vmatprep.mubr.msk.f32.mxu0 %vm752_vm4, %v3166_v26  ;;  %v2772_v20 = vsel %vm2765_vm7, %v2707_v5, %v1810_v29  ;;  %v2616_v26 = vsel %vm752_vm4, %v6232_v54, %v7983_v53 }
 0x378   :  { %2013 = vrot.lane.b32.xlu1 %v6801_v0, %s4675_s25  ;;  %v2837_v8 = vsel %vm2830_vm8, %v2772_v20, %v2004_v40  ;;  %v2681_v24 = vsel %vm2635_vm5, %v2616_v26, %v6759_v63  ;;  %v3115_v63 = vld [vmem:[%s7917_s1 + $0x2d0] sm:$0xff] }
 0x379   :  { %2091 = vrot.lane.b32.xlu0 %v6805_v47, %s4675_s25 }
 0x37a   :  { %v1694_v52 = vpop.permute.xlu1 %1693 }
 0x37b   :  { %v6812_v12 = vpop.permute.xlu0 %1617  ;;  %v2746_v11 = vsel %vm2700_vm6, %v2681_v24, %v1694_v52 }
 0x37c   :  { %1897 = vrot.lane.b32.xlu1 %v4611_v4, %s4674_s16  ;;  %v2940_v4 = vsel %vm2895_vm9, %v2875_v57, %v2274_v1  ;;  %v2811_v54 = vsel %vm2765_vm7, %v2746_v11, %v1888_v34  ;;  %v6884_v34 = vld [vmem:[#allocation2 + $0x1b8] sm:$0xff]  ;;  %v7986_v11 = vld [vmem:[#allocation31_spill] sm:$0xff] }
 0x37d   :  { %1449 = vrot.lane.b32.xlu0 %v6761_v60, %s4671_s21 }
 0x37e   :  { %v2468_v14 = vpop.permute.xlu1 %2467 }
 0x37f   :  { %v3005_v31 = vsel %vm2960_vm10, %v2940_v4, %v2468_v14  ;;  %v2392_v32 = vpop.permute.xlu0 %2391  ;;  %v7984_v14 = vld [vmem:[#allocation6_spill] sm:$0xff] }
 0x380   :  { %v3241_v42 = vmul.f32 %v3113_v9, %v3005_v31  ;;  %1627 = vrot.lane.b32.xlu1 %v837_v59, %s4673_s10 }
 0x381   :  { %2285 = vrot.lane.b32.xlu0 %v6833_v2, %s4677_s4 }
 0x382   :  { %v2198_v38 = vpop.permute.xlu1 %2197  ;;  %3783 = vmatmul.mubr.f32.gmra.mrb[50].mxu1 %v3241_v42  ;;  %v7985_v42 = vld [vmem:[#allocation11_spill] sm:$0xff] }
 0x383   :  { %v2902_v1 = vsel %vm2895_vm9, %v2837_v8, %v2198_v38  ;;  %4298 = vmatprep.mubr.msk.f32.mxu1 %vm752_vm4, %v3244_v46  ;;  %v1812_v45 = vpop.permute.xlu0 %1811 }
 0x384   :  { %v2967_v59 = vsel %vm2960_vm10, %v2902_v1, %v2392_v32  ;;  %2401 = vrot.lane.b32.xlu1 %v4615_v43, %s4676_s30  ;;  %v6906_v32 = vld [vmem:[#allocation2 + $0x1b1] sm:$0xff] }
 0x385   :  { %2015 = vrot.lane.b32.xlu0 %v6850_v22, %s4675_s25  ;;  %v3165_v15 = vmul.f32 %v3037_v36, %v2967_v59  ;;  %v6921_v59 = vld [vmem:[#allocation2 + $0x1c0] sm:$0xff] }
 0x386   :  { %v2082_v3 = vpop.permute.xlu1 %2081 }
 0x387   :  { %v6855_v40 = vpop.permute.xlu0 %1695  ;;  %3593 = vmatmul.mubr.f32.gmra.mrb[76].mxu0 %v3165_v15 }
 0x388   :  { %1821 = vrot.lane.b32.xlu1 %v6748_v44, %s4674_s16  ;;  %4260 = vmatprep.mubr.msk.f32.mxu0 %vm752_vm4, %v3168_v58  ;;  %v2876_v44 = vsel %vm2830_vm8, %v2811_v54, %v2082_v3  ;;  %v6935_v3 = vld [vmem:[#allocation2 + $0x8f] sm:$0xff] }
 0x389   :  { %1899 = vrot.lane.b32.xlu0 %v6775_v41, %s4674_s16  ;;  %v3118_v41 = vld [vmem:[%s7917_s1 + $0x2e8] sm:$0xff] }
 0x38a   :  { %v6868_v7 = vpop.permute.xlu1 %1439  ;;  %v3246_v61 = vmul.f32 %v3118_v41, %v6657_v23  ;;  %v2578_v23 = vsel %vm752_vm4, %v6234_v37, %v7984_v14  ;;  %v7989_v14 = vld [vmem:[#allocation8_spill] sm:$0xff] }
 0x38b   :  { %v2470_v25 = vpop.permute.xlu0 %2469  ;;  %v2643_v46 = vsel %vm2635_vm5, %v2578_v23, %v7985_v42 }
 0x38c   :  { %1705 = vrot.lane.b32.xlu1 %v6786_v16, %s4673_s10  ;;  %v2708_v8 = vsel %vm2700_vm6, %v2643_v46, %v6812_v12  ;;  %v3042_v12 = vld [vmem:[%s7917_s1 + $0x88] sm:$0xff] }
 0x38d   :  { %1629 = vrot.lane.b32.xlu0 %v6789_v21, %s4673_s10  ;;  %v6888_v21 = vld [vmem:[#allocation2 + $0x88] sm:$0xff]  ;;  %v2773_v37 = vsel %vm2765_vm7, %v2708_v8, %v1812_v45  ;;  %v3170_v24 = vmul.f32 %v6714_v35, %v3042_v12 }
 0x38e   :  { %v2276_v29 = vpop.permute.xlu1 %2275  ;;  %v6951_v35 = vld [vmem:[#allocation2 + $0x81] sm:$0xff] }
 0x38f   :  { %v2941_v30 = vsel %vm2895_vm9, %v2876_v44, %v2276_v29  ;;  %v2200_v13 = vpop.permute.xlu0 %2199  ;;  %v6985_v8 = vld [vmem:[#allocation2 + $0x1c7] sm:$0xff] }
 0x390   :  { %v3006_v16 = vsel %vm2960_vm10, %v2941_v30, %v2470_v25  ;;  %2479 = vrot.lane.b32.xlu1 %v6884_v34, %s4676_s30  ;;  %v7987_v25 = vld [vmem:[#allocation54_spill] sm:$0xff] }
 0x391   :  { %2403 = vrot.lane.b32.xlu0 %v6888_v21, %s4676_s30  ;;  %v3243_v52 = vmul.f32 %v3115_v63, %v3006_v16  ;;  %v2617_v54 = vsel %vm752_vm4, %v7987_v25, %v7986_v11  ;;  %v6955_v16 = vld [vmem:[#allocation2 + $0x1b9] sm:$0xff]  ;;  %v7005_v11 = vld [vmem:[#allocation2 + $0x89] sm:$0xff] }
 0x392   :  { %v3734_v10 = vpop.f32.mrb[30].mxu1  ;;  %v2006_v19 = vpop.permute.xlu1 %2005  ;;  %v2682_v63 = vsel %vm2635_vm5, %v2617_v54, %v6868_v7 }
 0x393   :  { %v3735_v57 = vadd.f32 %v6667_v55, %v3734_v10  ;;  %v3736_v9 = vpop.f32.mrb[31].mxu1  ;;  %3788 = vmatmul.mubr.f32.gmra.mrb[52].mxu1 %v3243_v52  ;;  %v2084_v27 = vpop.permute.xlu0 %2083  ;;  %v2838_v28 = vsel %vm2830_vm8, %v2773_v37, %v2006_v19  ;;  %v2747_v52 = vsel %vm2700_vm6, %v2682_v63, %v6855_v40 }
 0x394   :  { %2209 = vrot.lane.b32.xlu1 %v6893_v48, %s4677_s4  ;;  %4299 = vmatprep.mubr.msk.f32.mxu1 %vm752_vm4, %v3246_v61  ;;  %v2903_v45 = vsel %vm2895_vm9, %v2838_v28, %v2200_v13  ;;  %v7988_v9 = vld [vmem:[#allocation7_spill] sm:$0xff] }
 0x395   :  { %v3917_v5 = vmax.f32 %v3735_v57, 0.0  ;;  %1823 = vrot.lane.b32.xlu0 %v4615_v43, %s4674_s16  ;;  %v6932_v43 = vld [vmem:[#allocation2 + $0x1bf] sm:$0xff] }
 0x396   :  { %v1890_v4 = vpop.permute.xlu1 %1889 }
 0x397   :  { %v4019_v20 = vsel %vm2635_vm5, %v3917_v5, 0.0  ;;  %v6904_v31 = vpop.permute.xlu0 %1441  ;;  %v2812_v7 = vsel %vm2765_vm7, %v2747_v52, %v1890_v4  ;;  %v2579_v5 = vsel %vm752_vm4, %v6332_v18, %v7988_v9  ;;  %v3117_v4 = vld [vmem:[%s7917_s1 + $0x2e0] sm:$0xff] }
 0x398   :  { %v4020_v38 = vadd.f32 %v4019_v20, %v6712_v17  ;;  %2093 = vrot.lane.b32.xlu1 %v6906_v32, %s4675_s25  ;;  %v3039_v17 = vld [vmem:[%s7917_s1 + $0x70] sm:$0xff]  ;;  %v2644_v40 = vsel %vm2635_vm5, %v2579_v5, %v7989_v14  ;;  %v2877_v23 = vsel %vm2830_vm8, %v2812_v7, %v2084_v27  ;;  %v3120_v20 = vld [vmem:[%s7917_s1 + $0x2f8] sm:$0xff] }
 0x399   :  { %1707 = vrot.lane.b32.xlu0 %v6833_v2, %s4673_s10 }
 0x39a   :  { %v1620_v36 = vpop.permute.xlu1 %1619 }
 0x39b   :  { %v2278_v1 = vpop.permute.xlu0 %2277  ;;  %v2709_v18 = vsel %vm2700_vm6, %v2644_v40, %v1620_v36 }
 0x39c   :  { %1451 = vrot.lane.b32.xlu1 %v6805_v47, %s4671_s21 }
 0x39d   :  { %2481 = vrot.lane.b32.xlu0 %v6921_v59, %s4676_s30 }
 0x39e   :  { %v2394_v2 = vpop.permute.xlu1 %2393 }
 0x39f   :  { %v2968_v15 = vsel %vm2960_vm10, %v2903_v45, %v2394_v2  ;;  %v2008_v58 = vpop.permute.xlu0 %2007  ;;  %v3041_v45 = vld [vmem:[%s7917_s1 + $0x80] sm:$0xff] }
 0x3a0   :  { %v3167_v53 = vmul.f32 %v3039_v17, %v2968_v15  ;;  %v3739_v26 = vpop.f32.mrb[32].mxu1  ;;  %2287 = vrot.lane.b32.xlu1 %v6932_v43, %s4677_s4  ;;  %v3248_v17 = vmul.f32 %v3120_v20, %v6761_v60 }
 0x3a1   :  { %v3740_v44 = vadd.f32 %v6667_v55, %v3739_v26  ;;  %v3741_v29 = vpop.f32.mrb[33].mxu1  ;;  %2211 = vrot.lane.b32.xlu0 %v6935_v3, %s4677_s4 }
 0x3a2   :  { %v1814_v41 = vpop.permute.xlu1 %1813  ;;  %3598 = vmatmul.mubr.f32.gmra.mrb[78].mxu0 %v3167_v53 }
 0x3a3   :  { %v3918_v30 = vmax.f32 %v3740_v44, 0.0  ;;  %v6948_v13 = vpop.permute.xlu0 %1891  ;;  %4261 = vmatprep.mubr.msk.f32.mxu0 %vm752_vm4, %v3170_v24  ;;  %v2774_v46 = vsel %vm2765_vm7, %v2709_v18, %v1814_v41  ;;  %v4621_v24 = vld [vmem:[#allocation2 + $0x90] sm:$0xff] }
 0x3a4   :  { %2017 = vrot.lane.b32.xlu1 %v6951_v35, %s4675_s25  ;;  %v2839_v2 = vsel %vm2830_vm8, %v2774_v46, %v2008_v58  ;;  %v7990_v41 = vld [vmem:[#allocation36_spill] sm:$0xff] }
 0x3a5   :  { %v4021_v61 = vsel %vm2635_vm5, %v3918_v30, 0.0  ;;  %2095 = vrot.lane.b32.xlu0 %v6955_v16, %s4675_s25  ;;  %v2618_v30 = vsel %vm752_vm4, %v6353_v33, %v7990_v41  ;;  %v7051_v46 = vld [vmem:[#allocation2 + $0x97] sm:$0xff]  ;;  %v4627_v41 = vld [vmem:[#allocation2 + $0x187] sm:$0xff] }
 0x3a6   :  { %v4022_v10 = vadd.f32 %v4021_v61, %v4020_v38  ;;  %v1698_v19 = vpop.permute.xlu1 %1697  ;;  %v2683_v52 = vsel %vm2635_vm5, %v2618_v30, %v6904_v31  ;;  %v7993_v30 = vld [vmem:[#allocation32_spill] sm:$0xff] }
 0x3a7   :  { %v6963_v57 = vpop.permute.xlu0 %1621 }
 0x3a8   :  { %1901 = vrot.lane.b32.xlu1 %v6884_v34, %s4674_s16  ;;  %v2942_v34 = vsel %vm2895_vm9, %v2877_v23, %v2278_v1  ;;  %v7039_v23 = vld [vmem:[#allocation2 + $0x1c8] sm:$0xff] }
 0x3a9   :  { %1453 = vrot.lane.b32.xlu0 %v6906_v32, %s4671_s21 }
 0x3aa   :  { %v2472_v42 = vpop.permute.xlu1 %2471 }
 0x3ab   :  { %v3007_v27 = vsel %vm2960_vm10, %v2942_v34, %v2472_v42  ;;  %v2396_v38 = vpop.permute.xlu0 %2395 }
 0x3ac   :  { %v3245_v37 = vmul.f32 %v3117_v4, %v3007_v27  ;;  %v3744_v28 = vpop.f32.mrb[34].mxu1  ;;  %1631 = vrot.lane.b32.xlu1 %v6893_v48, %s4673_s10  ;;  %v3044_v48 = vld [vmem:[%s7917_s1 + $0x98] sm:$0xff] }
 0x3ad   :  { %v3745_v12 = vadd.f32 %v6667_v55, %v3744_v28  ;;  %v3746_v36 = vpop.f32.mrb[35].mxu1  ;;  %2289 = vrot.lane.b32.xlu0 %v6985_v8, %s4677_s4  ;;  %v3172_v54 = vmul.f32 %v6801_v0, %v3044_v48  ;;  %v2748_v0 = vsel %vm2700_vm6, %v2683_v52, %v1698_v19  ;;  %v3119_v19 = vld [vmem:[%s7917_s1 + $0x2f0] sm:$0xff]  ;;  %v7044_v4 = vld [vmem:[#allocation2 + $0x98] sm:$0xff]  ;;  %v2619_v52 = vsel %vm752_vm4, %v4627_v41, %v7993_v30 }
 0x3ae   :  { %v2202_v1 = vpop.permute.xlu1 %2201  ;;  %3793 = vmatmul.mubr.f32.gmra.mrb[54].mxu1 %v3245_v37  ;;  %v2813_v33 = vsel %vm2765_vm7, %v2748_v0, %v6948_v13  ;;  %v4625_v37 = vld [vmem:[#allocation2 + $0x4f] sm:$0xff]  ;;  %v7991_v28 = vld [vmem:[#allocation9_spill] sm:$0xff] }
 0x3af   :  { %v3919_v15 = vmax.f32 %v3745_v12, 0.0  ;;  %v2904_v60 = vsel %vm2895_vm9, %v2839_v2, %v2202_v1  ;;  %4300 = vmatprep.mubr.msk.f32.mxu1 %vm752_vm4, %v3248_v17  ;;  %v1816_v53 = vpop.permute.xlu0 %1815  ;;  %v2580_v17 = vsel %vm752_vm4, %v4625_v37, %v7991_v28  ;;  %v7061_v12 = vld [vmem:[#allocation2 + $0x1c1] sm:$0xff]  ;;  %v7992_v36 = vld [vmem:[#allocation15_spill] sm:$0xff] }
 0x3b0   :  { %v2969_v26 = vsel %vm2960_vm10, %v2904_v60, %v2396_v38  ;;  %2405 = vrot.lane.b32.xlu1 %v4621_v24, %s4676_s30  ;;  %v2645_v1 = vsel %vm2635_vm5, %v2580_v17, %v7992_v36  ;;  %v7094_v0 = vld [vmem:[#allocation2 + $0x9f] sm:$0xff]  ;;  %v4632_v30 = vld [vmem:[#allocation2 + $0x18f] sm:$0xff] }
 0x3b1   :  { %v4023_v58 = vsel %vm2635_vm5, %v3919_v15, 0.0  ;;  %2019 = vrot.lane.b32.xlu0 %v7005_v11, %s4675_s25  ;;  %v3169_v25 = vmul.f32 %v3041_v45, %v2969_v26  ;;  %v2710_v2 = vsel %vm2700_vm6, %v2645_v1, %v6963_v57  ;;  %v7075_v26 = vld [vmem:[#allocation2 + $0x1d0] sm:$0xff] }
 0x3b2   :  { %v4024_v44 = vadd.f32 %v4023_v58, %v4022_v10  ;;  %v2086_v29 = vpop.permute.xlu1 %2085  ;;  %v2775_v45 = vsel %vm2765_vm7, %v2710_v2, %v1816_v53  ;;  %v3043_v57 = vld [vmem:[%s7917_s1 + $0x90] sm:$0xff] }
 0x3b3   :  { %v7010_v63 = vpop.permute.xlu0 %1699  ;;  %3603 = vmatmul.mubr.f32.gmra.mrb[80].mxu0 %v3169_v25  ;;  %v2878_v31 = vsel %vm2830_vm8, %v2813_v33, %v2086_v29  ;;  %v7086_v58 = vld [vmem:[#allocation2 + $0x1cf] sm:$0xff] }
 0x3b4   :  { %1825 = vrot.lane.b32.xlu1 %v6888_v21, %s4674_s16  ;;  %4262 = vmatprep.mubr.msk.f32.mxu0 %vm752_vm4, %v3172_v54 }
 0x3b5   :  { %1903 = vrot.lane.b32.xlu0 %v6921_v59, %s4674_s16 }
 0x3b6   :  { %v1444_v61 = vpop.permute.xlu1 %1443 }
 0x3b7   :  { %v2474_v7 = vpop.permute.xlu0 %2473 }
 0x3b8   :  { %v3749_v10 = vpop.f32.mrb[36].mxu1  ;;  %1709 = vrot.lane.b32.xlu1 %v6932_v43, %s4673_s10  ;;  %v3122_v43 = vld [vmem:[%s7917_s1 + $0x308] sm:$0xff] }
 0x3b9   :  { %v3750_v21 = vadd.f32 %v6667_v55, %v3749_v10  ;;  %v3751_v9 = vpop.f32.mrb[37].mxu1  ;;  %1633 = vrot.lane.b32.xlu0 %v6935_v3, %s4673_s10  ;;  %v3250_v18 = vmul.f32 %v3122_v43, %v6805_v47 }
 0x3ba   :  { %v2280_v59 = vpop.permute.xlu1 %2279 }
 0x3bb   :  { %v3920_v5 = vmax.f32 %v3750_v21, 0.0  ;;  %v2943_v13 = vsel %vm2895_vm9, %v2878_v31, %v2280_v59  ;;  %v2204_v14 = vpop.permute.xlu0 %2203  ;;  %v7102_v21 = vld [vmem:[#allocation2 + $0x91] sm:$0xff] }
 0x3bc   :  { %v3008_v40 = vsel %vm2960_vm10, %v2943_v13, %v2474_v7  ;;  %2483 = vrot.lane.b32.xlu1 %v7039_v23, %s4676_s30  ;;  %v2684_v7 = vsel %vm2635_vm5, %v2619_v52, %v1444_v61  ;;  %v7994_v13 = vld [vmem:[#allocation10_spill] sm:$0xff]  ;;  %v7996_v52 = vld [vmem:[#allocation39_spill] sm:$0xff] }
 0x3bd   :  { %v4025_v3 = vsel %vm2635_vm5, %v3920_v5, 0.0  ;;  %2407 = vrot.lane.b32.xlu0 %v7044_v4, %s4676_s30  ;;  %v3247_v20 = vmul.f32 %v3119_v19, %v3008_v40  ;;  %v2749_v9 = vsel %vm2700_vm6, %v2684_v7, %v7010_v63  ;;  %v7995_v63 = vld [vmem:[#allocation12_spill] sm:$0xff]  ;;  %v2620_v7 = vsel %vm752_vm4, %v4632_v30, %v7996_v52 }
 0x3be   :  { %v7049_v34 = vadd.f32 %v4025_v3, %v4024_v44  ;;  %v2010_v42 = vpop.permute.xlu1 %2009 }
 0x3bf   :  { %3798 = vmatmul.mubr.f32.gmra.mrb[56].mxu1 %v3247_v20  ;;  %v2088_v27 = vpop.permute.xlu0 %2087  ;;  %v2840_v15 = vsel %vm2830_vm8, %v2775_v45, %v2010_v42  ;;  %v7140_v45 = vld [vmem:[#allocation2 + $0x1d7] sm:$0xff] }
 0x3c0   :  { %2213 = vrot.lane.b32.xlu1 %v7051_v46, %s4677_s4  ;;  %4301 = vmatprep.mubr.msk.f32.mxu1 %vm752_vm4, %v3250_v18  ;;  %v3121_v18 = vld [vmem:[%s7917_s1 + $0x300] sm:$0xff] }
 0x3c1   :  { %1827 = vrot.lane.b32.xlu0 %v4621_v24, %s4674_s16  ;;  %v2905_v24 = vsel %vm2895_vm9, %v2840_v15, %v2204_v14  ;;  %v2581_v14 = vsel %vm752_vm4, %v6457_v51, %v7994_v13  ;;  %v3124_v51 = vld [vmem:[%s7917_s1 + $0x318] sm:$0xff] }
 0x3c2   :  { %v1894_v38 = vpop.permute.xlu1 %1893  ;;  %v2646_v3 = vsel %vm2635_vm5, %v2581_v14, %v7995_v63  ;;  %v3126_v14 = vld [vmem:[%s7917_s1 + $0x328] sm:$0xff] }
 0x3c3   :  { %v7059_v47 = vpop.permute.xlu0 %1445  ;;  %v2814_v61 = vsel %vm2765_vm7, %v2749_v9, %v1894_v38 }
 0x3c4   :  { %2097 = vrot.lane.b32.xlu1 %v7061_v12, %s4675_s25  ;;  %v2879_v20 = vsel %vm2830_vm8, %v2814_v61, %v2088_v27 }
 0x3c5   :  { %1711 = vrot.lane.b32.xlu0 %v6985_v8, %s4673_s10  ;;  %v3046_v8 = vld [vmem:[%s7917_s1 + $0xa8] sm:$0xff] }
 0x3c6   :  { %v1624_v48 = vpop.permute.xlu1 %1623  ;;  %v3174_v29 = vmul.f32 %v6850_v22, %v3046_v8  ;;  %v7106_v22 = vld [vmem:[#allocation2 + $0x1c9] sm:$0xff]  ;;  %v3048_v8 = vld [vmem:[%s7917_s1 + $0xb8] sm:$0xff] }
 0x3c7   :  { %v2282_v60 = vpop.permute.xlu0 %2281  ;;  %v2711_v42 = vsel %vm2700_vm6, %v2646_v3, %v1624_v48  ;;  %v3252_v48 = vmul.f32 %v3124_v51, %v6906_v32  ;;  %v7196_v3 = vld [vmem:[#allocation2 + $0x1d8] sm:$0xff]  ;;  %v3254_v51 = vmul.f32 %v3126_v14, %v6955_v16 }
 0x3c8   :  { %1455 = vrot.lane.b32.xlu1 %v6955_v16, %s4671_s21 }
 0x3c9   :  { %2485 = vrot.lane.b32.xlu0 %v7075_v26, %s4676_s30 }
 0x3ca   :  { %v2398_v53 = vpop.permute.xlu1 %2397 }
 0x3cb   :  { %v2970_v25 = vsel %vm2960_vm10, %v2905_v24, %v2398_v53  ;;  %v2012_v54 = vpop.permute.xlu0 %2011  ;;  %v4630_v24 = vld [vmem:[#allocation2 + $0xa0] sm:$0xff] }
 0x3cc   :  { %v3171_v44 = vmul.f32 %v3043_v57, %v2970_v25  ;;  %2291 = vrot.lane.b32.xlu1 %v7086_v58, %s4677_s4  ;;  %v7158_v25 = vld [vmem:[#allocation2 + $0x99] sm:$0xff] }
 0x3cd   :  { %2215 = vrot.lane.b32.xlu0 %v7094_v0, %s4677_s4 }
 0x3ce   :  { %v1818_v10 = vpop.permute.xlu1 %1817  ;;  %3608 = vmatmul.mubr.f32.gmra.mrb[82].mxu0 %v3171_v44  ;;  %v3176_v44 = vmul.f32 %v6951_v35, %v3048_v8 }
 0x3cf   :  { %v7099_v33 = vpop.permute.xlu0 %1895  ;;  %4263 = vmatprep.mubr.msk.f32.mxu0 %vm752_vm4, %v3174_v29  ;;  %v2776_v27 = vsel %vm2765_vm7, %v2711_v42, %v1818_v10  ;;  %v2685_v10 = vsel %vm2635_vm5, %v2620_v7, %v7059_v47 }
 0x3d0   :  { %2021 = vrot.lane.b32.xlu1 %v7102_v21, %s4675_s25  ;;  %v2841_v57 = vsel %vm2830_vm8, %v2776_v27, %v2012_v54 }
 0x3d1   :  { %v3754_v31 = vpop.f32.mrb[38].mxu1  ;;  %2099 = vrot.lane.b32.xlu0 %v7106_v22, %s4675_s25 }
 0x3d2   :  { %v3755_v59 = vadd.f32 %v6667_v55, %v3754_v31  ;;  %v1702_v19 = vpop.permute.xlu1 %1701  ;;  %v3756_v43 = vpop.f32.mrb[39].mxu1 }
 0x3d3   :  { %v7114_v5 = vpop.permute.xlu0 %1625  ;;  %v2750_v35 = vsel %vm2700_vm6, %v2685_v10, %v1702_v19  ;;  %v3123_v19 = vld [vmem:[%s7917_s1 + $0x310] sm:$0xff]  ;;  %v7247_v10 = vld [vmem:[#allocation2 + $0x1df] sm:$0xff] }
 0x3d4   :  { %v3921_v40 = vmax.f32 %v3755_v59, 0.0  ;;  %1905 = vrot.lane.b32.xlu1 %v7039_v23, %s4674_s16  ;;  %v2944_v23 = vsel %vm2895_vm9, %v2879_v20, %v2282_v60  ;;  %v7200_v20 = vld [vmem:[#allocation2 + $0xa8] sm:$0xff] }
 0x3d5   :  { %1457 = vrot.lane.b32.xlu0 %v7061_v12, %s4671_s21 }
 0x3d6   :  { %v4027_v38 = vsel %vm2635_vm5, %v3921_v40, 0.0  ;;  %v2476_v37 = vpop.permute.xlu1 %2475  ;;  %v7135_v28 = vpop.f32.mrb[64].mxu0 }
 0x3d7   :  { %v4028_v17 = vadd.f32 %v4027_v38, %v7049_v34  ;;  %v3009_v36 = vsel %vm2960_vm10, %v2944_v23, %v2476_v37  ;;  %v3566_v1 = vpop.f32.mrb[65].mxu0  ;;  %v2400_v2 = vpop.permute.xlu0 %2399  ;;  %v3045_v34 = vld [vmem:[%s7917_s1 + $0xa0] sm:$0xff]  ;;  %v3565_v37 = vadd.f32 %v6667_v55, %v7135_v28 }
 0x3d8   :  { %v3249_v15 = vmul.f32 %v3121_v18, %v3009_v36  ;;  %1635 = vrot.lane.b32.xlu1 %v7051_v46, %s4673_s10  ;;  %v7207_v38 = vld [vmem:[#allocation2 + $0xa7] sm:$0xff]  ;;  %v7997_v36 = vld [vmem:[#allocation13_spill] sm:$0xff] }
 0x3d9   :  { %2293 = vrot.lane.b32.xlu0 %v7140_v45, %s4677_s4  ;;  %v3883_v28 = vmax.f32 %v3565_v37, 0.0 }
 0x3da   :  { %v2206_v60 = vpop.permute.xlu1 %2205  ;;  %3803 = vmatmul.mubr.f32.gmra.mrb[58].mxu1 %v3249_v15  ;;  %v7998_v15 = vld [vmem:[#allocation19_spill] sm:$0xff] }
 0x3db   :  { %v2906_v53 = vsel %vm2895_vm9, %v2841_v57, %v2206_v60  ;;  %4302 = vmatprep.mubr.msk.f32.mxu1 %vm752_vm4, %v3252_v48  ;;  %v1820_v32 = vpop.permute.xlu0 %1819 }
 0x3dc   :  { %v2971_v46 = vsel %vm2960_vm10, %v2906_v53, %v2400_v2  ;;  %2409 = vrot.lane.b32.xlu1 %v4630_v24, %s4676_s30  ;;  %v7219_v2 = vld [vmem:[#allocation2 + $0x1d1] sm:$0xff] }
 0x3dd   :  { %2023 = vrot.lane.b32.xlu0 %v7158_v25, %s4675_s25  ;;  %v3173_v54 = vmul.f32 %v3045_v34, %v2971_v46 }
 0x3de   :  { %v2090_v29 = vpop.permute.xlu1 %2089 }
 0x3df   :  { %v7163_v41 = vpop.permute.xlu0 %1703  ;;  %3613 = vmatmul.mubr.f32.gmra.mrb[84].mxu0 %v3173_v54 }
 0x3e0   :  { %1829 = vrot.lane.b32.xlu1 %v7044_v4, %s4674_s16  ;;  %4264 = vmatprep.mubr.msk.f32.mxu0 %vm752_vm4, %v3176_v44  ;;  %v2815_v4 = vsel %vm2765_vm7, %v2750_v35, %v7099_v33 }
 0x3e1   :  { %1907 = vrot.lane.b32.xlu0 %v7075_v26, %s4674_s16  ;;  %v2880_v47 = vsel %vm2830_vm8, %v2815_v4, %v2090_v29  ;;  %v7234_v29 = vld [vmem:[#allocation2 + $0x1e0] sm:$0xff]  ;;  %v4638_v4 = vld [vmem:[#allocation2 + $0x197] sm:$0xff] }
 0x3e2   :  { %v7175_v9 = vpop.permute.xlu1 %1447  ;;  %v3759_v31 = vpop.f32.mrb[40].mxu1 }
 0x3e3   :  { %v3760_v61 = vadd.f32 %v6667_v55, %v3759_v31  ;;  %v3761_v59 = vpop.f32.mrb[41].mxu1  ;;  %v2478_v43 = vpop.permute.xlu0 %2477 }
 0x3e4   :  { %1713 = vrot.lane.b32.xlu1 %v7086_v58, %s4673_s10 }
 0x3e5   :  { %v3922_v13 = vmax.f32 %v3760_v61, 0.0  ;;  %1637 = vrot.lane.b32.xlu0 %v7094_v0, %s4673_s10 }
 0x3e6   :  { %v2284_v26 = vpop.permute.xlu1 %2283 }
 0x3e7   :  { %v4029_v58 = vsel %vm2635_vm5, %v3922_v13, 0.0  ;;  %v2945_v40 = vsel %vm2895_vm9, %v2880_v47, %v2284_v26  ;;  %v2208_v33 = vpop.permute.xlu0 %2207  ;;  %v7999_v13 = vld [vmem:[#allocation35_spill] sm:$0xff] }
 0x3e8   :  { %v7193_v63 = vadd.f32 %v4029_v58, %v4028_v17  ;;  %v3010_v0 = vsel %vm2960_vm10, %v2945_v40, %v2478_v43  ;;  %2487 = vrot.lane.b32.xlu1 %v7196_v3, %s4676_s30  ;;  %v4636_v17 = vld [vmem:[#allocation2 + $0x5f] sm:$0xff]  ;;  %v2621_v47 = vsel %vm752_vm4, %v4638_v4, %v7999_v13  ;;  %v4639_v26 = vld [vmem:[#allocation2 + $0xaf] sm:$0xff] }
 0x3e9   :  { %2411 = vrot.lane.b32.xlu0 %v7200_v20, %s4676_s30  ;;  %v3251_v18 = vmul.f32 %v3123_v19, %v3010_v0  ;;  %v2582_v16 = vsel %vm752_vm4, %v4636_v17, %v7997_v36  ;;  %v2686_v19 = vsel %vm2635_vm5, %v2621_v47, %v7175_v9  ;;  %v7261_v40 = vld [vmem:[#allocation2 + $0xa1] sm:$0xff]  ;;  %v4642_v4 = vld [vmem:[#allocation2 + $0xb0] sm:$0xff] }
 0x3ea   :  { %v2014_v42 = vpop.permute.xlu1 %2013  ;;  %v2647_v48 = vsel %vm2635_vm5, %v2582_v16, %v7998_v15  ;;  %v4641_v17 = vld [vmem:[#allocation2 + $0x67] sm:$0xff] }
 0x3eb   :  { %3808 = vmatmul.mubr.f32.gmra.mrb[60].mxu1 %v3251_v18  ;;  %v7205_v23 = vpop.permute.xlu0 %2091  ;;  %v2712_v60 = vsel %vm2700_vm6, %v2647_v48, %v7114_v5  ;;  %v3047_v5 = vld [vmem:[%s7917_s1 + $0xb0] sm:$0xff]  ;;  %v8000_v36 = vld [vmem:[#allocation14_spill] sm:$0xff] }
 0x3ec   :  { %2217 = vrot.lane.b32.xlu1 %v7207_v38, %s4677_s4  ;;  %4303 = vmatprep.mubr.msk.f32.mxu1 %vm752_vm4, %v3254_v51  ;;  %v2777_v34 = vsel %vm2765_vm7, %v2712_v60, %v1820_v32  ;;  %v3947_v32 = vsel %vm2635_vm5, %v3883_v28, 0.0  ;;  %v2583_v16 = vsel %vm752_vm4, %v4641_v17, %v8000_v36  ;;  %v3125_v60 = vld [vmem:[%s7917_s1 + $0x320] sm:$0xff]  ;;  %v7319_v13 = vld [vmem:[#allocation2 + $0xa9] sm:$0xff] }
 0x3ed   :  { %1831 = vrot.lane.b32.xlu0 %v4630_v24, %s4674_s16  ;;  %v2842_v24 = vsel %vm2830_vm8, %v2777_v34, %v2014_v42  ;;  %v7341_v17 = vld [vmem:[%s7919_s5] ss:$0 sm:$0xff] }
 0x3ee   :  { %v1898_v27 = vpop.permute.xlu1 %1897  ;;  %v2907_v7 = vsel %vm2895_vm9, %v2842_v24, %v2208_v33  ;;  %v2751_v33 = vsel %vm2700_vm6, %v2686_v19, %v7163_v41  ;;  %v8001_v41 = vld [vmem:[#allocation16_spill] sm:$0xff] }
 0x3ef   :  { %v7217_v1 = vpop.permute.xlu0 %1449  ;;  %v2816_v9 = vsel %vm2765_vm7, %v2751_v33, %v1898_v27  ;;  %v2648_v48 = vsel %vm2635_vm5, %v2583_v16, %v8001_v41  ;;  %v4644_v33 = vld [vmem:[#allocation2 + $0x19f] sm:$0xff] }
 0x3f0   :  { %2101 = vrot.lane.b32.xlu1 %v7219_v2, %s4675_s25  ;;  %v2881_v27 = vsel %vm2830_vm8, %v2816_v9, %v7205_v23 }
 0x3f1   :  { %v3569_v57 = vpop.f32.mrb[66].mxu0  ;;  %1715 = vrot.lane.b32.xlu0 %v7140_v45, %s4673_s10  ;;  %v3050_v45 = vld [vmem:[%s7917_s1 + $0xc8] sm:$0xff] }
 0x3f2   :  { %v3570_v8 = vadd.f32 %v6667_v55, %v3569_v57  ;;  %v1628_v53 = vpop.permute.xlu1 %1627  ;;  %v3571_v46 = vpop.f32.mrb[67].mxu0  ;;  %v3178_v43 = vmul.f32 %v7005_v11, %v3050_v45  ;;  %v7265_v11 = vld [vmem:[#allocation2 + $0x1d9] sm:$0xff] }
 0x3f3   :  { %v2286_v54 = vpop.permute.xlu0 %2285  ;;  %v3128_v57 = vld [vmem:[%s7917_s1 + $0x338] sm:$0xff]  ;;  %v2713_v28 = vsel %vm2700_vm6, %v2648_v48, %v1628_v53  ;;  %v3127_v48 = vld [vmem:[%s7917_s1 + $0x330] sm:$0xff] }
 0x3f4   :  { %v3884_v44 = vmax.f32 %v3570_v8, 0.0  ;;  %1459 = vrot.lane.b32.xlu1 %v7106_v22, %s4671_s21  ;;  %v3256_v53 = vmul.f32 %v3128_v57, %v7061_v12 }
 0x3f5   :  { %2489 = vrot.lane.b32.xlu0 %v7234_v29, %s4676_s30 }
 0x3f6   :  { %v3948_v30 = vsel %vm2635_vm5, %v3884_v44, 0.0  ;;  %v2402_v52 = vpop.permute.xlu1 %2401 }
 0x3f7   :  { %v3949_v35 = vadd.f32 %v3948_v30, %v3947_v32  ;;  %v2972_v31 = vsel %vm2960_vm10, %v2907_v7, %v2402_v52  ;;  %v2016_v61 = vpop.permute.xlu0 %2015  ;;  %v7298_v30 = vld [vmem:[#allocation2 + $0x1e7] sm:$0xff] }
 0x3f8   :  { %v3175_v59 = vmul.f32 %v3047_v5, %v2972_v31  ;;  %2295 = vrot.lane.b32.xlu1 %v7247_v10, %s4677_s4  ;;  %v3052_v31 = vld [vmem:[%s7917_s1 + $0xd8] sm:$0xff] }
 0x3f9   :  { %2219 = vrot.lane.b32.xlu0 %v4639_v26, %s4677_s4  ;;  %v3180_v26 = vmul.f32 %v7102_v21, %v3052_v31 }
 0x3fa   :  { %v1822_v14 = vpop.permute.xlu1 %1821  ;;  %3618 = vmatmul.mubr.f32.gmra.mrb[86].mxu0 %v3175_v59 }
 0x3fb   :  { %v7258_v58 = vpop.permute.xlu0 %1899  ;;  %4265 = vmatprep.mubr.msk.f32.mxu0 %vm752_vm4, %v3178_v43  ;;  %v2778_v23 = vsel %vm2765_vm7, %v2713_v28, %v1822_v14 }
 0x3fc   :  { %2025 = vrot.lane.b32.xlu1 %v7261_v40, %s4675_s25 }
 0x3fd   :  { %v3764_v0 = vpop.f32.mrb[42].mxu1  ;;  %2103 = vrot.lane.b32.xlu0 %v7265_v11, %s4675_s25 }
 0x3fe   :  { %v3765_v18 = vadd.f32 %v6667_v55, %v3764_v0  ;;  %v1706_v51 = vpop.permute.xlu1 %1705  ;;  %v3766_v42 = vpop.f32.mrb[43].mxu1 }
 0x3ff   :  { %v7273_v37 = vpop.permute.xlu0 %1629 }
 0x400   :  { %v3923_v15 = vmax.f32 %v3765_v18, 0.0  ;;  %1909 = vrot.lane.b32.xlu1 %v7196_v3, %s4674_s16  ;;  %v2946_v3 = vsel %vm2895_vm9, %v2881_v27, %v2286_v54  ;;  %v3130_v27 = vld [vmem:[%s7917_s1 + $0x348] sm:$0xff] }
 0x401   :  { %1461 = vrot.lane.b32.xlu0 %v7219_v2, %s4671_s21 }
 0x402   :  { %v4031_v34 = vsel %vm2635_vm5, %v3923_v15, 0.0  ;;  %v2480_v8 = vpop.permute.xlu1 %2479  ;;  %v3574_v46 = vpop.f32.mrb[68].mxu0 }
 0x403   :  { %v4032_v24 = vadd.f32 %v4031_v34, %v7193_v63  ;;  %v3011_v44 = vsel %vm2960_vm10, %v2946_v3, %v2480_v8  ;;  %v3575_v5 = vadd.f32 %v6667_v55, %v3574_v46  ;;  %v2404_v45 = vpop.permute.xlu0 %2403  ;;  %v3576_v32 = vpop.f32.mrb[69].mxu0  ;;  %v2843_v63 = vsel %vm2830_vm8, %v2778_v23, %v2016_v61  ;;  %v3049_v55 = vld [vmem:[%s7917_s1 + $0xc0] sm:$0xff]  ;;  %v4646_v34 = vld [vmem:[#allocation2 + $0x1e8] sm:$0xff] }
 0x404   :  { %v3253_v52 = vmul.f32 %v3125_v60, %v3011_v44  ;;  %1639 = vrot.lane.b32.xlu1 %v7207_v38, %s4673_s10  ;;  %v3258_v46 = vmul.f32 %v3130_v27, %v7106_v22  ;;  %v8003_v32 = vld [vmem:[#allocation17_spill] sm:$0xff]  ;;  %v7412_v27 = vld [vmem:[#allocation2 + $0x1e9] sm:$0xff] }
 0x405   :  { %v3885_v54 = vmax.f32 %v3575_v5, 0.0  ;;  %2297 = vrot.lane.b32.xlu0 %v7298_v30, %s4677_s4  ;;  %v4647_v5 = vld [vmem:[#allocation2 + $0xb7] sm:$0xff] }
 0x406   :  { %v2210_v7 = vpop.permute.xlu1 %2209  ;;  %3813 = vmatmul.mubr.f32.gmra.mrb[62].mxu1 %v3253_v52 }
 0x407   :  { %v3950_v38 = vsel %vm2635_vm5, %v3885_v54, 0.0  ;;  %v2908_v12 = vsel %vm2895_vm9, %v2843_v63, %v2210_v7  ;;  %4304 = vmatprep.mubr.msk.f32.mxu1 %vm752_vm4, %v3256_v53  ;;  %v1824_v59 = vpop.permute.xlu0 %1823  ;;  %v8004_v54 = vld [vmem:[#allocation23_spill] sm:$0xff]  ;;  %v4649_v7 = vld [vmem:[#allocation2 + $0xb8] sm:$0xff] }
 0x408   :  { %v7315_v43 = vadd.f32 %v3950_v38, %v3949_v35  ;;  %v2973_v61 = vsel %vm2960_vm10, %v2908_v12, %v2404_v45  ;;  %2413 = vrot.lane.b32.xlu1 %v4642_v4, %s4676_s30  ;;  %v8002_v35 = vld [vmem:[#allocation41_spill] sm:$0xff]  ;;  %v4648_v45 = vld [vmem:[#allocation2 + $0x6f] sm:$0xff] }
 0x409   :  { %2027 = vrot.lane.b32.xlu0 %v7319_v13, %s4675_s25  ;;  %v3177_v47 = vmul.f32 %v3049_v55, %v2973_v61  ;;  %v2622_v0 = vsel %vm752_vm4, %v4644_v33, %v8002_v35  ;;  %v2584_v52 = vsel %vm752_vm4, %v4648_v45, %v8003_v32  ;;  %v7384_v4 = vld [vmem:[#allocation2 + $0x1ef] sm:$0xff] }
 0x40a   :  { %v2094_v19 = vpop.permute.xlu1 %2093  ;;  %v2687_v9 = vsel %vm2635_vm5, %v2622_v0, %v7217_v1  ;;  %v7346_v1 = vld [vmem:[#allocation2 + $0x1e1] sm:$0xff]  ;;  %v2649_v22 = vsel %vm2635_vm5, %v2584_v52, %v8004_v54  ;;  %v3132_v54 = vld [vmem:[%s7917_s1 + $0x358] sm:$0xff] }
 0x40b   :  { %v7324_v14 = vpop.permute.xlu0 %1707  ;;  %3623 = vmatmul.mubr.f32.gmra.mrb[88].mxu0 %v3177_v47  ;;  %v2752_v21 = vsel %vm2700_vm6, %v2687_v9, %v1706_v51  ;;  %v2714_v63 = vsel %vm2700_vm6, %v2649_v22, %v7273_v37  ;;  %v3051_v37 = vld [vmem:[%s7917_s1 + $0xd0] sm:$0xff]  ;;  %v3129_v52 = vld [vmem:[%s7917_s1 + $0x340] sm:$0xff] }
 0x40c   :  { %1833 = vrot.lane.b32.xlu1 %v7200_v20, %s4674_s16  ;;  %4266 = vmatprep.mubr.msk.f32.mxu0 %vm752_vm4, %v3180_v26  ;;  %v2779_v31 = vsel %vm2765_vm7, %v2714_v63, %v1824_v59  ;;  %v3054_v59 = vld [vmem:[%s7917_s1 + $0xe8] sm:$0xff] }
 0x40d   :  { %1911 = vrot.lane.b32.xlu0 %v7234_v29, %s4674_s16  ;;  %v2817_v29 = vsel %vm2765_vm7, %v2752_v21, %v7258_v58 }
 0x40e   :  { %v7336_v18 = vpop.permute.xlu1 %1451  ;;  %v3769_v42 = vpop.f32.mrb[44].mxu1  ;;  %v2882_v15 = vsel %vm2830_vm8, %v2817_v29, %v2094_v19  ;;  %v4651_v29 = vld [vmem:[#allocation2 + $0x1a7] sm:$0xff] }
 0x40f   :  { %v3770_v20 = vadd.f32 %v7341_v17, %v3769_v42  ;;  %v3771_v36 = vpop.f32.mrb[45].mxu1  ;;  %v2482_v16 = vpop.permute.xlu0 %2481 }
 0x410   :  { %1717 = vrot.lane.b32.xlu1 %v7247_v10, %s4673_s10  ;;  %v4650_v36 = vld [vmem:[#allocation2 + $0x1f0] sm:$0xff] }
 0x411   :  { %v3924_v51 = vmax.f32 %v3770_v20, 0.0  ;;  %2105 = vrot.lane.b32.xlu0 %v7346_v1, %s4675_s25 }
 0x412   :  { %v2288_v41 = vpop.permute.xlu1 %2287 }
 0x413   :  { %v4033_v60 = vsel %vm2635_vm5, %v3924_v51, 0.0  ;;  %v2947_v57 = vsel %vm2895_vm9, %v2882_v15, %v2288_v41  ;;  %v2212_v58 = vpop.permute.xlu0 %2211  ;;  %v8005_v51 = vld [vmem:[#allocation37_spill] sm:$0xff] }
 0x414   :  { %v7361_v28 = vadd.f32 %v4033_v60, %v4032_v24  ;;  %v3012_v3 = vsel %vm2960_vm10, %v2947_v57, %v2482_v16  ;;  %2491 = vrot.lane.b32.xlu1 %v4646_v34, %s4676_s30  ;;  %v3182_v16 = vmul.f32 %v7158_v25, %v3054_v59  ;;  %v2623_v15 = vsel %vm752_vm4, %v4651_v29, %v8005_v51 }
 0x415   :  { %1463 = vrot.lane.b32.xlu0 %v7265_v11, %s4671_s21  ;;  %v3255_v8 = vmul.f32 %v3127_v48, %v3012_v3  ;;  %v2688_v41 = vsel %vm2635_vm5, %v2623_v15, %v7336_v18 }
 0x416   :  { %v2018_v23 = vpop.permute.xlu1 %2017  ;;  %v2753_v25 = vsel %vm2700_vm6, %v2688_v41, %v7324_v14  ;;  %v8007_v14 = vld [vmem:[#allocation20_spill] sm:$0xff] }
 0x417   :  { %3818 = vmatmul.mubr.f32.gmra.mrb[64].mxu1 %v3255_v8  ;;  %v2096_v44 = vpop.permute.xlu0 %2095  ;;  %v2844_v47 = vsel %vm2830_vm8, %v2779_v31, %v2018_v23  ;;  %v8006_v23 = vld [vmem:[#allocation18_spill] sm:$0xff] }
 0x418   :  { %2221 = vrot.lane.b32.xlu1 %v4647_v5, %s4677_s4  ;;  %4305 = vmatprep.mubr.msk.f32.mxu1 %vm752_vm4, %v3258_v46  ;;  %v2909_v0 = vsel %vm2895_vm9, %v2844_v47, %v2212_v58  ;;  %v4652_v46 = vld [vmem:[#allocation2 + $0x77] sm:$0xff] }
 0x419   :  { %1719 = vrot.lane.b32.xlu0 %v7298_v30, %s4673_s10  ;;  %v2585_v5 = vsel %vm752_vm4, %v4652_v46, %v8006_v23 }
 0x41a   :  { %v1902_v24 = vpop.permute.xlu1 %1901  ;;  %v2650_v32 = vsel %vm2635_vm5, %v2585_v5, %v8007_v14  ;;  %v4655_v14 = vld [vmem:[#allocation2 + $0x200] sm:$0xff] }
 0x41b   :  { %v7374_v53 = vpop.permute.xlu0 %1453  ;;  %v2818_v57 = vsel %vm2765_vm7, %v2753_v25, %v1902_v24 }
 0x41c   :  { %2415 = vrot.lane.b32.xlu1 %v4649_v7, %s4676_s30  ;;  %v2883_v24 = vsel %vm2830_vm8, %v2818_v57, %v2096_v44  ;;  %v8008_v57 = vld [vmem:[#allocation43_spill] sm:$0xff] }
 0x41d   :  { %1913 = vrot.lane.b32.xlu0 %v4646_v34, %s4674_s16  ;;  %v3579_v55 = vpop.f32.mrb[70].mxu0  ;;  %v7421_v34 = vld [vmem:[#allocation2 + $0x1f7] sm:$0xff] }
 0x41e   :  { %v3580_v38 = vadd.f32 %v7341_v17, %v3579_v55  ;;  %v1632_v12 = vpop.permute.xlu1 %1631  ;;  %v3581_v61 = vpop.f32.mrb[71].mxu0 }
 0x41f   :  { %v2290_v26 = vpop.permute.xlu0 %2289  ;;  %v2715_v22 = vsel %vm2700_vm6, %v2650_v32, %v1632_v12  ;;  %v3260_v12 = vmul.f32 %v3132_v54, %v7219_v2  ;;  %v3134_v54 = vld [vmem:[%s7917_s1 + $0x368] sm:$0xff] }
 0x420   :  { %v3886_v19 = vmax.f32 %v3580_v38, 0.0  ;;  %2299 = vrot.lane.b32.xlu1 %v7384_v4, %s4677_s4  ;;  %v2948_v7 = vsel %vm2895_vm9, %v2883_v24, %v2290_v26 }
 0x421   :  { %1465 = vrot.lane.b32.xlu0 %v7346_v1, %s4671_s21 }
 0x422   :  { %v3952_v33 = vsel %vm2635_vm5, %v3886_v19, 0.0  ;;  %v2406_v35 = vpop.permute.xlu1 %2405 }
 0x423   :  { %v3953_v9 = vadd.f32 %v3952_v33, %v7315_v43  ;;  %v2974_v21 = vsel %vm2960_vm10, %v2909_v0, %v2406_v35  ;;  %v2020_v42 = vpop.permute.xlu0 %2019  ;;  %v4653_v33 = vld [vmem:[#allocation2 + $0x1f8] sm:$0xff] }
 0x424   :  { %v3179_v20 = vmul.f32 %v3051_v37, %v2974_v21  ;;  %2493 = vrot.lane.b32.xlu1 %v4650_v36, %s4676_s30  ;;  %v3056_v21 = vld [vmem:[%s7917_s1 + $0xf8] sm:$0xff] }
 0x425   :  { %1721 = vrot.lane.b32.xlu0 %v7384_v4, %s4673_s10  ;;  %v3184_v15 = vmul.f32 %v7261_v40, %v3056_v21 }
 0x426   :  { %v1826_v43 = vpop.permute.xlu1 %1825  ;;  %3628 = vmatmul.mubr.f32.gmra.mrb[90].mxu0 %v3179_v20 }
 0x427   :  { %v7409_v48 = vpop.permute.xlu0 %1903  ;;  %4267 = vmatprep.mubr.msk.f32.mxu0 %vm752_vm4, %v3182_v16  ;;  %v2780_v44 = vsel %vm2765_vm7, %v2715_v22, %v1826_v43  ;;  %v7461_v16 = vld [vmem:[#allocation2 + $0x1f1] sm:$0xff]  ;;  %v7470_v43 = vld [vmem:[#allocation2 + $0x1ff] sm:$0xff] }
 0x428   :  { %2107 = vrot.lane.b32.xlu1 %v7412_v27, %s4675_s25  ;;  %v2845_v0 = vsel %vm2830_vm8, %v2780_v44, %v2020_v42 }
 0x429   :  { %v3774_v60 = vpop.f32.mrb[46].mxu1  ;;  %1915 = vrot.lane.b32.xlu0 %v4650_v36, %s4674_s16 }
 0x42a   :  { %v3775_v18 = vadd.f32 %v7341_v17, %v3774_v60  ;;  %v1710_v58 = vpop.permute.xlu1 %1709  ;;  %v3776_v3 = vpop.f32.mrb[47].mxu1  ;;  %v4654_v60 = vld [vmem:[#allocation2 + $0x1af] sm:$0xff] }
 0x42b   :  { %v7423_v8 = vpop.permute.xlu0 %1633 }
 0x42c   :  { %v3925_v45 = vmax.f32 %v3775_v18, 0.0  ;;  %2301 = vrot.lane.b32.xlu1 %v7421_v34, %s4677_s4 }
 0x42d   :  { %1467 = vrot.lane.b32.xlu0 %v7412_v27, %s4671_s21 }
 0x42e   :  { %v4035_v63 = vsel %vm2635_vm5, %v3925_v45, 0.0  ;;  %v2484_v55 = vpop.permute.xlu1 %2483  ;;  %v3584_v31 = vpop.f32.mrb[72].mxu0 }
 0x42f   :  { %v4036_v38 = vadd.f32 %v4035_v63, %v7361_v28  ;;  %v3013_v61 = vsel %vm2960_vm10, %v2948_v7, %v2484_v55  ;;  %v3585_v47 = vadd.f32 %v7341_v17, %v3584_v31  ;;  %v2408_v19 = vpop.permute.xlu0 %2407  ;;  %v3586_v37 = vpop.f32.mrb[73].mxu0  ;;  %v3053_v28 = vld [vmem:[%s7917_s1 + $0xe0] sm:$0xff] }
 0x430   :  { %v3257_v59 = vmul.f32 %v3129_v52, %v3013_v61  ;;  %2495 = vrot.lane.b32.xlu1 %v4653_v33, %s4676_s30  ;;  %v3131_v52 = vld [vmem:[%s7917_s1 + $0x350] sm:$0xff]  ;;  %v7501_v63 = vld [vmem:[#allocation2 + $0x1f9] sm:$0xff]  ;;  %v3262_v61 = vmul.f32 %v3134_v54, %v7265_v11  ;;  %v1015_v37 = vld [vmem:[#allocation2 + $0x207] sm:$0xff] }
 0x431   :  { %v3887_v26 = vmax.f32 %v3585_v47, 0.0  ;;  %1723 = vrot.lane.b32.xlu0 %v7421_v34, %s4673_s10  ;;  %v8010_v11 = vld [vmem:[#allocation27_spill] sm:$0xff] }
 0x432   :  { %v2214_v35 = vpop.permute.xlu1 %2213  ;;  %3823 = vmatmul.mubr.f32.gmra.mrb[66].mxu1 %v3257_v59  ;;  %v4656_v59 = vld [vmem:[#allocation2 + $0x7f] sm:$0xff] }
 0x433   :  { %v3954_v20 = vsel %vm2635_vm5, %v3887_v26, 0.0  ;;  %v2910_v2 = vsel %vm2895_vm9, %v2845_v0, %v2214_v35  ;;  %4306 = vmatprep.mubr.msk.f32.mxu1 %vm752_vm4, %v3260_v12  ;;  %v1828_v36 = vpop.permute.xlu0 %1827  ;;  %v1017_v35 = vld [vmem:[#allocation2 + $0x208] sm:$0xff] }
 0x434   :  { %v7463_v29 = vadd.f32 %v3954_v20, %v3953_v9  ;;  %v2975_v42 = vsel %vm2960_vm10, %v2910_v2, %v2408_v19  ;;  %2109 = vrot.lane.b32.xlu1 %v7461_v16, %s4675_s25  ;;  %v2624_v9 = vsel %vm752_vm4, %v4654_v60, %v8008_v57  ;;  %v7527_v60 = vld [vmem:[#allocation2 + $0x201] sm:$0xff] }
 0x435   :  { %1917 = vrot.lane.b32.xlu0 %v4653_v33, %s4674_s16  ;;  %v3181_v51 = vmul.f32 %v3053_v28, %v2975_v42  ;;  %v2689_v18 = vsel %vm2635_vm5, %v2624_v9, %v7374_v53  ;;  %v8009_v33 = vld [vmem:[#allocation21_spill] sm:$0xff] }
 0x436   :  { %v2098_v41 = vpop.permute.xlu1 %2097  ;;  %v2754_v40 = vsel %vm2700_vm6, %v2689_v18, %v1710_v58  ;;  %v2586_v12 = vsel %vm752_vm4, %v4656_v59, %v8009_v33  ;;  %v8012_v59 = vld [vmem:[#allocation22_spill] sm:$0xff] }
 0x437   :  { %v7472_v25 = vpop.permute.xlu0 %1711  ;;  %3633 = vmatmul.mubr.f32.gmra.mrb[92].mxu0 %v3181_v51  ;;  %v2819_v32 = vsel %vm2765_vm7, %v2754_v40, %v7409_v48  ;;  %v2651_v0 = vsel %vm2635_vm5, %v2586_v12, %v8010_v11  ;;  %v3133_v11 = vld [vmem:[%s7917_s1 + $0x360] sm:$0xff] }
 0x438   :  { %2303 = vrot.lane.b32.xlu1 %v7470_v43, %s4677_s4  ;;  %4268 = vmatprep.mubr.msk.f32.mxu0 %vm752_vm4, %v3184_v15  ;;  %v2884_v53 = vsel %vm2830_vm8, %v2819_v32, %v2098_v41  ;;  %v2716_v28 = vsel %vm2700_vm6, %v2651_v0, %v7423_v8  ;;  %v3055_v8 = vld [vmem:[%s7917_s1 + $0xf0] sm:$0xff]  ;;  %v3136_v0 = vld [vmem:[%s7917_s1 + $0x378] sm:$0xff] }
 0x439   :  { %1469 = vrot.lane.b32.xlu0 %v7461_v16, %s4671_s21  ;;  %v2781_v20 = vsel %vm2765_vm7, %v2716_v28, %v1828_v36  ;;  %v3058_v36 = vld [vmem:[%s7917_s1 + $0x108] sm:$0xff] }
 0x43a   :  { %v7484_v3 = vpop.permute.xlu1 %1455  ;;  %v3779_v46 = vpop.f32.mrb[48].mxu1  ;;  %v3186_v32 = vmul.f32 %v7319_v13, %v3058_v36 }
 0x43b   :  { %v3780_v23 = vadd.f32 %v7341_v17, %v3779_v46  ;;  %v3781_v5 = vpop.f32.mrb[49].mxu1  ;;  %v2486_v45 = vpop.permute.xlu0 %2485 }
 0x43c   :  { %2497 = vrot.lane.b32.xlu1 %v4655_v14, %s4676_s30 }
 0x43d   :  { %v3926_v24 = vmax.f32 %v3780_v23, 0.0  ;;  %1725 = vrot.lane.b32.xlu0 %v7470_v43, %s4673_s10 }
 0x43e   :  { %v2292_v58 = vpop.permute.xlu1 %2291 }
 0x43f   :  { %v4037_v22 = vsel %vm2635_vm5, %v3926_v24, 0.0  ;;  %v2949_v7 = vsel %vm2895_vm9, %v2884_v53, %v2292_v58  ;;  %v2216_v48 = vpop.permute.xlu0 %2215  ;;  %v4657_v24 = vld [vmem:[#allocation2 + $0x1b7] sm:$0xff] }
 0x440   :  { %v7503_v55 = vadd.f32 %v4037_v22, %v4036_v38  ;;  %v3014_v31 = vsel %vm2960_vm10, %v2949_v7, %v2486_v45  ;;  %2111 = vrot.lane.b32.xlu1 %v7501_v63, %s4675_s25  ;;  %v1016_v45 = vld [vmem:[#allocation2 + $0x20f] sm:$0xff] }
 0x441   :  { %1919 = vrot.lane.b32.xlu0 %v4655_v14, %s4674_s16  ;;  %v3259_v44 = vmul.f32 %v3131_v52, %v3014_v31  ;;  %v8011_v53 = vld [vmem:[#allocation40_spill] sm:$0xff] }
 0x442   :  { %v2022_v47 = vpop.permute.xlu1 %2021  ;;  %v2625_v58 = vsel %vm752_vm4, %v4657_v24, %v8011_v53  ;;  %v1018_v22 = vld [vmem:[#allocation2 + $0x210] sm:$0xff]  ;;  %v3060_v24 = vld [vmem:[%s7917_s1 + $0x118] sm:$0xff] }
 0x443   :  { %3828 = vmatmul.mubr.f32.gmra.mrb[68].mxu1 %v3259_v44  ;;  %v2100_v19 = vpop.permute.xlu0 %2099  ;;  %v2846_v15 = vsel %vm2830_vm8, %v2781_v20, %v2022_v47  ;;  %v7563_v47 = vld [vmem:[#allocation2 + $0x209] sm:$0xff] }
 0x444   :  { %2305 = vrot.lane.b32.xlu1 %v1015_v37, %s4677_s4  ;;  %4307 = vmatprep.mubr.msk.f32.mxu1 %vm752_vm4, %v3262_v61  ;;  %v2911_v40 = vsel %vm2895_vm9, %v2846_v15, %v2216_v48  ;;  %v1022_v15 = vld [vmem:[#allocation2 + $0x21f] sm:$0xff] }
 0x445   :  { %1471 = vrot.lane.b32.xlu0 %v7501_v63, %s4671_s21 }
 0x446   :  { %v1906_v38 = vpop.permute.xlu1 %1905 }
 0x447   :  { %v7516_v26 = vpop.permute.xlu0 %1457 }
 0x448   :  { %2499 = vrot.lane.b32.xlu1 %v1017_v35, %s4676_s30 }
 0x449   :  { %1727 = vrot.lane.b32.xlu0 %v1015_v37, %s4673_s10  ;;  %v3589_v21 = vpop.f32.mrb[74].mxu0  ;;  %v4658_v37 = vld [vmem:[#allocation2 + $0x87] sm:$0xff] }
 0x44a   :  { %v3590_v2 = vadd.f32 %v7341_v17, %v3589_v21  ;;  %v1636_v42 = vpop.permute.xlu1 %1635  ;;  %v3591_v51 = vpop.f32.mrb[75].mxu0  ;;  %v2587_v33 = vsel %vm752_vm4, %v4658_v37, %v8012_v59  ;;  %v8014_v37 = vld [vmem:[#allocation45_spill] sm:$0xff] }
 0x44b   :  { %v2294_v41 = vpop.permute.xlu0 %2293 }
 0x44c   :  { %v3888_v57 = vmax.f32 %v3590_v2, 0.0  ;;  %2113 = vrot.lane.b32.xlu1 %v7527_v60, %s4675_s25 }
 0x44d   :  { %1921 = vrot.lane.b32.xlu0 %v1017_v35, %s4674_s16 }
 0x44e   :  { %v3956_v9 = vsel %vm2635_vm5, %v3888_v57, 0.0  ;;  %v2410_v18 = vpop.permute.xlu1 %2409 }
 0x44f   :  { %v7541_v46 = vadd.f32 %v3956_v9, %v7463_v29  ;;  %v2976_v23 = vsel %vm2960_vm10, %v2911_v40, %v2410_v18  ;;  %v2024_v5 = vpop.permute.xlu0 %2023  ;;  %v2690_v29 = vsel %vm2635_vm5, %v2625_v58, %v7484_v3  ;;  %v1021_v40 = vld [vmem:[#allocation2 + $0x217] sm:$0xff] }
 0x450   :  { %v3183_v14 = vmul.f32 %v3055_v8, %v2976_v23  ;;  %2307 = vrot.lane.b32.xlu1 %v1016_v45, %s4677_s4  ;;  %v2755_v13 = vsel %vm2700_vm6, %v2690_v29, %v7472_v25  ;;  %v8013_v25 = vld [vmem:[#allocation24_spill] sm:$0xff] }
 0x451   :  { %1473 = vrot.lane.b32.xlu0 %v7527_v60, %s4671_s21  ;;  %v2820_v48 = vsel %vm2765_vm7, %v2755_v13, %v1906_v38  ;;  %v2652_v35 = vsel %vm2635_vm5, %v2587_v33, %v8013_v25  ;;  %v1024_v33 = vld [vmem:[#allocation2 + $0x220] sm:$0xff] }
 0x452   :  { %v1830_v52 = vpop.permute.xlu1 %1829  ;;  %3638 = vmatmul.mubr.f32.gmra.mrb[94].mxu0 %v3183_v14  ;;  %v2885_v38 = vsel %vm2830_vm8, %v2820_v48, %v2100_v19  ;;  %v2717_v28 = vsel %vm2700_vm6, %v2652_v35, %v1636_v42  ;;  %v3264_v42 = vmul.f32 %v3136_v0, %v7346_v1 }
 0x453   :  { %v7552_v54 = vpop.permute.xlu0 %1907  ;;  %4269 = vmatprep.mubr.msk.f32.mxu0 %vm752_vm4, %v3186_v32  ;;  %v2950_v21 = vsel %vm2895_vm9, %v2885_v38, %v2294_v41  ;;  %v2782_v19 = vsel %vm2765_vm7, %v2717_v28, %v1830_v52 }
 0x454   :  { %2501 = vrot.lane.b32.xlu1 %v1018_v22, %s4676_s30  ;;  %v2847_v32 = vsel %vm2830_vm8, %v2782_v19, %v2024_v5 }
 0x455   :  { %v3784_v7 = vpop.f32.mrb[50].mxu1  ;;  %1729 = vrot.lane.b32.xlu0 %v1016_v45, %s4673_s10  ;;  %v1023_v45 = vld [vmem:[#allocation2 + $0x218] sm:$0xff] }
 0x456   :  { %v3785_v31 = vadd.f32 %v7341_v17, %v3784_v7  ;;  %v1714_v3 = vpop.permute.xlu1 %1713  ;;  %v3786_v44 = vpop.f32.mrb[51].mxu1 }
 0x457   :  { %v7561_v61 = vpop.permute.xlu0 %1637  ;;  %v4660_v44 = vld [vmem:[#allocation2 + $0x1bf] sm:$0xff] }
 0x458   :  { %v3927_v12 = vmax.f32 %v3785_v31, 0.0  ;;  %2115 = vrot.lane.b32.xlu1 %v7563_v47, %s4675_s25  ;;  %v7604_v31 = vld [vmem:[#allocation2 + $0x211] sm:$0xff]  ;;  %v2626_v59 = vsel %vm752_vm4, %v4660_v44, %v8014_v37  ;;  %v3062_v44 = vld [vmem:[%s7917_s1 + $0x128] sm:$0xff] }
 0x459   :  { %1923 = vrot.lane.b32.xlu0 %v1018_v22, %s4674_s16  ;;  %v4659_v22 = vld [vmem:[#allocation2 + $0xb1] sm:$0xff] }
 0x45a   :  { %v4039_v20 = vsel %vm2635_vm5, %v3927_v12, 0.0  ;;  %v2488_v2 = vpop.permute.xlu1 %2487  ;;  %v3594_v51 = vpop.f32.mrb[76].mxu0  ;;  %v3188_v13 = vmul.f32 %v4659_v22, %v3060_v24 }
 0x45b   :  { %v4040_v57 = vadd.f32 %v4039_v20, %v7503_v55  ;;  %v3015_v8 = vsel %vm2960_vm10, %v2950_v21, %v2488_v2  ;;  %v3595_v36 = vadd.f32 %v7341_v17, %v3594_v51  ;;  %v2412_v9 = vpop.permute.xlu0 %2411  ;;  %v3596_v18 = vpop.f32.mrb[77].mxu0  ;;  %v3057_v55 = vld [vmem:[%s7917_s1 + $0x100] sm:$0xff] }
 0x45c   :  { %v3261_v23 = vmul.f32 %v3133_v11, %v3015_v8  ;;  %2309 = vrot.lane.b32.xlu1 %v1021_v40, %s4677_s4 }
 0x45d   :  { %v3889_v41 = vmax.f32 %v3595_v36, 0.0  ;;  %2311 = vrot.lane.b32.xlu0 %v1022_v15, %s4677_s4 }
 0x45e   :  { %v2218_v14 = vpop.permute.xlu1 %2217  ;;  %3833 = vmatmul.mubr.f32.gmra.mrb[70].mxu1 %v3261_v23 }
 0x45f   :  { %v3958_v53 = vsel %vm2635_vm5, %v3889_v41, 0.0  ;;  %v2912_v1 = vsel %vm2895_vm9, %v2847_v32, %v2218_v14  ;;  %4308 = vmatprep.mubr.msk.f32.mxu1 %vm752_vm4, %v3264_v42  ;;  %v1832_v58 = vpop.permute.xlu0 %1831  ;;  %v4661_v42 = vld [vmem:[#allocation2 + $0x8f] sm:$0xff]  ;;  %v8015_v41 = vld [vmem:[#allocation25_spill] sm:$0xff] }
 0x460   :  { %v3959_v29 = vadd.f32 %v3958_v53, %v7541_v46  ;;  %v2977_v5 = vsel %vm2960_vm10, %v2912_v1, %v2412_v9  ;;  %2503 = vrot.lane.b32.xlu1 %v1023_v45, %s4676_s30  ;;  %v2691_v46 = vsel %vm2635_vm5, %v2626_v59, %v7516_v26  ;;  %v3135_v26 = vld [vmem:[%s7917_s1 + $0x370] sm:$0xff]  ;;  %v2588_v45 = vsel %vm752_vm4, %v4661_v42, %v8015_v41  ;;  %v8016_v32 = vld [vmem:[#allocation29_spill] sm:$0xff] }
 0x461   :  { %v3185_v52 = vmul.f32 %v3057_v55, %v2977_v5  ;;  %v2756_v12 = vsel %vm2700_vm6, %v2691_v46, %v1714_v3  ;;  %v3138_v3 = vld [vmem:[%s7917_s1 + $0x388] sm:$0xff] }
 0x462   :  { %v2102_v7 = vpop.permute.xlu1 %2101  ;;  %v2821_v28 = vsel %vm2765_vm7, %v2756_v12, %v7552_v54  ;;  %v3266_v9 = vmul.f32 %v3138_v3, %v7412_v27 }
 0x463   :  { %v7602_v48 = vpop.permute.xlu0 %1715  ;;  %3643 = vmatmul.mubr.f32.gmra.mrb[96].mxu0 %v3185_v52  ;;  %v2886_v20 = vsel %vm2830_vm8, %v2821_v28, %v2102_v7  ;;  %v3059_v7 = vld [vmem:[%s7917_s1 + $0x110] sm:$0xff] }
 0x464   :  { %2117 = vrot.lane.b32.xlu1 %v7604_v31, %s4675_s25  ;;  %4270 = vmatprep.mubr.msk.f32.mxu0 %vm752_vm4, %v3188_v13 }
 0x466   :  { %v1460_v25 = vpop.permute.xlu1 %1459  ;;  %v3789_v35 = vpop.f32.mrb[52].mxu1 }
 0x467   :  { %v3790_v38 = vadd.f32 %v7341_v17, %v3789_v35  ;;  %v3791_v11 = vpop.f32.mrb[53].mxu1  ;;  %v2490_v0 = vpop.permute.xlu0 %2489  ;;  %v4662_v35 = vld [vmem:[#allocation2 + $0xb9] sm:$0xff] }
 0x468   :  { %2505 = vrot.lane.b32.xlu1 %v1024_v33, %s4676_s30  ;;  %v4663_v11 = vld [vmem:[#allocation2 + $0x1c7] sm:$0xff] }
 0x469   :  { %v3928_v21 = vmax.f32 %v3790_v38, 0.0  ;;  %v3190_v38 = vmul.f32 %v4662_v35, %v3062_v44  ;;  %v8020_v35 = vld [vmem:[#allocation47_spill] sm:$0xff] }
 0x46a   :  { %v2296_v2 = vpop.permute.xlu1 %2295 }
 0x46b   :  { %v4041_v51 = vsel %vm2635_vm5, %v3928_v21, 0.0  ;;  %v2951_v15 = vsel %vm2895_vm9, %v2886_v20, %v2296_v2  ;;  %v2220_v19 = vpop.permute.xlu0 %2219 }
 0x46c   :  { %v4042_v8 = vadd.f32 %v4041_v51, %v4040_v57  ;;  %v3016_v54 = vsel %vm2960_vm10, %v2951_v15, %v2490_v0  ;;  %v2653_v57 = vsel %vm2635_vm5, %v2588_v45, %v8016_v32  ;;  %v8017_v0 = vld [vmem:[#allocation42_spill] sm:$0xff]  ;;  %v4664_v45 = vld [vmem:[#allocation2 + $0x97] sm:$0xff] }
 0x46d   :  { %v3263_v36 = vmul.f32 %v3135_v26, %v3016_v54  ;;  %v2718_v55 = vsel %vm2700_vm6, %v2653_v57, %v7561_v61  ;;  %v2627_v28 = vsel %vm752_vm4, %v4663_v11, %v8017_v0  ;;  %v8018_v32 = vld [vmem:[#allocation26_spill] sm:$0xff] }
 0x46e   :  { %v2026_v18 = vpop.permute.xlu1 %2025  ;;  %v2783_v27 = vsel %vm2765_vm7, %v2718_v55, %v1832_v58  ;;  %v2692_v21 = vsel %vm2635_vm5, %v2627_v28, %v1460_v25  ;;  %v3137_v25 = vld [vmem:[%s7917_s1 + $0x380] sm:$0xff]  ;;  %v2589_v57 = vsel %vm752_vm4, %v4664_v45, %v8018_v32 }
 0x46f   :  { %3838 = vmatmul.mubr.f32.gmra.mrb[72].mxu1 %v3263_v36  ;;  %v2104_v40 = vpop.permute.xlu0 %2103  ;;  %v2848_v52 = vsel %vm2830_vm8, %v2783_v27, %v2026_v18  ;;  %v3140_v18 = vld [vmem:[%s7917_s1 + $0x398] sm:$0xff] }
 0x470   :  { %4309 = vmatprep.mubr.msk.f32.mxu1 %vm752_vm4, %v3266_v9  ;;  %v2913_v58 = vsel %vm2895_vm9, %v2848_v52, %v2220_v19 }
 0x472   :  { %v1910_v23 = vpop.permute.xlu1 %1909 }
 0x473   :  { %v7632_v14 = vpop.permute.xlu0 %1461 }
 0x475   :  { %v3599_v24 = vpop.f32.mrb[78].mxu0 }
 0x476   :  { %v3600_v53 = vadd.f32 %v7341_v17, %v3599_v24  ;;  %v1640_v1 = vpop.permute.xlu1 %1639  ;;  %v3601_v5 = vpop.f32.mrb[79].mxu0 }
 0x477   :  { %v2298_v22 = vpop.permute.xlu0 %2297  ;;  %v8019_v5 = vld [vmem:[#allocation28_spill] sm:$0xff] }
 0x478   :  { %v3890_v13 = vmax.f32 %v3600_v53, 0.0  ;;  %v2654_v52 = vsel %vm2635_vm5, %v2589_v57, %v8019_v5 }
 0x47a   :  { %v3960_v61 = vsel %vm2635_vm5, %v3890_v13, 0.0  ;;  %v2414_v37 = vpop.permute.xlu1 %2413 }
 0x47b   :  { %v3961_v59 = vadd.f32 %v3960_v61, %v3959_v29  ;;  %v2978_v46 = vsel %vm2960_vm10, %v2913_v58, %v2414_v37  ;;  %v2028_v33 = vpop.permute.xlu0 %2027  ;;  %v2757_v29 = vsel %vm2700_vm6, %v2692_v21, %v7602_v48 }
 0x47c   :  { %v3187_v12 = vmul.f32 %v3059_v7, %v2978_v46  ;;  %v2822_v3 = vsel %vm2765_vm7, %v2757_v29, %v1910_v23  ;;  %v2719_v7 = vsel %vm2700_vm6, %v2654_v52, %v1640_v1 }
 0x47d   :  { %v2887_v9 = vsel %vm2830_vm8, %v2822_v3, %v2104_v40 }
 0x47e   :  { %v1834_v20 = vpop.permute.xlu1 %1833  ;;  %3648 = vmatmul.mubr.f32.gmra.mrb[98].mxu0 %v3187_v12  ;;  %v2952_v48 = vsel %vm2895_vm9, %v2887_v9, %v2298_v22  ;;  %v3268_v22 = vmul.f32 %v3140_v18, %v7461_v16  ;;  %v4665_v12 = vld [vmem:[#allocation2 + $0x1cf] sm:$0xff]  ;;  %v3061_v16 = vld [vmem:[%s7917_s1 + $0x120] sm:$0xff] }
 0x47f   :  { %v1912_v2 = vpop.permute.xlu0 %1911  ;;  %4271 = vmatprep.mubr.msk.f32.mxu0 %vm752_vm4, %v3190_v38  ;;  %v2784_v61 = vsel %vm2765_vm7, %v2719_v7, %v1834_v20  ;;  %v2628_v38 = vsel %vm752_vm4, %v4665_v12, %v8020_v35 }
 0x480   :  { %v2849_v11 = vsel %vm2830_vm8, %v2784_v61, %v2028_v33  ;;  %v2693_v1 = vsel %vm2635_vm5, %v2628_v38, %v7632_v14  ;;  %v3144_v61 = vld [vmem:[%s7917_s1 + $0x3b8] sm:$0xff] }
 0x481   :  { %v3794_v26 = vpop.f32.mrb[54].mxu1 }
 0x482   :  { %v3795_v51 = vadd.f32 %v7341_v17, %v3794_v26  ;;  %v1718_v15 = vpop.permute.xlu1 %1717  ;;  %v3796_v19 = vpop.f32.mrb[55].mxu1 }
 0x483   :  { %v2106_v54 = vpop.permute.xlu0 %2105  ;;  %v2758_v21 = vsel %vm2700_vm6, %v2693_v1, %v1718_v15  ;;  %v3139_v15 = vld [vmem:[%s7917_s1 + $0x390] sm:$0xff] }
 0x484   :  { %v3929_v36 = vmax.f32 %v3795_v51, 0.0  ;;  %v2823_v26 = vsel %vm2765_vm7, %v2758_v21, %v1912_v2 }
 0x485   :  { %v2888_v14 = vsel %vm2830_vm8, %v2823_v26, %v2106_v54 }
 0x486   :  { %v4043_v23 = vsel %vm2635_vm5, %v3929_v36, 0.0  ;;  %v2492_v42 = vpop.permute.xlu1 %2491  ;;  %v3604_v41 = vpop.f32.mrb[80].mxu0 }
 0x487   :  { %v4044_v55 = vadd.f32 %v4043_v23, %v4042_v8  ;;  %v3017_v40 = vsel %vm2960_vm10, %v2952_v48, %v2492_v42  ;;  %v3605_v24 = vadd.f32 %v7341_v17, %v3604_v41  ;;  %v1464_v27 = vpop.permute.xlu0 %1463  ;;  %v3606_v53 = vpop.f32.mrb[81].mxu0 }
 0x488   :  { %v3265_v13 = vmul.f32 %v3137_v25, %v3017_v40  ;;  %v3142_v25 = vld [vmem:[%s7917_s1 + $0x3a8] sm:$0xff]  ;;  %v4666_v40 = vld [vmem:[#allocation2 + $0x1d7] sm:$0xff] }
 0x489   :  { %v3891_v44 = vmax.f32 %v3605_v24, 0.0  ;;  %v3270_v54 = vmul.f32 %v3142_v25, %v7501_v63  ;;  %v8021_v24 = vld [vmem:[#allocation44_spill] sm:$0xff] }
 0x48a   :  { %v2222_v37 = vpop.permute.xlu1 %2221  ;;  %3843 = vmatmul.mubr.f32.gmra.mrb[74].mxu1 %v3265_v13  ;;  %v2629_v53 = vsel %vm752_vm4, %v4666_v40, %v8021_v24 }
 0x48b   :  { %v3962_v8 = vsel %vm2635_vm5, %v3891_v44, 0.0  ;;  %4310 = vmatprep.mubr.msk.f32.mxu1 %vm752_vm4, %v3268_v22  ;;  %v1720_v58 = vpop.permute.xlu0 %1719  ;;  %v2914_v0 = vsel %vm2895_vm9, %v2849_v11, %v2222_v37  ;;  %v2694_v5 = vsel %vm2635_vm5, %v2629_v53, %v1464_v27  ;;  %v3141_v44 = vld [vmem:[%s7917_s1 + $0x3a0] sm:$0xff] }
 0x48c   :  { %v3963_v46 = vadd.f32 %v3962_v8, %v3961_v59  ;;  %v2759_v13 = vsel %vm2700_vm6, %v2694_v5, %v1720_v58  ;;  %v8023_v53 = vld [vmem:[#allocation46_spill] sm:$0xff] }
 0x48d   :  { %v2631_v5 = vsel %vm752_vm4, %v7298_v30, %v8023_v53  ;;  %v3148_v30 = vld [vmem:[%s7917_s1 + $0x3d8] sm:$0xff]  ;;  %v1026_v53 = vld [vmem:[#allocation2 + $0x221] sm:$0xff] }
 0x48e   :  { %v2416_v28 = vpop.permute.xlu1 %2415 }
 0x48f   :  { %v2979_v59 = vsel %vm2960_vm10, %v2914_v0, %v2416_v28  ;;  %v1914_v20 = vpop.permute.xlu0 %1913 }
 0x490   :  { %v3189_v29 = vmul.f32 %v3061_v16, %v2979_v59  ;;  %v3272_v16 = vmul.f32 %v3144_v61, %v7527_v60  ;;  %v8022_v59 = vld [vmem:[#allocation50_spill] sm:$0xff] }
 0x492   :  { %v2300_v3 = vpop.permute.xlu1 %2299  ;;  %3653 = vmatmul.mubr.f32.gmra.mrb[100].mxu0 %v3189_v29  ;;  %v3799_v33 = vpop.f32.mrb[56].mxu1 }
 0x493   :  { %v3800_v51 = vadd.f32 %v7341_v17, %v3799_v33  ;;  %v3801_v19 = vpop.f32.mrb[57].mxu1  ;;  %v1466_v36 = vpop.permute.xlu0 %1465  ;;  %v2953_v2 = vsel %vm2895_vm9, %v2888_v14, %v2300_v3  ;;  %v3146_v14 = vld [vmem:[%s7917_s1 + $0x3c8] sm:$0xff] }
 0x495   :  { %v3930_v9 = vmax.f32 %v3800_v51, 0.0 }
 0x496   :  { %v2494_v18 = vpop.permute.xlu1 %2493 }
 0x497   :  { %v4045_v48 = vsel %vm2635_vm5, %v3930_v9, 0.0  ;;  %v3018_v23 = vsel %vm2960_vm10, %v2953_v2, %v2494_v18  ;;  %v1722_v42 = vpop.permute.xlu0 %1721 }
 0x498   :  { %v4046_v41 = vadd.f32 %v4045_v48, %v4044_v55  ;;  %v3267_v45 = vmul.f32 %v3139_v15, %v3018_v23  ;;  %v2824_v55 = vsel %vm2765_vm7, %v2759_v13, %v1914_v20  ;;  %v2630_v20 = vsel %vm752_vm4, %v7247_v10, %v8022_v59 }
 0x499   :  { %v2695_v29 = vsel %vm2635_vm5, %v2630_v20, %v1466_v36  ;;  %v3274_v23 = vmul.f32 %v3146_v14, %v7563_v47 }
 0x49a   :  { %v2108_v32 = vpop.permute.xlu1 %2107  ;;  %3848 = vmatmul.mubr.f32.gmra.mrb[76].mxu1 %v3267_v45  ;;  %v2760_v3 = vsel %vm2700_vm6, %v2695_v29, %v1722_v42 }
 0x49b   :  { %4311 = vmatprep.mubr.msk.f32.mxu1 %vm752_vm4, %v3270_v54  ;;  %v1916_v57 = vpop.permute.xlu0 %1915  ;;  %v2889_v7 = vsel %vm2830_vm8, %v2824_v55, %v2108_v32 }
 0x49c   :  { %v2825_v60 = vsel %vm2765_vm7, %v2760_v3, %v1916_v57 }
 0x49e   :  { %v2302_v52 = vpop.permute.xlu1 %2301 }
 0x49f   :  { %v1468_v22 = vpop.permute.xlu0 %1467  ;;  %v2954_v37 = vsel %vm2895_vm9, %v2889_v7, %v2302_v52 }
 0x4a0   :  { %v2696_v13 = vsel %vm2635_vm5, %v2631_v5, %v1468_v22  ;;  %v3152_v5 = vld [vmem:[%s7917_s1 + $0x3f8] sm:$0xff] }
 0x4a1   :  { %v3609_v63 = vpop.f32.mrb[82].mxu0 }
 0x4a2   :  { %v3610_v27 = vadd.f32 %v7341_v17, %v3609_v63  ;;  %v2496_v8 = vpop.permute.xlu1 %2495  ;;  %v3611_v58 = vpop.f32.mrb[83].mxu0 }
 0x4a3   :  { %v3019_v12 = vsel %vm2960_vm10, %v2954_v37, %v2496_v8  ;;  %v1724_v35 = vpop.permute.xlu0 %1723  ;;  %v3145_v37 = vld [vmem:[%s7917_s1 + $0x3c0] sm:$0xff] }
 0x4a4   :  { %v3892_v38 = vmax.f32 %v3610_v27, 0.0  ;;  %v3269_v11 = vmul.f32 %v3141_v44, %v3019_v12  ;;  %v2761_v55 = vsel %vm2700_vm6, %v2696_v13, %v1724_v35  ;;  %v3276_v35 = vmul.f32 %v3148_v30, %v7604_v31 }
 0x4a5   :  { %v3280_v30 = vmul.f32 %v3152_v5, %v1026_v53 }
 0x4a6   :  { %v3964_v1 = vsel %vm2635_vm5, %v3892_v38, 0.0  ;;  %v2110_v0 = vpop.permute.xlu1 %2109  ;;  %3853 = vmatmul.mubr.f32.gmra.mrb[78].mxu1 %v3269_v11 }
 0x4a7   :  { %v3965_v28 = vadd.f32 %v3964_v1, %v3963_v46  ;;  %4312 = vmatprep.mubr.msk.f32.mxu1 %vm752_vm4, %v3272_v16  ;;  %v1918_v21 = vpop.permute.xlu0 %1917  ;;  %v2890_v51 = vsel %vm2830_vm8, %v2825_v60, %v2110_v0  ;;  %v3143_v46 = vld [vmem:[%s7917_s1 + $0x3b0] sm:$0xff] }
 0x4a8   :  { %v8024_v0 = vld [vmem:[#allocation51_spill] sm:$0xff] }
 0x4aa   :  { %v2304_v26 = vpop.permute.xlu1 %2303 }
 0x4ab   :  { %v1470_v33 = vpop.permute.xlu0 %1469  ;;  %v2955_v10 = vsel %vm2895_vm9, %v2890_v51, %v2304_v26  ;;  %v1025_v51 = vld [vmem:[#allocation2 + $0x219] sm:$0xff] }
 0x4ad   :  { %v3804_v19 = vpop.f32.mrb[58].mxu1 }
 0x4ae   :  { %v3805_v36 = vadd.f32 %v7341_v17, %v3804_v19  ;;  %v2498_v9 = vpop.permute.xlu1 %2497  ;;  %v3806_v15 = vpop.f32.mrb[59].mxu1  ;;  %v3150_v19 = vld [vmem:[%s7917_s1 + $0x3e8] sm:$0xff] }
 0x4af   :  { %v3020_v25 = vsel %vm2960_vm10, %v2955_v10, %v2498_v9  ;;  %v1726_v2 = vpop.permute.xlu0 %1725  ;;  %v3278_v9 = vmul.f32 %v3150_v19, %v1025_v51 }
 0x4b0   :  { %v3931_v18 = vmax.f32 %v3805_v36, 0.0  ;;  %v3271_v48 = vmul.f32 %v3143_v46, %v3020_v25 }
 0x4b2   :  { %v4047_v42 = vsel %vm2635_vm5, %v3931_v18, 0.0  ;;  %v2112_v45 = vpop.permute.xlu1 %2111  ;;  %v3614_v54 = vpop.f32.mrb[84].mxu0  ;;  %3858 = vmatmul.mubr.f32.gmra.mrb[80].mxu1 %v3271_v48 }
 0x4b3   :  { %v4048_v32 = vadd.f32 %v4047_v42, %v4046_v41  ;;  %v3615_v57 = vadd.f32 %v7341_v17, %v3614_v54  ;;  %4313 = vmatprep.mubr.msk.f32.mxu1 %vm752_vm4, %v3274_v23  ;;  %v1920_v40 = vpop.permute.xlu0 %1919  ;;  %v3616_v24 = vpop.f32.mrb[85].mxu0  ;;  %v2826_v41 = vsel %vm2765_vm7, %v2761_v55, %v1918_v21 }
 0x4b4   :  { %v2891_v61 = vsel %vm2830_vm8, %v2826_v41, %v2112_v45 }
 0x4b5   :  { %v3893_v52 = vmax.f32 %v3615_v57, 0.0 }
 0x4b6   :  { %v2306_v47 = vpop.permute.xlu1 %2305 }
 0x4b7   :  { %v3966_v7 = vsel %vm2635_vm5, %v3893_v52, 0.0  ;;  %v1472_v63 = vpop.permute.xlu0 %1471  ;;  %v2956_v22 = vsel %vm2895_vm9, %v2891_v61, %v2306_v47  ;;  %v3149_v52 = vld [vmem:[%s7917_s1 + $0x3e0] sm:$0xff] }
 0x4b8   :  { %v3967_v44 = vadd.f32 %v3966_v7, %v3965_v28  ;;  %v2632_v28 = vsel %vm752_vm4, %v7384_v4, %v8024_v0  ;;  %v3147_v4 = vld [vmem:[%s7917_s1 + $0x3d0] sm:$0xff]  ;;  %v8026_v7 = vld [vmem:[#allocation53_spill] sm:$0xff] }
 0x4b9   :  { %v2697_v20 = vsel %vm2635_vm5, %v2632_v28, %v1470_v33 }
 0x4ba   :  { %v2500_v27 = vpop.permute.xlu1 %2499  ;;  %v2762_v26 = vsel %vm2700_vm6, %v2697_v20, %v1726_v2  ;;  %v8025_v2 = vld [vmem:[#allocation48_spill] sm:$0xff] }
 0x4bb   :  { %v3021_v8 = vsel %vm2960_vm10, %v2956_v22, %v2500_v27  ;;  %v1728_v58 = vpop.permute.xlu0 %1727  ;;  %v2827_v3 = vsel %vm2765_vm7, %v2762_v26, %v1920_v40  ;;  %v2633_v18 = vsel %vm752_vm4, %v7421_v34, %v8025_v2 }
 0x4bc   :  { %v3273_v12 = vmul.f32 %v3145_v37, %v3021_v8  ;;  %v2698_v42 = vsel %vm2635_vm5, %v2633_v18, %v1472_v63  ;;  %v2634_v63 = vsel %vm752_vm4, %v7470_v43, %v8026_v7 }
 0x4bd   :  { %v2763_v57 = vsel %vm2700_vm6, %v2698_v42, %v1728_v58  ;;  %v4088_v42 = vld [vmem:[%s7920_s6 + $0x8] sm:$0xff] }
 0x4be   :  { %v2114_v38 = vpop.permute.xlu1 %2113  ;;  %v3809_v11 = vpop.f32.mrb[60].mxu1  ;;  %3863 = vmatmul.mubr.f32.gmra.mrb[82].mxu1 %v3273_v12 }
 0x4bf   :  { %v3810_v16 = vadd.f32 %v7341_v17, %v3809_v11  ;;  %v3811_v1 = vpop.f32.mrb[61].mxu1  ;;  %4314 = vmatprep.mubr.msk.f32.mxu1 %vm752_vm4, %v3276_v35  ;;  %v1922_v59 = vpop.permute.xlu0 %1921  ;;  %v2892_v46 = vsel %vm2830_vm8, %v2827_v3, %v2114_v38 }
 0x4c0   :  { %v2828_v40 = vsel %vm2765_vm7, %v2763_v57, %v1922_v59 }
 0x4c1   :  { %v3932_v21 = vmax.f32 %v3810_v16, 0.0 }
 0x4c2   :  { %v2308_v29 = vpop.permute.xlu1 %2307 }
 0x4c3   :  { %v4049_v31 = vsel %vm2635_vm5, %v3932_v21, 0.0  ;;  %v2957_v33 = vsel %vm2895_vm9, %v2892_v46, %v2308_v29  ;;  %v1474_v10 = vpop.permute.xlu0 %1473 }
 0x4c4   :  { %v4050_v60 = vadd.f32 %v4049_v31, %v4048_v32  ;;  %v2699_v22 = vsel %vm2635_vm5, %v2634_v63, %v1474_v10  ;;  %v7812_v31 = vld [vmem:[%s7919_s5] ss:$0 sm:$0xff] }
 0x4c6   :  { %v2502_v14 = vpop.permute.xlu1 %2501 }
 0x4c7   :  { %v3022_v36 = vsel %vm2960_vm10, %v2957_v33, %v2502_v14  ;;  %v1730_v48 = vpop.permute.xlu0 %1729 }
 0x4c8   :  { %v3275_v15 = vmul.f32 %v3147_v4, %v3022_v36  ;;  %v2764_v8 = vsel %vm2700_vm6, %v2699_v22, %v1730_v48 }
 0x4ca   :  { %v2116_v25 = vpop.permute.xlu1 %2115  ;;  %3868 = vmatmul.mubr.f32.gmra.mrb[84].mxu1 %v3275_v15 }
 0x4cb   :  { %4315 = vmatprep.mubr.msk.f32.mxu1 %vm752_vm4, %v3278_v9  ;;  %v2893_v34 = vsel %vm2830_vm8, %v2828_v40, %v2116_v25  ;;  %v1924_v41 = vpop.permute.xlu0 %1923 }
 0x4cc   :  { %v2829_v58 = vsel %vm2765_vm7, %v2764_v8, %v1924_v41  ;;  %v4090_v8 = vld [vmem:[%s7920_s6 + $0x18] sm:$0xff] }
 0x4cd   :  { %v3619_v23 = vpop.f32.mrb[86].mxu0 }
 0x4ce   :  { %v3620_v45 = vadd.f32 %v7341_v17, %v3619_v23  ;;  %v2310_v54 = vpop.permute.xlu1 %2309  ;;  %v3621_v32 = vpop.f32.mrb[87].mxu0  ;;  %v4087_v23 = vld [vmem:[%s7920_s6] sm:$0xff] }
 0x4cf   :  { %v2958_v47 = vsel %vm2895_vm9, %v2893_v34, %v2310_v54  ;;  %v2312_v38 = vpop.permute.xlu0 %2311  ;;  %v8027_v54 = vmov 0.0|0.0  }
 0x4d0   :  { %v3894_v24 = vmax.f32 %v3620_v45, 0.0  ;;  %v4545_v45 = vpack.c.bf16 %v4088_v42, %v4087_v23 }
 0x4d2   :  { %v3968_v13 = vsel %vm2635_vm5, %v3894_v24, 0.0  ;;  %v2504_v55 = vpop.permute.xlu1 %2503  ;;  %4546 = vmatpush3.bf16.msra.mxu0 %v4545_v45 }
 0x4d3   :  { %v3969_v61 = vadd.f32 %v3968_v13, %v3967_v44  ;;  %v3023_v37 = vsel %vm2960_vm10, %v2958_v47, %v2504_v55  ;;  %v3151_v44 = vld [vmem:[%s7917_s1 + $0x3f0] sm:$0xff]  ;;  %4547 = vmatprep.subr.bf16.mxu0 %v8027_v54 }
 0x4d4   :  { %v3277_v27 = vmul.f32 %v3149_v52, %v3023_v37 }
 0x4d6   :  { %v2118_v12 = vpop.permute.xlu1 %2117  ;;  %3873 = vmatmul.mubr.f32.gmra.mrb[86].mxu1 %v3277_v27  ;;  %v4089_v27 = vld [vmem:[%s7920_s6 + $0x10] sm:$0xff] }
 0x4d7   :  { %v2894_v35 = vsel %vm2830_vm8, %v2829_v58, %v2118_v12  ;;  %4316 = vmatprep.mubr.msk.f32.mxu1 %vm752_vm4, %v3280_v30  ;;  %v4548_v58 = vpack.c.bf16 %v4090_v8, %v4089_v27 }
 0x4d8   :  { %v2959_v11 = vsel %vm2895_vm9, %v2894_v35, %v2312_v38 }
 0x4d9   :  { %v3814_v43 = vpop.f32.mrb[62].mxu1  ;;  %4549 = vmatpush3.bf16.msra.mxu0 %v4548_v58  ;;  %v8033_v58 = vld [vmem:[#allocation55_spill] sm:$0xff] }
 0x4da   :  { %v3815_v16 = vadd.f32 %v7341_v17, %v3814_v43  ;;  %v2506_v1 = vpop.permute.xlu1 %2505  ;;  %v3816_v0 = vpop.f32.mrb[63].mxu1 }
 0x4db   :  { %v3024_v28 = vsel %vm2960_vm10, %v2959_v11, %v2506_v1 }
 0x4dc   :  { %v3933_v21 = vmax.f32 %v3815_v16, 0.0  ;;  %v3279_v59 = vmul.f32 %v3151_v44, %v3024_v28 }
 0x4de   :  { %v4051_v20 = vsel %vm2635_vm5, %v3933_v21, 0.0  ;;  %v3624_v29 = vpop.f32.mrb[88].mxu0  ;;  %3878 = vmatmul.mubr.f32.gmra.mrb[88].mxu1 %v3279_v59 }
 0x4df   :  { %v4052_v26 = vadd.f32 %v4051_v20, %v4050_v60  ;;  %v3625_v3 = vadd.f32 %v7812_v31, %v3624_v29  ;;  %v3626_v51 = vpop.f32.mrb[89].mxu0 }
 0x4e1   :  { %v3895_v17 = vmax.f32 %v3625_v3, 0.0 }
 0x4e3   :  { %v3970_v19 = vsel %vm2635_vm5, %v3895_v17, 0.0 }
 0x4e4   :  { %v3971_v46 = vadd.f32 %v3970_v19, %v3969_v61 }
 0x4ea   :  { %v3819_v4 = vpop.f32.mrb[64].mxu1 }
 0x4eb   :  { %v3820_v33 = vadd.f32 %v7812_v31, %v3819_v4  ;;  %v3821_v14 = vpop.f32.mrb[65].mxu1 }
 0x4ec   :  { %v8028_v14 = vmov 0.0  }
 0x4ed   :  { %v3934_v10 = vmax.f32 %v3820_v33, 0.0  ;;  %4504 = vmatprep.mubr.msk.f32.mxu0 %vm4678_vm11, %v8028_v14 }
 0x4ef   :  { %v4053_v36 = vsel %vm2635_vm5, %v3934_v10, 0.0 }
 0x4f0   :  { %v4054_v60 = vadd.f32 %v4053_v36, %v4052_v26 }
 0x4f9   :  { %v3629_v9 = vpop.f32.mrb[90].mxu0 }
 0x4fa   :  { %v3630_v15 = vadd.f32 %v7812_v31, %v3629_v9  ;;  %v3631_v25 = vpop.f32.mrb[91].mxu0 }
 0x4fc   :  { %v3896_v2 = vmax.f32 %v3630_v15, 0.0 }
 0x4fe   :  { %v3972_v18 = vsel %vm2635_vm5, %v3896_v2, 0.0 }
 0x4ff   :  { %v3973_v48 = vadd.f32 %v3972_v18, %v3971_v46 }
 0x505   :  { %v3824_v32 = vpop.f32.mrb[66].mxu1 }
 0x506   :  { %v3825_v57 = vadd.f32 %v7812_v31, %v3824_v32  ;;  %v3826_v40 = vpop.f32.mrb[67].mxu1 }
 0x507   :  { %v8029_v40 = vld [vmem:[#allocation33_spill] sm:$0xff] }
 0x508   :  { %v3935_v24 = vmax.f32 %v3825_v57, 0.0 }
 0x50a   :  { %v4055_v53 = vsel %vm2635_vm5, %v3935_v24, 0.0  ;;  %v3634_v5 = vpop.f32.mrb[92].mxu0  ;;  %v3660_v24 = vadd.f32 %v7812_v31, %v8029_v40 }
 0x50b   :  { %v4056_v34 = vadd.f32 %v4055_v53, %v4054_v60  ;;  %v3635_v52 = vadd.f32 %v7812_v31, %v3634_v5  ;;  %v3636_v13 = vpop.f32.mrb[93].mxu0  ;;  %v13_v60 = vstv %s7921_s7  ;;  %v8030_v5 = vld [vmem:[#allocation38_spill] sm:$0xff] }
 0x50c   :  { %14 = vst [vmem:[#allocation3] sm:$0x1] %v13_v60 }
 0x50d   :  { %v3897_v47 = vmax.f32 %v3635_v52, 0.0 }
 0x50f   :  { %v3974_v55 = vsel %vm2635_vm5, %v3897_v47, 0.0  ;;  %v3902_v47 = vmax.f32 %v3660_v24, 0.0 }
 0x510   :  { %v3975_v7 = vadd.f32 %v3974_v55, %v3973_v48  ;;  %v8031_v55 = vld [vmem:[#allocation49_spill] sm:$0xff] }
 0x511   :  { %v3984_v27 = vsel %vm2635_vm5, %v3902_v47, 0.0 }
 0x516   :  { %v3829_v63 = vpop.f32.mrb[68].mxu1 }
 0x517   :  { %v3830_v41 = vadd.f32 %v7812_v31, %v3829_v63  ;;  %v3831_v61 = vpop.f32.mrb[69].mxu1 }
 0x518   :  { %v8032_v61 = vld [vmem:[#allocation52_spill] sm:$0xff] }
 0x519   :  { %v3936_v37 = vmax.f32 %v3830_v41, 0.0 }
 0x51b   :  { %v4057_v30 = vsel %vm2635_vm5, %v3936_v37, 0.0  ;;  %v3675_v37 = vadd.f32 %v7812_v31, %v8032_v61 }
 0x51c   :  { %v4058_v22 = vadd.f32 %v4057_v30, %v4056_v34  ;;  %v3665_v34 = vadd.f32 %v7812_v31, %v8030_v5 }
 0x51e   :  { %v3903_v41 = vmax.f32 %v3665_v34, 0.0 }
 0x525   :  { %v3639_v12 = vpop.f32.mrb[94].mxu0 }
 0x526   :  { %v3640_v35 = vadd.f32 %v7812_v31, %v3639_v12  ;;  %v3641_v38 = vpop.f32.mrb[95].mxu0  ;;  %v3680_v12 = vadd.f32 %v7812_v31, %v8033_v58 }
 0x528   :  { %v3898_v43 = vmax.f32 %v3640_v35, 0.0 }
 0x52a   :  { %v3976_v44 = vsel %vm2635_vm5, %v3898_v43, 0.0  ;;  %v3986_v43 = vsel %vm2635_vm5, %v3903_v41, 0.0 }
 0x52b   :  { %v3977_v11 = vadd.f32 %v3976_v44, %v3975_v7  ;;  %v3670_v7 = vadd.f32 %v7812_v31, %v8031_v55  ;;  %v3905_v44 = vmax.f32 %v3675_v37, 0.0 }
 0x52d   :  { %v3904_v8 = vmax.f32 %v3670_v7, 0.0 }
 0x531   :  { %v3834_v16 = vpop.f32.mrb[70].mxu1 }
 0x532   :  { %v3835_v1 = vadd.f32 %v7812_v31, %v3834_v16  ;;  %v3836_v0 = vpop.f32.mrb[71].mxu1 }
 0x534   :  { %v3937_v28 = vmax.f32 %v3835_v1, 0.0 }
 0x536   :  { %v4059_v21 = vsel %vm2635_vm5, %v3937_v28, 0.0  ;;  %v3644_v59 = vpop.f32.mrb[96].mxu0 }
 0x537   :  { %v4060_v20 = vadd.f32 %v4059_v21, %v4058_v22  ;;  %v3645_v29 = vadd.f32 %v7812_v31, %v3644_v59  ;;  %v3646_v26 = vpop.f32.mrb[97].mxu0  ;;  %v3988_v21 = vsel %vm2635_vm5, %v3904_v8, 0.0  ;;  %v3906_v59 = vmax.f32 %v3680_v12, 0.0 }
 0x539   :  { %v3899_v3 = vmax.f32 %v3645_v29, 0.0  ;;  %v3992_v14 = vsel %vm2635_vm5, %v3906_v59, 0.0 }
 0x53b   :  { %v3978_v51 = vsel %vm2635_vm5, %v3899_v3, 0.0 }
 0x53c   :  { %v3979_v17 = vadd.f32 %v3978_v51, %v3977_v11  ;;  %v8034_v11 = vld [vmem:[#allocation56_spill] sm:$0xff]  ;;  %v3990_v51 = vsel %vm2635_vm5, %v3905_v44, 0.0 }
 0x53d   :  { %v3685_v16 = vadd.f32 %v7812_v31, %v8034_v11 }
 0x542   :  { %v3839_v19 = vpop.f32.mrb[72].mxu1 }
 0x543   :  { %v3840_v46 = vadd.f32 %v7812_v31, %v3839_v19  ;;  %v3841_v4 = vpop.f32.mrb[73].mxu1  ;;  %v3695_v19 = vadd.f32 %v7812_v31, %v6377_v56 }
 0x545   :  { %v3938_v33 = vmax.f32 %v3840_v46, 0.0 }
 0x547   :  { %v4061_v10 = vsel %vm2635_vm5, %v3938_v33, 0.0 }
 0x548   :  { %v4062_v36 = vadd.f32 %v4061_v10, %v4060_v20  ;;  %v8035_v20 = vld [vmem:[#allocation57_spill] sm:$0xff] }
 0x549   :  { %v3690_v29 = vadd.f32 %v7812_v31, %v8035_v20 }
 0x54b   :  { %v3908_v10 = vmax.f32 %v3690_v29, 0.0 }
 0x54d   :  { %v3996_v56 = vsel %vm2635_vm5, %v3908_v10, 0.0 }
 0x551   :  { %v3649_v9 = vpop.f32.mrb[98].mxu0 }
 0x552   :  { %v3650_v15 = vadd.f32 %v7812_v31, %v3649_v9  ;;  %v3651_v25 = vpop.f32.mrb[99].mxu0 }
 0x553   :  { %v3705_v25 = vadd.f32 %v7812_v31, %v6463_v62 }
 0x554   :  { %v3900_v2 = vmax.f32 %v3650_v15, 0.0  ;;  %v3909_v15 = vmax.f32 %v3695_v19, 0.0 }
 0x556   :  { %v3980_v18 = vsel %vm2635_vm5, %v3900_v2, 0.0 }
 0x557   :  { %v3981_v48 = vadd.f32 %v3980_v18, %v3979_v17  ;;  %v3907_v17 = vmax.f32 %v3685_v16, 0.0 }
 0x559   :  { %v3994_v9 = vsel %vm2635_vm5, %v3907_v17, 0.0 }
 0x55d   :  { %v3844_v23 = vpop.f32.mrb[74].mxu1 }
 0x55e   :  { %v3845_v42 = vadd.f32 %v7812_v31, %v3844_v23  ;;  %v3846_v45 = vpop.f32.mrb[75].mxu1 }
 0x55f   :  { %v3998_v45 = vsel %vm2635_vm5, %v3909_v15, 0.0 }
 0x560   :  { %v3939_v54 = vmax.f32 %v3845_v42, 0.0 }
 0x562   :  { %v4063_v32 = vsel %vm2635_vm5, %v3939_v54, 0.0  ;;  %v3911_v54 = vmax.f32 %v3705_v25, 0.0 }
 0x563   :  { %v4064_v57 = vadd.f32 %v4063_v32, %v4062_v36  ;;  %v3700_v36 = vadd.f32 %v7812_v31, %v6413_v6  ;;  %v3715_v6 = vadd.f32 %v7812_v31, %v6564_v39 }
 0x564   :  { %v4002_v34 = vsel %vm2635_vm5, %v3911_v54, 0.0 }
 0x565   :  { %v3654_v53 = vpop.f32.mrb[100].mxu0  ;;  %v3910_v18 = vmax.f32 %v3700_v36, 0.0 }
 0x566   :  { %v3655_v52 = vadd.f32 %v7812_v31, %v3654_v53  ;;  %v3656_v13 = vpop.f32.mrb[101].mxu0  ;;  %v3720_v53 = vadd.f32 %v7812_v31, %v6591_v49 }
 0x567   :  { %v4000_v62 = vsel %vm2635_vm5, %v3910_v18, 0.0 }
 0x568   :  { %v3901_v63 = vmax.f32 %v3655_v52, 0.0  ;;  %v3913_v52 = vmax.f32 %v3715_v6, 0.0  ;;  %v3914_v7 = vmax.f32 %v3720_v53, 0.0 }
 0x56a   :  { %v3982_v30 = vsel %vm2635_vm5, %v3901_v63, 0.0  ;;  %v4006_v41 = vsel %vm2635_vm5, %v3913_v52, 0.0  ;;  %v4008_v37 = vsel %vm2635_vm5, %v3914_v7, 0.0 }
 0x56b   :  { %v3983_v22 = vadd.f32 %v3982_v30, %v3981_v48  ;;  %v3710_v48 = vadd.f32 %v7812_v31, %v6495_v50 }
 0x56d   :  { %v3985_v35 = vadd.f32 %v3984_v27, %v3983_v22  ;;  %v3849_v38 = vpop.f32.mrb[76].mxu1  ;;  %v3912_v24 = vmax.f32 %v3710_v48, 0.0 }
 0x56e   :  { %v3850_v1 = vadd.f32 %v7812_v31, %v3849_v38  ;;  %v3851_v0 = vpop.f32.mrb[77].mxu1 }
 0x56f   :  { %v3987_v28 = vadd.f32 %v3986_v43, %v3985_v35  ;;  %v4004_v39 = vsel %vm2635_vm5, %v3912_v24, 0.0 }
 0x570   :  { %v3940_v26 = vmax.f32 %v3850_v1, 0.0 }
 0x571   :  { %v3989_v3 = vadd.f32 %v3988_v21, %v3987_v28 }
 0x572   :  { %v4065_v46 = vsel %vm2635_vm5, %v3940_v26, 0.0 }
 0x573   :  { %v3991_v4 = vadd.f32 %v3990_v51, %v3989_v3  ;;  %v4066_v33 = vadd.f32 %v4065_v46, %v4064_v57 }
 0x575   :  { %v3993_v60 = vadd.f32 %v3992_v14, %v3991_v4 }
 0x577   :  { %v3995_v2 = vadd.f32 %v3994_v9, %v3993_v60 }
 0x579   :  { %v3997_v23 = vadd.f32 %v3996_v56, %v3995_v2  ;;  %v3854_v42 = vpop.f32.mrb[78].mxu1 }
 0x57a   :  { %v3855_v32 = vadd.f32 %v7812_v31, %v3854_v42  ;;  %v3856_v57 = vpop.f32.mrb[79].mxu1 }
 0x57b   :  { %v3999_v40 = vadd.f32 %v3998_v45, %v3997_v23 }
 0x57c   :  { %v3941_v5 = vmax.f32 %v3855_v32, 0.0 }
 0x57d   :  { %v4001_v50 = vadd.f32 %v4000_v62, %v3999_v40 }
 0x57e   :  { %v4067_v13 = vsel %vm2635_vm5, %v3941_v5, 0.0 }
 0x57f   :  { %v4003_v47 = vadd.f32 %v4002_v34, %v4001_v50  ;;  %v4068_v55 = vadd.f32 %v4067_v13, %v4066_v33 }
 0x581   :  { %v4005_v63 = vadd.f32 %v4004_v39, %v4003_v47 }
 0x583   :  { %v4007_v61 = vadd.f32 %v4006_v41, %v4005_v63 }
 0x585   :  { %v3859_v30 = vpop.f32.mrb[80].mxu1  ;;  %v4009_v49 = vadd.f32 %v4008_v37, %v4007_v61 }
 0x586   :  { %v3860_v22 = vadd.f32 %v7812_v31, %v3859_v30  ;;  %v3861_v27 = vpop.f32.mrb[81].mxu1 }
 0x587   :  { %v4010_v17 = vrot.slane %v4009_v49, 4 }
 0x588   :  { %v3942_v8 = vmax.f32 %v3860_v22, 0.0 }
 0x589   :  { %v4011_v33 = vadd.f32 %v4010_v17, %v4009_v49 }
 0x58a   :  { %v4069_v58 = vsel %vm2635_vm5, %v3942_v8, 0.0 }
 0x58b   :  { %v4070_v12 = vadd.f32 %v4069_v58, %v4068_v55  ;;  %v4012_v60 = vrot.slane %v4011_v33, 2 }
 0x58d   :  { %v4013_v2 = vadd.f32 %v4012_v60, %v4011_v33 }
 0x58f   :  { %v4014_v48 = vrot.slane %v4013_v2, 1 }
 0x591   :  { %v3864_v35 = vpop.f32.mrb[82].mxu1  ;;  %v4015_v45 = vadd.f32 %v4014_v48, %v4013_v2 }
 0x592   :  { %v3865_v38 = vadd.f32 %v7812_v31, %v3864_v35  ;;  %v3866_v43 = vpop.f32.mrb[83].mxu1 }
 0x593   :  { %v4085_v32 = vmul.f32 0.00390625, %v4015_v45 }
 0x594   :  { %v3943_v44 = vmax.f32 %v3865_v38, 0.0 }
 0x596   :  { %v4071_v11 = vsel %vm2635_vm5, %v3943_v44, 0.0 }
 0x597   :  { %v4072_v16 = vadd.f32 %v4071_v11, %v4070_v12 }
 0x59d   :  { %v3869_v1 = vpop.f32.mrb[84].mxu1 }
 0x59e   :  { %v3870_v0 = vadd.f32 %v7812_v31, %v3869_v1  ;;  %v3871_v28 = vpop.f32.mrb[85].mxu1 }
 0x5a0   :  { %v3944_v21 = vmax.f32 %v3870_v0, 0.0 }
 0x5a2   :  { %v4073_v59 = vsel %vm2635_vm5, %v3944_v21, 0.0 }
 0x5a3   :  { %v4074_v20 = vadd.f32 %v4073_v59, %v4072_v16 }
 0x5a9   :  { %v3874_v29 = vpop.f32.mrb[86].mxu1 }
 0x5aa   :  { %v3875_v26 = vadd.f32 %v7812_v31, %v3874_v29  ;;  %v3876_v3 = vpop.f32.mrb[87].mxu1 }
 0x5ac   :  { %v3945_v51 = vmax.f32 %v3875_v26, 0.0 }
 0x5ae   :  { %v4075_v19 = vsel %vm2635_vm5, %v3945_v51, 0.0 }
 0x5af   :  { %v4076_v46 = vadd.f32 %v4075_v19, %v4074_v20 }
 0x5b1   :  { %v3879_v4 = vpop.f32.mrb[88].mxu1 }
 0x5b2   :  { %v3880_v14 = vadd.f32 %v7812_v31, %v3879_v4  ;;  %v3881_v10 = vpop.f32.mrb[89].mxu1  ;;  %v4317_v31 = vld [vmem:[#allocation3] ss:$0 sm:$0xff] }
 0x5b4   :  { %v3946_v36 = vmax.f32 %v3880_v14, 0.0 }
 0x5b6   :  { %v4077_v9 = vsel %vm2635_vm5, %v3946_v36, 0.0 }
 0x5b7   :  { %v4078_v15 = vadd.f32 %v4077_v9, %v4076_v46 }
 0x5b9   :  { %v4079_v25 = vrot.slane %v4078_v15, 4 }
 0x5bb   :  { %v4080_v56 = vadd.f32 %v4079_v25, %v4078_v15 }
 0x5bd   :  { %v4081_v18 = vrot.slane %v4080_v56, 2 }
 0x5bf   :  { %v4082_v23 = vadd.f32 %v4081_v18, %v4080_v56 }
 0x5c1   :  { %v4083_v42 = vrot.slane %v4082_v23, 1 }
 0x5c3   :  { %v4084_v54 = vadd.f32 %v4083_v42, %v4082_v23 }
 0x5c5   :  { %v4086_v6 = vmul.f32 0.00390625, %v4084_v54 }
 0x5c7   :  { %v4101_v57 = vsel %vm4100_vm12, %v4086_v6, %v4085_v32 }
 0x5c8   :  { %4505 = vmatmul.mubr.msk.f32.vlgmr.msra.gmra.mrb[102].mxu0 %vm2635_vm5, %v4101_v57 }
 0x69b   :  { %v4170_v40 = vpop.f32.mrb[102].mxu0 }
 0x69c   :  { %v4171_v62 = vadd.f32 %v4317_v31, %v4170_v40  ;;  %v4506_v24 = vpop.f32.mrb[103].mxu0 }
 0x69e   :  { %v4174_v53 = vsub.f32 0.0, %v4171_v62 }
 0x6a0   :  { %v4175_v5 = vmul.f32 1.442695, %v4174_v53 }
 0x6a2   :  { %4579 = vpow2.f32 %v4175_v5 }
 0x6ac   :  { %v4580_v50 = vpop.eup %4579 }
 0x6ad   :  { %v4177_v34 = vadd.f32 1.0, %v4580_v50 }
 0x6af   :  { %4581 = vrcp.f32 %v4177_v34 }
 0x6b9   :  { %v4582_v52 = vpop.eup %4581 }
 0x6ba   :  { %4181 = vst.msk [vmem:[%s7922_s8] sm:$0x3] %vm4180_vm13, %v4582_v52 }

</bundles_post_ra>
